<compile_context>
chip_gen: v7x
topology: tpu7x:2x2x1
jax: 0.10.0
libtpu: 0.0.40
codegen_flags: <defaults>
</compile_context>

<pallas_src>
import jax
import jax.numpy as jnp
from jax import lax
from jax.experimental import pallas as pl
from jax.experimental.pallas import tpu as pltpu


# ----------------------------------------------------------------------------
# Pallas kernel: whole MLP forward for one batch tile, fused in VMEM.
#   x_ref : (T, F)      f32   (natural PyTorch layout, batch on sublanes)
#   w1    : (32, F)     f32   (resident; tiny, used in an f32 trans_b matmul)
#   w2..8 : (out, in)   bf16  (resident MXU operands)
#   b*    : (out, 1)    f32   (broadcast over the lane/batch axis)
#   o_ref : (1, T)      f32   (lane-dense output slab)
# ----------------------------------------------------------------------------
def mlp_kernel(x_ref,
               w1_ref, b1_ref, w2_ref, b2_ref, w3_ref, b3_ref,
               w6_ref, b6_ref, w7_ref, b7_ref, w8_ref, b8_ref,
               o_ref):

    # Layer 1: contract the shared F axis of W1(32,F) and x(T,F) -> (32, T).
    # This moves the batch axis onto lanes for the rest of the network without
    # any wrapper-side transpose / extra HBM pass.
    h = lax.dot_general(w1_ref[...], x_ref[...],
                        dimension_numbers=(((1,), (1,)), ((), ())),
                        preferred_element_type=jnp.float32)          # (32, T)
    h = jnp.maximum(h + b1_ref[...], 0.0)

    def layer(h, w_ref, b_ref):
        # bf16 MXU operands, f32 accumulation; bias + ReLU in f32 on the VPU.
        y = jnp.dot(w_ref[...], h.astype(jnp.bfloat16),
                    preferred_element_type=jnp.float32)
        return jnp.maximum(y + b_ref[...], 0.0)

    h = layer(h, w2_ref, b2_ref)     # (64,  T)
    h = layer(h, w3_ref, b3_ref)     # (128, T)
    h = layer(h, w6_ref, b6_ref)     # (64,  T)
    h = layer(h, w7_ref, b7_ref)     # (32,  T)

    # Final layer: no ReLU; (1, T) result -> full-lane, unmasked store.
    y = jnp.dot(w8_ref[...], h.astype(jnp.bfloat16),
                preferred_element_type=jnp.float32) + b8_ref[...]
    o_ref[...] = y.astype(o_ref.dtype)


# ----------------------------------------------------------------------------
# Tile selection: big enough to amortize per-step overhead, >= 2 grid steps
# whenever possible (v7x megacore), multiple of 512 lanes, capped so the
# activation + double-buffered-x footprint fits v7x's 64 MiB VMEM with margin.
# ----------------------------------------------------------------------------
def _pick_batch_tile(B, max_tile=8192):
    half = pl.cdiv(B, 2)
    tile = pl.cdiv(half, 512) * 512
    return int(max(512, min(tile, max_tile)))


# ----------------------------------------------------------------------------
# Wrapper. params are in PyTorch layout: w: (out, in), b: (out,).
# ----------------------------------------------------------------------------
def conv_block_model_forward(x, params, *, batch_tile=None):
    B, F = x.shape
    (w1, b1), (w2, b2), (w3, b3), (w6, b6), (w7, b7), (w8, b8) = params

    if batch_tile is None:
        batch_tile = _pick_batch_tile(B)

    Bp = pl.cdiv(B, batch_tile) * batch_tile
    if x.dtype != jnp.float32:
        x = x.astype(jnp.float32)
    if Bp != B:                       # only pads when B isn't a tile multiple
        x = jnp.pad(x, ((0, Bp - B), (0, 0)))

    def prep_w(w):                    # resident bf16 MXU operand
        return w.astype(jnp.bfloat16)

    def prep_b(b):                    # (out, 1) f32, lane-broadcast
        return b.astype(jnp.float32).reshape(-1, 1)

    ws = [w1.astype(jnp.float32),     # layer-1 weight stays f32 (trans_b dot)
          prep_w(w2), prep_w(w3), prep_w(w6), prep_w(w7), prep_w(w8)]
    bs = [prep_b(b1), prep_b(b2), prep_b(b3), prep_b(b6), prep_b(b7), prep_b(b8)]

    grid = (Bp // batch_tile,)

    def resident(a):
        # Constant block index -> fetched once, stays resident in VMEM.
        return pl.BlockSpec(a.shape, lambda i: (0, 0))

    in_specs = [pl.BlockSpec((batch_tile, F), lambda i: (i, 0))]   # streamed x
    operands = [x]
    for w, b in zip(ws, bs):
        in_specs += [resident(w), resident(b)]
        operands += [w, b]

    out = pl.pallas_call(
        mlp_kernel,
        out_shape=jax.ShapeDtypeStruct((1, Bp), jnp.float32),
        grid_spec=pltpu.PrefetchScalarGridSpec(
            num_scalar_prefetch=0,
            grid=grid,
            in_specs=in_specs,
            out_specs=pl.BlockSpec((1, batch_tile), lambda i: (0, i)),
        ),
        compiler_params=pltpu.CompilerParams(
            dimension_semantics=("parallel",),    # shardable across v7x's 2 TCs
            vmem_limit_bytes=48 * 1024 * 1024,    # <= v7x 64 MiB phys, > v5e/v6e defaults
        ),
    )(*operands)

    # (1, Bp) -> (Bp, 1) is a data-order-preserving reshape; drop batch padding.
    return out.reshape(Bp, 1)[:B]


# ----------------------------------------------------------------------------
# Deterministic parameter init mirroring the PyTorch module's
# _initialize_weights: kaiming_normal_ (fan_in, gain=sqrt(2)) * 0.1, bias = 0.
# Weights kept in PyTorch (out, in) layout.
# ----------------------------------------------------------------------------
def init_params(key, num_feat=3):
    dims = [(num_feat, 32), (32, 64), (64, 128), (128, 64), (64, 32), (32, 1)]
    params = []
    for fan_in, fan_out in dims:
        key, sub = jax.random.split(key)
        std = (2.0 / fan_in) ** 0.5               # kaiming normal, mode='fan_in'
        w = jax.random.normal(sub, (fan_out, fan_in), dtype=jnp.float32) * std * 0.1
        b = jnp.zeros((fan_out,), dtype=jnp.float32)
        params.append((w, b))
    return params


def reference_forward(x, params):
    h = x
    for i, (w, b) in enumerate(params):
        h = jnp.dot(h, w.T, precision=lax.Precision.HIGHEST) + b
        if i < len(params) - 1:
            h = jnp.maximum(h, 0.0)
    return h


if __name__ == "__main__":
    key = jax.random.PRNGKey(0)
    k_params, k_x = jax.random.split(key)

    NUM_FEAT = 3
    BATCH = 2048        # auto tile -> 1024: 2 parallel grid steps (one per v7x TC)

    params = init_params(k_params, num_feat=NUM_FEAT)
    x = jax.random.normal(k_x, (BATCH, NUM_FEAT), dtype=jnp.float32)

    fwd = jax.jit(lambda xx: conv_block_model_forward(xx, params))
    out = jax.block_until_ready(fwd(x))

    ref = reference_forward(x, params)
    assert out.shape == (BATCH, 1), out.shape

    # bf16 MXU operands with f32 accumulation vs an f32 reference; outputs are
    # tiny (0.1-scaled weights, 6 layers), so use a scale-aware tolerance
    # instead of a brittle absolute one.
    err = float(jnp.max(jnp.abs(out - ref)))
    scale = float(jnp.max(jnp.abs(ref)))
    assert err <= 5e-2 * scale + 1e-7, (err, scale)

    print("KERNEL_OK")
</pallas_src>

<mosaic_0001>
module attributes {stable_mosaic.version = 11 : i64} {
  func.func @mlp_kernel(%arg0: i32, %arg1: memref<1024x3xf32, #tpu.memory_space<vmem>>, %arg2: memref<32x3xf32, #tpu.memory_space<vmem>>, %arg3: memref<32x1xf32, #tpu.memory_space<vmem>>, %arg4: memref<64x32xbf16, #tpu.memory_space<vmem>>, %arg5: memref<64x1xf32, #tpu.memory_space<vmem>>, %arg6: memref<128x64xbf16, #tpu.memory_space<vmem>>, %arg7: memref<128x1xf32, #tpu.memory_space<vmem>>, %arg8: memref<64x128xbf16, #tpu.memory_space<vmem>>, %arg9: memref<64x1xf32, #tpu.memory_space<vmem>>, %arg10: memref<32x64xbf16, #tpu.memory_space<vmem>>, %arg11: memref<32x1xf32, #tpu.memory_space<vmem>>, %arg12: memref<1x32xbf16, #tpu.memory_space<vmem>>, %arg13: memref<1x1xf32, #tpu.memory_space<vmem>>, %arg14: memref<1x1024xf32, #tpu.memory_space<vmem>>) attributes {dimension_semantics = [#tpu.dimension_semantics<parallel>], iteration_bounds = array<i64: 2>, scalar_prefetch = 0 : i64, scratch_operands = 0 : i64, tpu.core_type = #tpu.core_type<tc>, window_params = [{transform_indices = @transform_0, window_bounds = array<i64: 1024, 3>}, {pipeline_mode = #tpu.pipeline_mode<synchronous>, transform_indices = @transform_1, window_bounds = array<i64: 32, 3>}, {pipeline_mode = #tpu.pipeline_mode<synchronous>, transform_indices = @transform_2, window_bounds = array<i64: 32, 1>}, {pipeline_mode = #tpu.pipeline_mode<synchronous>, transform_indices = @transform_3, window_bounds = array<i64: 64, 32>}, {pipeline_mode = #tpu.pipeline_mode<synchronous>, transform_indices = @transform_4, window_bounds = array<i64: 64, 1>}, {pipeline_mode = #tpu.pipeline_mode<synchronous>, transform_indices = @transform_5, window_bounds = array<i64: 128, 64>}, {pipeline_mode = #tpu.pipeline_mode<synchronous>, transform_indices = @transform_6, window_bounds = array<i64: 128, 1>}, {pipeline_mode = #tpu.pipeline_mode<synchronous>, transform_indices = @transform_7, window_bounds = array<i64: 64, 128>}, {pipeline_mode = #tpu.pipeline_mode<synchronous>, transform_indices = @transform_8, window_bounds = array<i64: 64, 1>}, {pipeline_mode = #tpu.pipeline_mode<synchronous>, transform_indices = @transform_9, window_bounds = array<i64: 32, 64>}, {pipeline_mode = #tpu.pipeline_mode<synchronous>, transform_indices = @transform_10, window_bounds = array<i64: 32, 1>}, {pipeline_mode = #tpu.pipeline_mode<synchronous>, transform_indices = @transform_11, window_bounds = array<i64: 1, 32>}, {pipeline_mode = #tpu.pipeline_mode<synchronous>, transform_indices = @transform_12, window_bounds = array<i64: 1, 1>}, {transform_indices = @transform_13, window_bounds = array<i64: 1, 1024>}]} {
    %c0 = arith.constant 0 : index
    %c0_0 = arith.constant 0 : index
    %0 = vector.load %arg2[%c0, %c0_0] : memref<32x3xf32, #tpu.memory_space<vmem>>, vector<32x3xf32>
    %c0_1 = arith.constant 0 : index
    %c0_2 = arith.constant 0 : index
    %1 = vector.load %arg1[%c0_1, %c0_2] : memref<1024x3xf32, #tpu.memory_space<vmem>>, vector<1024x3xf32>
    %cst = arith.constant dense<0.000000e+00> : vector<32x1024xf32>
    %2 = tpu.matmul %0, %1, %cst {dimension_numbers = #tpu.dot_dimension_numbers<[1], [1], [0], [0], [0, 0, 1, 0], [], []>} : vector<32x3xf32>, vector<1024x3xf32>, vector<32x1024xf32> -> vector<32x1024xf32>
    %c0_3 = arith.constant 0 : index
    %c0_4 = arith.constant 0 : index
    %3 = vector.load %arg3[%c0_3, %c0_4] : memref<32x1xf32, #tpu.memory_space<vmem>>, vector<32x1xf32>
    %4 = vector.broadcast %3 : vector<32x1xf32> to vector<32x1024xf32>
    %5 = arith.addf %2, %4 : vector<32x1024xf32>
    %cst_5 = arith.constant 0.000000e+00 : f32
    %6 = vector.broadcast %cst_5 : f32 to vector<32x1024xf32>
    %7 = arith.maximumf %5, %6 : vector<32x1024xf32>
    %c0_6 = arith.constant 0 : index
    %c0_7 = arith.constant 0 : index
    %8 = vector.load %arg4[%c0_6, %c0_7] : memref<64x32xbf16, #tpu.memory_space<vmem>>, vector<64x32xbf16>
    %9 = arith.truncf %7 : vector<32x1024xf32> to vector<32x1024xbf16>
    %cst_8 = arith.constant dense<0.000000e+00> : vector<64x1024xf32>
    %10 = tpu.matmul %8, %9, %cst_8 {dimension_numbers = #tpu.dot_dimension_numbers<[1], [0], [0], [1], [0, 0, 1, 1], [], []>} : vector<64x32xbf16>, vector<32x1024xbf16>, vector<64x1024xf32> -> vector<64x1024xf32>
    %c0_9 = arith.constant 0 : index
    %c0_10 = arith.constant 0 : index
    %11 = vector.load %arg5[%c0_9, %c0_10] : memref<64x1xf32, #tpu.memory_space<vmem>>, vector<64x1xf32>
    %12 = vector.broadcast %11 : vector<64x1xf32> to vector<64x1024xf32>
    %13 = arith.addf %10, %12 : vector<64x1024xf32>
    %cst_11 = arith.constant 0.000000e+00 : f32
    %14 = vector.broadcast %cst_11 : f32 to vector<64x1024xf32>
    %15 = arith.maximumf %13, %14 : vector<64x1024xf32>
    %c0_12 = arith.constant 0 : index
    %c0_13 = arith.constant 0 : index
    %16 = vector.load %arg6[%c0_12, %c0_13] : memref<128x64xbf16, #tpu.memory_space<vmem>>, vector<128x64xbf16>
    %17 = arith.truncf %15 : vector<64x1024xf32> to vector<64x1024xbf16>
    %cst_14 = arith.constant dense<0.000000e+00> : vector<128x1024xf32>
    %18 = tpu.matmul %16, %17, %cst_14 {dimension_numbers = #tpu.dot_dimension_numbers<[1], [0], [0], [1], [0, 0, 1, 1], [], []>} : vector<128x64xbf16>, vector<64x1024xbf16>, vector<128x1024xf32> -> vector<128x1024xf32>
    %c0_15 = arith.constant 0 : index
    %c0_16 = arith.constant 0 : index
    %19 = vector.load %arg7[%c0_15, %c0_16] : memref<128x1xf32, #tpu.memory_space<vmem>>, vector<128x1xf32>
    %20 = vector.broadcast %19 : vector<128x1xf32> to vector<128x1024xf32>
    %21 = arith.addf %18, %20 : vector<128x1024xf32>
    %cst_17 = arith.constant 0.000000e+00 : f32
    %22 = vector.broadcast %cst_17 : f32 to vector<128x1024xf32>
    %23 = arith.maximumf %21, %22 : vector<128x1024xf32>
    %c0_18 = arith.constant 0 : index
    %c0_19 = arith.constant 0 : index
    %24 = vector.load %arg8[%c0_18, %c0_19] : memref<64x128xbf16, #tpu.memory_space<vmem>>, vector<64x128xbf16>
    %25 = arith.truncf %23 : vector<128x1024xf32> to vector<128x1024xbf16>
    %cst_20 = arith.constant dense<0.000000e+00> : vector<64x1024xf32>
    %26 = tpu.matmul %24, %25, %cst_20 {dimension_numbers = #tpu.dot_dimension_numbers<[1], [0], [0], [1], [0, 0, 1, 1], [], []>} : vector<64x128xbf16>, vector<128x1024xbf16>, vector<64x1024xf32> -> vector<64x1024xf32>
    %c0_21 = arith.constant 0 : index
    %c0_22 = arith.constant 0 : index
    %27 = vector.load %arg9[%c0_21, %c0_22] : memref<64x1xf32, #tpu.memory_space<vmem>>, vector<64x1xf32>
    %28 = vector.broadcast %27 : vector<64x1xf32> to vector<64x1024xf32>
    %29 = arith.addf %26, %28 : vector<64x1024xf32>
    %cst_23 = arith.constant 0.000000e+00 : f32
    %30 = vector.broadcast %cst_23 : f32 to vector<64x1024xf32>
    %31 = arith.maximumf %29, %30 : vector<64x1024xf32>
    %c0_24 = arith.constant 0 : index
    %c0_25 = arith.constant 0 : index
    %32 = vector.load %arg10[%c0_24, %c0_25] : memref<32x64xbf16, #tpu.memory_space<vmem>>, vector<32x64xbf16>
    %33 = arith.truncf %31 : vector<64x1024xf32> to vector<64x1024xbf16>
    %cst_26 = arith.constant dense<0.000000e+00> : vector<32x1024xf32>
    %34 = tpu.matmul %32, %33, %cst_26 {dimension_numbers = #tpu.dot_dimension_numbers<[1], [0], [0], [1], [0, 0, 1, 1], [], []>} : vector<32x64xbf16>, vector<64x1024xbf16>, vector<32x1024xf32> -> vector<32x1024xf32>
    %c0_27 = arith.constant 0 : index
    %c0_28 = arith.constant 0 : index
    %35 = vector.load %arg11[%c0_27, %c0_28] : memref<32x1xf32, #tpu.memory_space<vmem>>, vector<32x1xf32>
    %36 = vector.broadcast %35 : vector<32x1xf32> to vector<32x1024xf32>
    %37 = arith.addf %34, %36 : vector<32x1024xf32>
    %cst_29 = arith.constant 0.000000e+00 : f32
    %38 = vector.broadcast %cst_29 : f32 to vector<32x1024xf32>
    %39 = arith.maximumf %37, %38 : vector<32x1024xf32>
    %c0_30 = arith.constant 0 : index
    %c0_31 = arith.constant 0 : index
    %40 = vector.load %arg12[%c0_30, %c0_31] : memref<1x32xbf16, #tpu.memory_space<vmem>>, vector<1x32xbf16>
    %41 = arith.truncf %39 : vector<32x1024xf32> to vector<32x1024xbf16>
    %cst_32 = arith.constant dense<0.000000e+00> : vector<1x1024xf32>
    %42 = tpu.matmul %40, %41, %cst_32 {dimension_numbers = #tpu.dot_dimension_numbers<[1], [0], [0], [1], [0, 0, 1, 1], [], []>} : vector<1x32xbf16>, vector<32x1024xbf16>, vector<1x1024xf32> -> vector<1x1024xf32>
    %c0_33 = arith.constant 0 : index
    %c0_34 = arith.constant 0 : index
    %43 = vector.load %arg13[%c0_33, %c0_34] : memref<1x1xf32, #tpu.memory_space<vmem>>, vector<1x1xf32>
    %44 = vector.broadcast %43 : vector<1x1xf32> to vector<1x1024xf32>
    %45 = arith.addf %42, %44 : vector<1x1024xf32>
    %c0_35 = arith.constant 0 : index
    %c0_36 = arith.constant 0 : index
    %46 = vector.load %arg14[%c0_35, %c0_36] : memref<1x1024xf32, #tpu.memory_space<vmem>>, vector<1x1024xf32>
    tpu.vector_store %arg14[%c0_35, %c0_36], %45 {strides = array<i32>} : memref<1x1024xf32, #tpu.memory_space<vmem>>, vector<1x1024xf32>,
    return
  }
  func.func @transform_0(%arg0: i32) -> (i32, i32) {
    %c0_i32 = arith.constant 0 : i32
    %c0_i32_0 = arith.constant 0 : i32
    return %arg0, %c0_i32 : i32, i32
  }
  func.func @transform_1(%arg0: i32) -> (i32, i32) {
    %c0_i32 = arith.constant 0 : i32
    %c0_i32_0 = arith.constant 0 : i32
    %c0_i32_1 = arith.constant 0 : i32
    return %c0_i32, %c0_i32_0 : i32, i32
  }
  func.func @transform_2(%arg0: i32) -> (i32, i32) {
    %c0_i32 = arith.constant 0 : i32
    %c0_i32_0 = arith.constant 0 : i32
    %c0_i32_1 = arith.constant 0 : i32
    return %c0_i32, %c0_i32_0 : i32, i32
  }
  func.func @transform_3(%arg0: i32) -> (i32, i32) {
    %c0_i32 = arith.constant 0 : i32
    %c0_i32_0 = arith.constant 0 : i32
    %c0_i32_1 = arith.constant 0 : i32
    return %c0_i32, %c0_i32_0 : i32, i32
  }
  func.func @transform_4(%arg0: i32) -> (i32, i32) {
    %c0_i32 = arith.constant 0 : i32
    %c0_i32_0 = arith.constant 0 : i32
    %c0_i32_1 = arith.constant 0 : i32
    return %c0_i32, %c0_i32_0 : i32, i32
  }
  func.func @transform_5(%arg0: i32) -> (i32, i32) {
    %c0_i32 = arith.constant 0 : i32
    %c0_i32_0 = arith.constant 0 : i32
    %c0_i32_1 = arith.constant 0 : i32
    return %c0_i32, %c0_i32_0 : i32, i32
  }
  func.func @transform_6(%arg0: i32) -> (i32, i32) {
    %c0_i32 = arith.constant 0 : i32
    %c0_i32_0 = arith.constant 0 : i32
    %c0_i32_1 = arith.constant 0 : i32
    return %c0_i32, %c0_i32_0 : i32, i32
  }
  func.func @transform_7(%arg0: i32) -> (i32, i32) {
    %c0_i32 = arith.constant 0 : i32
    %c0_i32_0 = arith.constant 0 : i32
    %c0_i32_1 = arith.constant 0 : i32
    return %c0_i32, %c0_i32_0 : i32, i32
  }
  func.func @transform_8(%arg0: i32) -> (i32, i32) {
    %c0_i32 = arith.constant 0 : i32
    %c0_i32_0 = arith.constant 0 : i32
    %c0_i32_1 = arith.constant 0 : i32
    return %c0_i32, %c0_i32_0 : i32, i32
  }
  func.func @transform_9(%arg0: i32) -> (i32, i32) {
    %c0_i32 = arith.constant 0 : i32
    %c0_i32_0 = arith.constant 0 : i32
    %c0_i32_1 = arith.constant 0 : i32
    return %c0_i32, %c0_i32_0 : i32, i32
  }
  func.func @transform_10(%arg0: i32) -> (i32, i32) {
    %c0_i32 = arith.constant 0 : i32
    %c0_i32_0 = arith.constant 0 : i32
    %c0_i32_1 = arith.constant 0 : i32
    return %c0_i32, %c0_i32_0 : i32, i32
  }
  func.func @transform_11(%arg0: i32) -> (i32, i32) {
    %c0_i32 = arith.constant 0 : i32
    %c0_i32_0 = arith.constant 0 : i32
    %c0_i32_1 = arith.constant 0 : i32
    return %c0_i32, %c0_i32_0 : i32, i32
  }
  func.func @transform_12(%arg0: i32) -> (i32, i32) {
    %c0_i32 = arith.constant 0 : i32
    %c0_i32_0 = arith.constant 0 : i32
    %c0_i32_1 = arith.constant 0 : i32
    return %c0_i32, %c0_i32_0 : i32, i32
  }
  func.func @transform_13(%arg0: i32) -> (i32, i32) {
    %c0_i32 = arith.constant 0 : i32
    %c0_i32_0 = arith.constant 0 : i32
    return %c0_i32, %arg0 : i32, i32
  }
}

</mosaic_0001>

<bundles_post_ra>
// kernel: _lambda_.1
= control target key start
LH: loop header
LB: loop body
LE: loop exit
PB: predicated region body
PF: predicated region fallthrough
CT: control target
= control target key end

     0   :  { %s5841_s0 = inlined_call_operand.vmem [shape: f32[2048,3], index: 0, kind: input, shape index: {}]   ;;  %s5842_s1 = inlined_call_operand.vmem [shape: f32[32,3], index: 1, kind: input, shape index: {}]   ;;  %s5843_s2 = inlined_call_operand.vmem [shape: f32[32,1], index: 2, kind: input, shape index: {}, may-alias: {2,10}]   ;;  %s5844_s3 = inlined_call_operand.vmem [shape: bf16[64,32], index: 3, kind: input, shape index: {}]   ;;  %s5845_s4 = inlined_call_operand.vmem [shape: f32[64,1], index: 4, kind: input, shape index: {}, may-alias: {4,8}]   ;;  %s5846_s5 = inlined_call_operand.vmem [shape: bf16[128,64], index: 5, kind: input, shape index: {}]   ;;  %s5847_s6 = inlined_call_operand.vmem [shape: f32[128,1], index: 6, kind: input, shape index: {}]   ;;  %s5848_s7 = inlined_call_operand.vmem [shape: bf16[64,128], index: 7, kind: input, shape index: {}]   ;;  %s5849_s8 = inlined_call_operand.vmem [shape: f32[64,1], index: 8, kind: input, shape index: {}, may-alias: {4,8}]   ;;  %s5850_s9 = inlined_call_operand.vmem [shape: bf16[32,64], index: 9, kind: input, shape index: {}]   ;;  %s5851_s10 = inlined_call_operand.vmem [shape: f32[32,1], index: 10, kind: input, shape index: {}, may-alias: {2,10}]   ;;  %s5852_s11 = inlined_call_operand.vmem [shape: bf16[1,32], index: 11, kind: input, shape index: {}]   ;;  %s5853_s12 = inlined_call_operand.<no memory space> [shape: f32[1,1], index: 12, kind: input, shape index: {}]   ;;  %s5854_s13 = inlined_call_operand.hbm [shape: f32[1,2048], index: 13, kind: output, shape index: {}]  }
   0x1   :  { %v18_v0 = vstv %s5853_s12 }
   0x2   :  { %19 = vst [vmem:[#allocation2] sm:$0x1] %v18_v0 }
   0x3   :  { %20 = vsyncpa [#allocation4], 0 }
   0x4   :  { %22 = vsyncpa [#allocation4 + $0x1], 0  ;;  %s4571_s27 = smov 0   ;;  %s4573_s28 = smov 0  }
   0x5   :  { %s4575_s29 = smov 0   ;;  %s4577_s30 = smov 0  }
   0x6 LB: > { %5856 = sst [smem:[#allocation6_spill]] %s4489_s29  ;;  %s3782_s12 = sadd.s32 4294967295, %s4493_s30   ;;  %s4493_s30 = sphi %s4577_s30, %s5866_s30   ;;  %s4489_s29 = sphi %s4575_s29, %s5863_s29   ;;  %s4485_s28 = sphi %s4573_s28, %s5865_s28   ;;  %s4481_s27 = sphi %s4571_s27, %s5864_s27  }
   0x7   : > { %s3783_s14 = sadd.s32 4294967294, %s4493_s30   ;;  %s4594_s15 = sadd.s32 1, %s4493_s30  }
   0x8   : > { %s313_s16 = sadd.s32 1, %s4489_s29  ;;  %s310_s17 = ssub.s32 %s4493_s30, %s4594_s15 }
   0x9   : > { %p323_p0 = scmp.ne.s32.totalorder %s4489_s29, %s4485_s28  ;;  %p311_p1 = scmp.eq.s32.totalorder %s310_s17, 0 }
   0xa   : > { %p324_p2 = scmp.eq.s32.totalorder %s3782_s12, 1  ;;  %p329_p3 = scmp.ne.s32.totalorder %s4485_s28, %s4481_s27 }
   0xb   : > { %p330_p4 = scmp.eq.s32.totalorder %s3783_s14, 1  ;;  %p3786_p7 = scmp.ge.s32.totalorder %s4493_s30, 1 }
   0xc   : > { %s4604_s18 = scalar_select %p311_p1, %s4489_s29, %s313_s16  }
   0xd   : > { %p4606_p5 = por %p324_p2, %p323_p0  ;;  %p4610_p6 = por %p330_p4, %p329_p3 }
   0xe   : > { %5857 = sst [smem:[#allocation7_spill]] %s4604_s18  ;;  %p393_p8 = scmp.lt.s32.totalorder %s4493_s30, 3 }
  0x10   : > { %p394_p9 = pnand %p3786_p7, %p393_p8 }
  0x11   : > { %s4616_s21 = sshll.u32 (!%p394_p9), %s3782_s12, 7  ;;  %vm601_vm0 = vcmask (!%p394_p9), 23552   ;;  %v4621_v1 = vld [vmem:[%s5842_s1] sm:$0xff] (!%p394_p9)  ;;  %v4495_v3 = vmov (!%p394_p9), 0   ;;  %v579_v4 = vld [vmem:[%s5843_s2 + $0x10] sm:$0xff] (!%p394_p9)  ;;  %v578_v5 = vld [vmem:[%s5843_s2 + $0x8] sm:$0xff] (!%p394_p9) }
  0x12   : > { %397 = sbr.rel (%p394_p9) target bundleno = 1648 (0x670), region = 72  ;;  %p438_p10 = scmp.lt.s32.totalorder (!%p394_p9), %s4616_s21, 255  ;;  %4050 = vmatprep.mubr.msk.f32.mxu0 (!%p394_p9), %vm601_vm0, %v4621_v1  ;;  %4090 = vmatprep.mubr.msk.f32.mxu1 (!%p394_p9), %vm601_vm0, %v4621_v1  ;;  %v577_v2 = vld [vmem:[%s5843_s2] sm:$0xff] (!%p394_p9)  ;;  %v580_v6 = vld [vmem:[%s5843_s2 + $0x18] sm:$0xff] (!%p394_p9)  ;;  %vm4650_vm1 = vmpackc.low (!%p394_p9), %vm601_vm0, %vm601_vm0  ;;  %vm1478_vm2 = vcmask (!%p394_p9), 261120   ;;  %vm2031_vm3 = vcmask (!%p394_p9), 523264  }
  0x13   : > { %4411 = vset.pattern.permute.xlu0 (!%p394_p9), %v4495_v3  ;;  %4412 = vset.pattern.permute.xlu1 (!%p394_p9), %v4495_v3  ;;  %v1410_v11 = vld [vmem:[%s5845_s4] sm:$0xff] (!%p394_p9)  ;;  %v1412_v27 = vld [vmem:[%s5845_s4 + $0x10] sm:$0xff] (!%p394_p9)  ;;  %v1411_v28 = vld [vmem:[%s5845_s4 + $0x8] sm:$0xff] (!%p394_p9)  ;;  %s434_s12 = sand.u32 (!%p394_p9), 1, %s4485_s28   ;;  %s4497_s18 = smov (!%p394_p9), [#allocation3]  }
  0x14   : > { %583 = vperm.xlu0 (!%p394_p9), %4411, %v577_v2   ;;  %593 = vperm.xlu1 (!%p394_p9), %4412, %v579_v4   ;;  %v1413_v38 = vld [vmem:[%s5845_s4 + $0x18] sm:$0xff] (!%p394_p9)  ;;  %v1414_v42 = vld [vmem:[%s5845_s4 + $0x20] sm:$0xff] (!%p394_p9)  ;;  %v1415_v43 = vld [vmem:[%s5845_s4 + $0x28] sm:$0xff] (!%p394_p9)  ;;  %s4435_s26 = sshll.u32 (!%p394_p9), %s4497_s18, 4  ;;  %s4436_s26 = int_to_ptr.vmem [resolvable:$false] %s4435_s26 }
  0x15   : > { %v1416_v52 = vld [vmem:[%s5845_s4 + $0x30] sm:$0xff] (!%p394_p9)  ;;  %v1417_v54 = vld [vmem:[%s5845_s4 + $0x38] sm:$0xff] (!%p394_p9)  ;;  %v1895_v58 = vld [vmem:[%s5847_s6] sm:$0xff] (!%p394_p9) }
  0x16   : > { %v1896_v59 = vld [vmem:[%s5847_s6 + $0x8] sm:$0xff] (!%p394_p9) }
  0x18   : > { %588 = vperm.xlu0 (!%p394_p9), %4411, %v578_v5   ;;  %598 = vperm.xlu1 (!%p394_p9), %4412, %v580_v6   ;;  %v1897_v6 = vld [vmem:[%s5847_s6 + $0x10] sm:$0xff] (!%p394_p9) }
  0x19   : > { %s439_s14 = scalar_select %p438_p10, %s4616_s21, 255 }
  0x1b   : > { %s3789_s24 = sshll.u32 %s439_s14, 3  ;;  %s3787_s14 = sshll.u32 %s434_s12, 3 }
  0x1c   : > { %s4646_s29 = scalar_lea.vmem %s5841_s0, %s3789_s24  ;;  %1420 = vperm.xlu0 %4411, %v1410_v11   ;;  %1425 = vperm.xlu1 %4412, %v1411_v28   ;;  %s436_s16 = scalar_lea.vmem [#allocation3], %s3787_s14 }
  0x1d   : > { %v465_v8 = vld [vmem:[%s4646_s29 + $0x80] sm:$0xff]  ;;  %v466_v9 = vld [vmem:[%s4646_s29 + $0x88] sm:$0xff]  ;;  %v467_v20 = vld [vmem:[%s4646_s29 + $0x90] sm:$0xff]  ;;  %s3724_s17 = sshll.u32 %s436_s16, 4  ;;  %s3710_s24 = scalar_lea.sflag [#allocation4], %s434_s12  ;;  %s5801_s17 = int_to_ptr.vmem [resolvable:$true] %s3724_s17 }
  0x1e   : > { %v497_v10 = vld [vmem:[%s4646_s29 + $0x180] sm:$0xff]  ;;  %v4178_v12 = vpack.c.bf16 %v466_v9, %v465_v8  ;;  %v498_v13 = vld [vmem:[%s4646_s29 + $0x188] sm:$0xff]  ;;  %v468_v22 = vld [vmem:[%s4646_s29 + $0x98] sm:$0xff]  ;;  %s4431_s25 = scalar_lea.vmem %s5801_s17, 128  ;;  %s4437_s14 = scalar_lea.vmem %s4436_s26, 256 }
  0x1f   : > { %v449_v14 = vld [vmem:[%s4646_s29] sm:$0xff]  ;;  %v450_v15 = vld [vmem:[%s4646_s29 + $0x8] sm:$0xff]  ;;  %v4226_v16 = vpack.c.bf16 %v498_v13, %v497_v10  ;;  %v499_v23 = vld [vmem:[%s4646_s29 + $0x190] sm:$0xff]  ;;  %v4184_v25 = vpack.c.bf16 %v468_v22, %v467_v20  ;;  %p4432_p11 = scmp.ne.s32.totalorder %s5801_s17, %s4431_s25  ;;  %p4438_p0 = scmp.lt.s32.totalorder %s5801_s17, %s4436_s26 }
  0x20   : > { %v4181_v17 = vpack.c.bf16 %v450_v15, %v449_v14  ;;  %v481_v18 = vld [vmem:[%s4646_s29 + $0x100] sm:$0xff]  ;;  %v482_v19 = vld [vmem:[%s4646_s29 + $0x108] sm:$0xff]  ;;  %4180 = vmatprep.subr.msk.bf16.mxu0 %vm4650_vm1, %v4178_v12  ;;  %v500_v24 = vld [vmem:[%s4646_s29 + $0x198] sm:$0xff]  ;;  %1430 = vperm.xlu0 %4411, %v1412_v27   ;;  %p4439_p1 = scmp.lt.s32.totalorder %s4437_s14, %s4431_s25 }
  0x21   : > { %v4229_v21 = vpack.c.bf16 %v482_v19, %v481_v18  ;;  %4228 = vmatprep.subr.msk.bf16.mxu1 %vm4650_vm1, %v4226_v16  ;;  %v4232_v26 = vpack.c.bf16 %v500_v24, %v499_v23  ;;  %v451_v29 = vld [vmem:[%s4646_s29 + $0x10] sm:$0xff]  ;;  %v452_v30 = vld [vmem:[%s4646_s29 + $0x18] sm:$0xff]  ;;  %v469_v33 = vld [vmem:[%s4646_s29 + $0xa0] sm:$0xff]  ;;  %1435 = vperm.xlu1 %4412, %v1413_v38   ;;  %p4433_p12 = pnand %p4432_p11, %p4606_p5 }
  0x22   : > { %4183 = vmatpush3.bf16.xpose.msk.msra.mxu0 %vm4650_vm1, %v4181_v17  ;;  %v483_v31 = vld [vmem:[%s4646_s29 + $0x110] sm:$0xff]  ;;  %v484_v32 = vld [vmem:[%s4646_s29 + $0x118] sm:$0xff]  ;;  %v470_v34 = vld [vmem:[%s4646_s29 + $0xa8] sm:$0xff]  ;;  %v4187_v37 = vpack.c.bf16 %v452_v30, %v451_v29  ;;  %p4440_p2 = por %p4439_p1, %p4438_p0 }
  0x23   : > { %4231 = vmatpush3.bf16.xpose.msk.msra.mxu1 %vm4650_vm1, %v4229_v21  ;;  %4186 = vmatprep.subr.msk.bf16.mxu0 %vm4650_vm1, %v4184_v25  ;;  %v501_v35 = vld [vmem:[%s4646_s29 + $0x1a0] sm:$0xff]  ;;  %v502_v36 = vld [vmem:[%s4646_s29 + $0x1a8] sm:$0xff]  ;;  %v4235_v39 = vpack.c.bf16 %v484_v32, %v483_v31  ;;  %v4190_v40 = vpack.c.bf16 %v470_v34, %v469_v33  ;;  %v471_v48 = vld [vmem:[%s4646_s29 + $0xb0] sm:$0xff]  ;;  %p4434_p13 = pneg %p4433_p12 }
  0x24   : > { %4234 = vmatprep.subr.msk.bf16.mxu1 %vm4650_vm1, %v4232_v26  ;;  %v4238_v41 = vpack.c.bf16 %v502_v36, %v501_v35  ;;  %v453_v44 = vld [vmem:[%s4646_s29 + $0x20] sm:$0xff]  ;;  %v454_v45 = vld [vmem:[%s4646_s29 + $0x28] sm:$0xff]  ;;  %v472_v49 = vld [vmem:[%s4646_s29 + $0xb8] sm:$0xff]  ;;  %1440 = vperm.xlu0 %4411, %v1414_v42  }
  0x25   : > { %v485_v46 = vld [vmem:[%s4646_s29 + $0x120] sm:$0xff]  ;;  %v486_v47 = vld [vmem:[%s4646_s29 + $0x128] sm:$0xff]  ;;  %v503_v50 = vld [vmem:[%s4646_s29 + $0x1b0] sm:$0xff]  ;;  %1445 = vperm.xlu1 %4412, %v1415_v43   ;;  %v4193_v53 = vpack.c.bf16 %v454_v45, %v453_v44  ;;  %v4196_v56 = vpack.c.bf16 %v472_v49, %v471_v48  ;;  %p4441_p3 = pnand %p4440_p2, %p4434_p13 }
  0x26   : > { %v504_v51 = vld [vmem:[%s4646_s29 + $0x1b8] sm:$0xff]  ;;  %v4241_v55 = vpack.c.bf16 %v486_v47, %v485_v46  ;;  %v455_v60 = vld [vmem:[%s4646_s29 + $0x30] sm:$0xff]  ;;  %v473_v0 = vld [vmem:[%s4646_s29 + $0xc0] sm:$0xff] }
  0x27   : > { %v4244_v57 = vpack.c.bf16 %v504_v51, %v503_v50  ;;  %v456_v61 = vld [vmem:[%s4646_s29 + $0x38] sm:$0xff]  ;;  %v487_v62 = vld [vmem:[%s4646_s29 + $0x130] sm:$0xff]  ;;  %v474_v2 = vld [vmem:[%s4646_s29 + $0xc8] sm:$0xff] }
  0x28   : > { %1450 = vperm.xlu0 %4411, %v1416_v52   ;;  %v488_v63 = vld [vmem:[%s4646_s29 + $0x138] sm:$0xff]  ;;  %v505_v4 = vld [vmem:[%s4646_s29 + $0x1c0] sm:$0xff]  ;;  %v506_v5 = vld [vmem:[%s4646_s29 + $0x1c8] sm:$0xff]  ;;  %v4199_v8 = vpack.c.bf16 %v456_v61, %v455_v60  ;;  %v4202_v10 = vpack.c.bf16 %v474_v2, %v473_v0 }
  0x29   : > { %1455 = vperm.xlu1 %4412, %v1417_v54   ;;  %v4247_v9 = vpack.c.bf16 %v488_v63, %v487_v62  ;;  %v4250_v11 = vpack.c.bf16 %v506_v5, %v505_v4  ;;  %v1899_v12 = vld [vmem:[%s5847_s6 + $0x20] sm:$0xff]  ;;  %v458_v14 = vld [vmem:[%s4646_s29 + $0x48] sm:$0xff]  ;;  %v475_v17 = vld [vmem:[%s4646_s29 + $0xd0] sm:$0xff] }
  0x2a   : > { %4189 = vmatpush3.bf16.xpose.msk.msra.mxu0 %vm4650_vm1, %v4187_v37  ;;  %v457_v13 = vld [vmem:[%s4646_s29 + $0x40] sm:$0xff]  ;;  %v490_v16 = vld [vmem:[%s4646_s29 + $0x148] sm:$0xff]  ;;  %v476_v18 = vld [vmem:[%s4646_s29 + $0xd8] sm:$0xff] }
  0x2b   : > { %4237 = vmatpush3.bf16.xpose.msk.msra.mxu1 %vm4650_vm1, %v4235_v39  ;;  %4192 = vmatprep.subr.msk.bf16.mxu0 %vm4650_vm1, %v4190_v40  ;;  %v489_v15 = vld [vmem:[%s4646_s29 + $0x140] sm:$0xff]  ;;  %v507_v19 = vld [vmem:[%s4646_s29 + $0x1d0] sm:$0xff]  ;;  %v508_v20 = vld [vmem:[%s4646_s29 + $0x1d8] sm:$0xff]  ;;  %v4205_v21 = vpack.c.bf16 %v458_v14, %v457_v13  ;;  %v4208_v23 = vpack.c.bf16 %v476_v18, %v475_v17 }
  0x2c   : > { %4240 = vmatprep.subr.msk.bf16.mxu1 %vm4650_vm1, %v4238_v41  ;;  %1913 = vperm.xlu0 %4411, %v1895_v58   ;;  %v4253_v22 = vpack.c.bf16 %v490_v16, %v489_v15  ;;  %v4256_v24 = vpack.c.bf16 %v508_v20, %v507_v19  ;;  %v459_v25 = vld [vmem:[%s4646_s29 + $0x50] sm:$0xff]  ;;  %v460_v26 = vld [vmem:[%s4646_s29 + $0x58] sm:$0xff]  ;;  %v477_v29 = vld [vmem:[%s4646_s29 + $0xe0] sm:$0xff] }
  0x2d   : > { %1918 = vperm.xlu1 %4412, %v1896_v59   ;;  %v491_v27 = vld [vmem:[%s4646_s29 + $0x150] sm:$0xff]  ;;  %v492_v28 = vld [vmem:[%s4646_s29 + $0x158] sm:$0xff]  ;;  %v478_v30 = vld [vmem:[%s4646_s29 + $0xe8] sm:$0xff]  ;;  %v4211_v33 = vpack.c.bf16 %v460_v26, %v459_v25 }
  0x2e   : > { %v509_v31 = vld [vmem:[%s4646_s29 + $0x1e0] sm:$0xff]  ;;  %v510_v32 = vld [vmem:[%s4646_s29 + $0x1e8] sm:$0xff]  ;;  %v4259_v34 = vpack.c.bf16 %v492_v28, %v491_v27  ;;  %v4214_v35 = vpack.c.bf16 %v478_v30, %v477_v29  ;;  %v1901_v37 = vld [vmem:[%s5847_s6 + $0x30] sm:$0xff] }
  0x2f   : > { %v4262_v36 = vpack.c.bf16 %v510_v32, %v509_v31  ;;  %v1898_v38 = vld [vmem:[%s5847_s6 + $0x18] sm:$0xff]  ;;  %v461_v39 = vld [vmem:[%s4646_s29 + $0x60] sm:$0xff]  ;;  %v462_v41 = vld [vmem:[%s4646_s29 + $0x68] sm:$0xff] }
  0x30   : > { %1923 = vperm.xlu0 %4411, %v1897_v6   ;;  %v1903_v40 = vld [vmem:[%s5847_s6 + $0x40] sm:$0xff]  ;;  %v1900_v43 = vld [vmem:[%s5847_s6 + $0x28] sm:$0xff]  ;;  %v479_v45 = vld [vmem:[%s4646_s29 + $0xf0] sm:$0xff]  ;;  %v4217_v49 = vpack.c.bf16 %v462_v41, %v461_v39 }
  0x31   : > { %1928 = vperm.xlu1 %4412, %v1898_v38   ;;  %v493_v42 = vld [vmem:[%s4646_s29 + $0x160] sm:$0xff]  ;;  %v494_v44 = vld [vmem:[%s4646_s29 + $0x168] sm:$0xff]  ;;  %v480_v46 = vld [vmem:[%s4646_s29 + $0xf8] sm:$0xff] }
  0x32   : > { %4195 = vmatpush3.bf16.xpose.msk.msra.mxu0 %vm4650_vm1, %v4193_v53  ;;  %v511_v47 = vld [vmem:[%s4646_s29 + $0x1f0] sm:$0xff]  ;;  %v512_v48 = vld [vmem:[%s4646_s29 + $0x1f8] sm:$0xff]  ;;  %v4265_v51 = vpack.c.bf16 %v494_v44, %v493_v42  ;;  %v4220_v52 = vpack.c.bf16 %v480_v46, %v479_v45  ;;  %v1904_v58 = vld [vmem:[%s5847_s6 + $0x48] sm:$0xff] }
  0x33   : > { %4243 = vmatpush3.bf16.xpose.msk.msra.mxu1 %vm4650_vm1, %v4241_v55  ;;  %4198 = vmatprep.subr.msk.bf16.mxu0 %vm4650_vm1, %v4196_v56  ;;  %v1905_v50 = vld [vmem:[%s5847_s6 + $0x50] sm:$0xff]  ;;  %v1902_v53 = vld [vmem:[%s5847_s6 + $0x38] sm:$0xff]  ;;  %v4268_v54 = vpack.c.bf16 %v512_v48, %v511_v47  ;;  %v1907_v55 = vld [vmem:[%s5847_s6 + $0x60] sm:$0xff] }
  0x34   : > { %4246 = vmatprep.subr.msk.bf16.mxu1 %vm4650_vm1, %v4244_v57  ;;  %1933 = vperm.xlu0 %4411, %v1899_v12   ;;  %v463_v56 = vld [vmem:[%s4646_s29 + $0x70] sm:$0xff]  ;;  %v464_v57 = vld [vmem:[%s4646_s29 + $0x78] sm:$0xff]  ;;  %v529_v61 = vld [vmem:[%s4646_s29 + $0x280] sm:$0xff] }
  0x35   : > { %1938 = vperm.xlu1 %4412, %v1900_v43   ;;  %v495_v59 = vld [vmem:[%s4646_s29 + $0x170] sm:$0xff]  ;;  %v496_v60 = vld [vmem:[%s4646_s29 + $0x178] sm:$0xff]  ;;  %v530_v62 = vld [vmem:[%s4646_s29 + $0x288] sm:$0xff]  ;;  %v4223_v5 = vpack.c.bf16 %v464_v57, %v463_v56 }
  0x36   : > { %v561_v63 = vld [vmem:[%s4646_s29 + $0x380] sm:$0xff]  ;;  %v562_v0 = vld [vmem:[%s4646_s29 + $0x388] sm:$0xff]  ;;  %v1909_v2 = vld [vmem:[%s5847_s6 + $0x70] sm:$0xff]  ;;  %v4271_v6 = vpack.c.bf16 %v496_v60, %v495_v59 }
  0x37   : > { %v1906_v4 = vld [vmem:[%s5847_s6 + $0x58] sm:$0xff]  ;;  %v514_v12 = vld [vmem:[%s4646_s29 + $0x208] sm:$0xff]  ;;  %v545_v14 = vld [vmem:[%s4646_s29 + $0x300] sm:$0xff] }
  0x38   : > { %1943 = vperm.xlu0 %4411, %v1901_v37   ;;  %v1908_v13 = vld [vmem:[%s5847_s6 + $0x68] sm:$0xff]  ;;  %v531_v16 = vld [vmem:[%s4646_s29 + $0x290] sm:$0xff]  ;;  %v532_v17 = vld [vmem:[%s4646_s29 + $0x298] sm:$0xff] }
  0x39   : > { %1948 = vperm.xlu1 %4412, %v1902_v53   ;;  %v546_v15 = vld [vmem:[%s4646_s29 + $0x308] sm:$0xff]  ;;  %v563_v19 = vld [vmem:[%s4646_s29 + $0x390] sm:$0xff]  ;;  %v564_v20 = vld [vmem:[%s4646_s29 + $0x398] sm:$0xff] }
  0x3a   : > { %4201 = vmatpush3.bf16.xpose.msk.msra.mxu0 %vm4650_vm1, %v4199_v8  ;;  %v4274_v8 = vpack.c.bf16 %v530_v62, %v529_v61  ;;  %v4328_v25 = vpack.c.bf16 %v564_v20, %v563_v19  ;;  %v4891_v26 = vld [vmem:[%s5842_s1 + $0x10] sm:$0xff]  ;;  %v516_v28 = vld [vmem:[%s4646_s29 + $0x218] sm:$0xff]  ;;  %v533_v32 = vld [vmem:[%s4646_s29 + $0x2a0] sm:$0xff] }
  0x3b   : > { %4249 = vmatpush3.bf16.xpose.msk.msra.mxu1 %vm4650_vm1, %v4247_v9  ;;  %4204 = vmatprep.subr.msk.bf16.mxu0 %vm4650_vm1, %v4202_v10  ;;  %v4322_v9 = vpack.c.bf16 %v562_v0, %v561_v63  ;;  %v2708_v10 = vld [vmem:[%s5849_s8] sm:$0xff]  ;;  %v515_v27 = vld [vmem:[%s4646_s29 + $0x210] sm:$0xff]  ;;  %v548_v30 = vld [vmem:[%s4646_s29 + $0x318] sm:$0xff] }
  0x3c   : > { %4252 = vmatprep.subr.msk.bf16.mxu1 %vm4650_vm1, %v4250_v11  ;;  %1953 = vperm.xlu0 %4411, %v1903_v40   ;;  %v513_v11 = vld [vmem:[%s4646_s29 + $0x200] sm:$0xff]  ;;  %v547_v29 = vld [vmem:[%s4646_s29 + $0x310] sm:$0xff]  ;;  %v1910_v31 = vld [vmem:[%s5847_s6 + $0x78] sm:$0xff] }
  0x3d   : > { %1958 = vperm.xlu1 %4412, %v1904_v58   ;;  %v4277_v18 = vpack.c.bf16 %v514_v12, %v513_v11  ;;  %v566_v37 = vld [vmem:[%s4646_s29 + $0x3a8] sm:$0xff]  ;;  %v4331_v38 = vpack.c.bf16 %v548_v30, %v547_v29  ;;  %v4924_v39 = vld [vmem:[%s5842_s1 + $0x18] sm:$0xff]  ;;  %v517_v42 = vld [vmem:[%s4646_s29 + $0x220] sm:$0xff] }
  0x3e   : > { %v518_v43 = vld [vmem:[%s4646_s29 + $0x228] sm:$0xff]  ;;  %v549_v44 = vld [vmem:[%s4646_s29 + $0x320] sm:$0xff]  ;;  %v535_v46 = vld [vmem:[%s4646_s29 + $0x2b0] sm:$0xff] }
  0x3f   : > { %v550_v45 = vld [vmem:[%s4646_s29 + $0x328] sm:$0xff]  ;;  %v536_v47 = vld [vmem:[%s4646_s29 + $0x2b8] sm:$0xff]  ;;  %v3172_v57 = vld [vmem:[%s5851_s10] sm:$0xff] }
  0x40   : > { %1963 = vperm.xlu0 %4411, %v1905_v50   ;;  %v2709_v48 = vld [vmem:[%s5849_s8 + $0x8] sm:$0xff]  ;;  %v568_v50 = vld [vmem:[%s4646_s29 + $0x3b8] sm:$0xff]  ;;  %v4337_v53 = vpack.c.bf16 %v550_v45, %v549_v44  ;;  %v519_v58 = vld [vmem:[%s4646_s29 + $0x230] sm:$0xff] }
  0x41   : > { %1968 = vperm.xlu1 %4412, %v1906_v4   ;;  %v2711_v56 = vld [vmem:[%s5849_s8 + $0x18] sm:$0xff]  ;;  %v551_v60 = vld [vmem:[%s4646_s29 + $0x330] sm:$0xff]  ;;  %v537_v62 = vld [vmem:[%s4646_s29 + $0x2c0] sm:$0xff] }
  0x42   : > { %4207 = vmatpush3.bf16.xpose.msk.msra.mxu0 %vm4650_vm1, %v4205_v21  ;;  %v2710_v21 = vld [vmem:[%s5849_s8 + $0x10] sm:$0xff]  ;;  %v520_v59 = vld [vmem:[%s4646_s29 + $0x238] sm:$0xff]  ;;  %v538_v63 = vld [vmem:[%s4646_s29 + $0x2c8] sm:$0xff] }
  0x43   : > { %4255 = vmatpush3.bf16.xpose.msk.msra.mxu1 %vm4650_vm1, %v4253_v22  ;;  %4210 = vmatprep.subr.msk.bf16.mxu0 %vm4650_vm1, %v4208_v23  ;;  %v4325_v22 = vpack.c.bf16 %v546_v15, %v545_v14  ;;  %v4876_v23 = vld [vmem:[%s5842_s1 + $0x8] sm:$0xff]  ;;  %v552_v61 = vld [vmem:[%s4646_s29 + $0x338] sm:$0xff]  ;;  %v569_v0 = vld [vmem:[%s4646_s29 + $0x3c0] sm:$0xff] }
  0x44   : > { %4258 = vmatprep.subr.msk.bf16.mxu1 %vm4650_vm1, %v4256_v24  ;;  %1973 = vperm.xlu0 %4411, %v1907_v55   ;;  %v4280_v24 = vpack.c.bf16 %v532_v17, %v531_v16  ;;  %v2713_v4 = vld [vmem:[%s5849_s8 + $0x28] sm:$0xff]  ;;  %v2715_v11 = vld [vmem:[%s5849_s8 + $0x38] sm:$0xff]  ;;  %v3473_v12 = vld [vmem:[#allocation2] sm:$0x1] }
  0x45   : > { %1978 = vperm.xlu1 %4412, %v1908_v13   ;;  %v521_v13 = vld [vmem:[%s4646_s29 + $0x240] sm:$0xff]  ;;  %v522_v14 = vld [vmem:[%s4646_s29 + $0x248] sm:$0xff]  ;;  %v539_v17 = vld [vmem:[%s4646_s29 + $0x2d0] sm:$0xff] }
  0x46   : > { %v553_v15 = vld [vmem:[%s4646_s29 + $0x340] sm:$0xff]  ;;  %v554_v16 = vld [vmem:[%s4646_s29 + $0x348] sm:$0xff]  ;;  %v571_v19 = vld [vmem:[%s4646_s29 + $0x3d0] sm:$0xff] }
  0x47   : > { %v572_v20 = vld [vmem:[%s4646_s29 + $0x3d8] sm:$0xff]  ;;  %v523_v29 = vld [vmem:[%s4646_s29 + $0x250] sm:$0xff]  ;;  %v557_v44 = vld [vmem:[%s4646_s29 + $0x360] sm:$0xff] }
  0x48   : > { %1983 = vperm.xlu0 %4411, %v1909_v2   ;;  %v570_v2 = vld [vmem:[%s4646_s29 + $0x3c8] sm:$0xff]  ;;  %v524_v30 = vld [vmem:[%s4646_s29 + $0x258] sm:$0xff] }
  0x49   : > { %1988 = vperm.xlu1 %4412, %v1910_v31   ;;  %v555_v31 = vld [vmem:[%s4646_s29 + $0x350] sm:$0xff]  ;;  %v558_v45 = vld [vmem:[%s4646_s29 + $0x368] sm:$0xff] }
  0x4a   : > { %4213 = vmatpush3.bf16.xpose.msk.msra.mxu0 %vm4650_vm1, %v4211_v33  ;;  %v534_v33 = vld [vmem:[%s4646_s29 + $0x2a8] sm:$0xff] }
  0x4b   : > { %4261 = vmatpush3.bf16.xpose.msk.msra.mxu1 %vm4650_vm1, %v4259_v34  ;;  %4216 = vmatprep.subr.msk.bf16.mxu0 %vm4650_vm1, %v4214_v35  ;;  %v2712_v34 = vld [vmem:[%s5849_s8 + $0x20] sm:$0xff]  ;;  %v4283_v35 = vpack.c.bf16 %v516_v28, %v515_v27  ;;  %v4286_v40 = vpack.c.bf16 %v534_v33, %v533_v32  ;;  %v4352_v27 = vpack.c.bf16 %v572_v20, %v571_v19  ;;  %v3175_v28 = vld [vmem:[%s5851_s10 + $0x18] sm:$0xff] }
  0x4c   : > { %4264 = vmatprep.subr.msk.bf16.mxu1 %vm4650_vm1, %v4262_v36  ;;  %2718 = vperm.xlu0 %4411, %v2708_v10   ;;  %v565_v36 = vld [vmem:[%s4646_s29 + $0x3a0] sm:$0xff]  ;;  %v4346_v10 = vpack.c.bf16 %v570_v2, %v569_v0  ;;  %v556_v32 = vld [vmem:[%s4646_s29 + $0x358] sm:$0xff] }
  0x4d   : > { %v4334_v41 = vpack.c.bf16 %v566_v37, %v565_v36  ;;  %2723 = vperm.xlu1 %4412, %v2709_v48   ;;  %v541_v33 = vld [vmem:[%s4646_s29 + $0x2e0] sm:$0xff]  ;;  %v574_v36 = vld [vmem:[%s4646_s29 + $0x3e8] sm:$0xff]  ;;  %v4307_v37 = vpack.c.bf16 %v524_v30, %v523_v29  ;;  %v575_v48 = vld [vmem:[%s4646_s29 + $0x3f0] sm:$0xff] }
  0x50   : > { %2728 = vperm.xlu0 %4411, %v2710_v21   ;;  %v3173_v21 = vld [vmem:[%s5851_s10 + $0x8] sm:$0xff] }
  0x51   : > { %2733 = vperm.xlu1 %4412, %v2711_v56   ;;  %v559_v56 = vld [vmem:[%s4646_s29 + $0x370] sm:$0xff] }
  0x52   : > { %4219 = vmatpush3.bf16.xpose.msk.msra.mxu0 %vm4650_vm1, %v4217_v49  ;;  %v567_v49 = vld [vmem:[%s4646_s29 + $0x3b0] sm:$0xff] }
  0x53   : > { %4267 = vmatpush3.bf16.xpose.msk.msra.mxu1 %vm4650_vm1, %v4265_v51  ;;  %4222 = vmatprep.subr.msk.bf16.mxu0 %vm4650_vm1, %v4220_v52  ;;  %v2714_v51 = vld [vmem:[%s5849_s8 + $0x30] sm:$0xff]  ;;  %v4289_v52 = vpack.c.bf16 %v518_v43, %v517_v42  ;;  %v4340_v55 = vpack.c.bf16 %v568_v50, %v567_v49  ;;  %v525_v42 = vld [vmem:[%s4646_s29 + $0x260] sm:$0xff]  ;;  %v526_v43 = vld [vmem:[%s4646_s29 + $0x268] sm:$0xff] }
  0x54   : > { %4270 = vmatprep.subr.msk.bf16.mxu1 %vm4650_vm1, %v4268_v54  ;;  %2738 = vperm.xlu0 %4411, %v2712_v34   ;;  %v4292_v54 = vpack.c.bf16 %v536_v47, %v535_v46  ;;  %v542_v34 = vld [vmem:[%s4646_s29 + $0x2e8] sm:$0xff]  ;;  %v543_v46 = vld [vmem:[%s4646_s29 + $0x2f0] sm:$0xff]  ;;  %v544_v47 = vld [vmem:[%s4646_s29 + $0x2f8] sm:$0xff]  ;;  %v4313_v50 = vpack.c.bf16 %v526_v43, %v525_v42 }
  0x55   : > { %2743 = vperm.xlu1 %4412, %v2713_v4   ;;  %v576_v49 = vld [vmem:[%s4646_s29 + $0x3f8] sm:$0xff] }
  0x58   : > { %2748 = vperm.xlu0 %4411, %v2714_v51   ;;  %v4361_v51 = vpack.c.bf16 %v558_v45, %v557_v44 }
  0x59   : > { %2753 = vperm.xlu1 %4412, %v2715_v11  }
  0x5a   : > { %4225 = vmatpush3.bf16.xpose.msk.msra.mxu0 %vm4650_vm1, %v4223_v5  ;;  %v4295_v5 = vpack.c.bf16 %v520_v59, %v519_v58 }
  0x5b   : > { %4273 = vmatpush3.bf16.xpose.msk.msra.mxu1 %vm4650_vm1, %v4271_v6  ;;  %4276 = vmatprep.subr.msk.bf16.mxu0 %vm4650_vm1, %v4274_v8  ;;  %v3174_v6 = vld [vmem:[%s5851_s10 + $0x10] sm:$0xff]  ;;  %v4343_v8 = vpack.c.bf16 %v552_v61, %v551_v60 }
  0x5c   : > { %4324 = vmatprep.subr.msk.bf16.mxu1 %vm4650_vm1, %v4322_v9  ;;  %3178 = vperm.xlu0 %4411, %v3172_v57   ;;  %v4298_v9 = vpack.c.bf16 %v538_v63, %v537_v62  ;;  %v560_v57 = vld [vmem:[%s4646_s29 + $0x378] sm:$0xff] }
  0x5d   : > { %3183 = vperm.xlu1 %4412, %v3173_v21   ;;  %v4367_v59 = vpack.c.bf16 %v560_v57, %v559_v56  ;;  %v5122_v57 = vld [vmem:[%s5844_s3] sm:$0xff]  }
  0x60   : > { %3188 = vperm.xlu0 %4411, %v3174_v6  }
  0x61   : > { %4051 = vmatmul.mubr.msk.f32.vlgmr.msra.gmra.mrb[0].mxu0 %vm601_vm0, %v4621_v1  ;;  %3193 = vperm.xlu1 %4412, %v3175_v28  }
  0x62   : > { %4091 = vmatmul.mubr.msk.f32.vlgmr.msra.gmra.mrb[0].mxu1 %vm601_vm0, %v4621_v1  ;;  %4279 = vmatpush3.bf16.xpose.msk.msra.mxu0 %vm4650_vm1, %v4277_v18  ;;  %v540_v18 = vld [vmem:[%s4646_s29 + $0x2d8] sm:$0xff] }
  0x63   : > { %4327 = vmatpush3.bf16.xpose.msk.msra.mxu1 %vm4650_vm1, %v4325_v22  ;;  %4052 = vmatprep.mubr.msk.f32.mxu0 %vm601_vm0, %v4876_v23  ;;  %v4301_v22 = vpack.c.bf16 %v522_v14, %v521_v13 }
  0x64   : > { %4092 = vmatprep.mubr.msk.f32.mxu1 %vm601_vm0, %v4876_v23  ;;  %4282 = vmatprep.subr.msk.bf16.mxu0 %vm4650_vm1, %v4280_v24  ;;  %v4349_v24 = vpack.c.bf16 %v554_v16, %v553_v15 }
  0x65   : > { %4053 = vmatmul.mubr.msk.f32.gmra.mrb[2].mxu0 %vm601_vm0, %v4876_v23  ;;  %4330 = vmatprep.subr.msk.bf16.mxu1 %vm4650_vm1, %v4328_v25  ;;  %v4304_v25 = vpack.c.bf16 %v540_v18, %v539_v17 }
  0x66   : > { %4093 = vmatmul.mubr.msk.f32.gmra.mrb[2].mxu1 %vm601_vm0, %v4876_v23  ;;  %4054 = vmatprep.mubr.msk.f32.mxu0 %vm601_vm0, %v4891_v26 }
  0x67   : > { %4094 = vmatprep.mubr.msk.f32.mxu1 %vm601_vm0, %v4891_v26  ;;  %3476 = vperm.xlu0 %4411, %v3473_v12  }
  0x69   : > { %4055 = vmatmul.mubr.msk.f32.gmra.mrb[4].mxu0 %vm601_vm0, %v4891_v26 }
  0x6a   : > { %4095 = vmatmul.mubr.msk.f32.gmra.mrb[4].mxu1 %vm601_vm0, %v4891_v26  ;;  %4285 = vmatpush3.bf16.xpose.msk.msra.mxu0 %vm4650_vm1, %v4283_v35  ;;  %v573_v35 = vld [vmem:[%s4646_s29 + $0x3e0] sm:$0xff] }
  0x6b   : > { %4333 = vmatpush3.bf16.xpose.msk.msra.mxu1 %vm4650_vm1, %v4331_v38  ;;  %4056 = vmatprep.mubr.msk.f32.mxu0 %vm601_vm0, %v4924_v39  ;;  %v4355_v38 = vpack.c.bf16 %v556_v32, %v555_v31 }
  0x6c   : > { %4096 = vmatprep.mubr.msk.f32.mxu1 %vm601_vm0, %v4924_v39  ;;  %4288 = vmatprep.subr.msk.bf16.mxu0 %vm4650_vm1, %v4286_v40  ;;  %v4310_v40 = vpack.c.bf16 %v542_v34, %v541_v33 }
  0x6d   : > { %4057 = vmatmul.mubr.msk.f32.gmra.mrb[6].mxu0 %vm601_vm0, %v4924_v39  ;;  %4336 = vmatprep.subr.msk.bf16.mxu1 %vm4650_vm1, %v4334_v41  ;;  %v4358_v41 = vpack.c.bf16 %v574_v36, %v573_v35 }
  0x6e   : > { %4097 = vmatmul.mubr.msk.f32.gmra.mrb[6].mxu1 %vm601_vm0, %v4924_v39  ;;  %4130 = vmatprep.mubr.msk.f32.mxu0 %vm601_vm0, %v4621_v1 }
  0x6f   : > { %4170 = vmatprep.mubr.msk.f32.mxu1 %vm601_vm0, %v4621_v1 }
  0x72   : > { %4291 = vmatpush3.bf16.xpose.msk.msra.mxu0 %vm4650_vm1, %v4289_v52  ;;  %v4316_v52 = vpack.c.bf16 %v544_v47, %v543_v46 }
  0x73   : > { %4339 = vmatpush3.bf16.xpose.msk.msra.mxu1 %vm4650_vm1, %v4337_v53  ;;  %4294 = vmatprep.subr.msk.bf16.mxu0 %vm4650_vm1, %v4292_v54  ;;  %v4364_v53 = vpack.c.bf16 %v576_v49, %v575_v48  ;;  %v527_v54 = vld [vmem:[%s4646_s29 + $0x270] sm:$0xff] }
  0x74   : > { %4342 = vmatprep.subr.msk.bf16.mxu1 %vm4650_vm1, %v4340_v55  ;;  %v528_v55 = vld [vmem:[%s4646_s29 + $0x278] sm:$0xff]  ;;  %s5799_s29 = scalar_lea.hbm %s5854_s13, %s4616_s21 }
  0x75   : > { %v4319_v58 = vpack.c.bf16 %v528_v55, %v527_v54 }
  0x7a   : > { %4297 = vmatpush3.bf16.xpose.msk.msra.mxu0 %vm4650_vm1, %v4295_v5 }
  0x7b   : > { %4345 = vmatpush3.bf16.xpose.msk.msra.mxu1 %vm4650_vm1, %v4343_v8  ;;  %4300 = vmatprep.subr.msk.bf16.mxu0 %vm4650_vm1, %v4298_v9 }
  0x7c   : > { %4348 = vmatprep.subr.msk.bf16.mxu1 %vm4650_vm1, %v4346_v10 }
  0x82   : > { %4303 = vmatpush3.bf16.xpose.msk.msra.mxu0 %vm4650_vm1, %v4301_v22 }
  0x83   : > { %4351 = vmatpush3.bf16.xpose.msk.msra.mxu1 %vm4650_vm1, %v4349_v24  ;;  %4306 = vmatprep.subr.msk.bf16.mxu0 %vm4650_vm1, %v4304_v25 }
  0x84   : > { %4354 = vmatprep.subr.msk.bf16.mxu1 %vm4650_vm1, %v4352_v27 }
  0x8a   : > { %4309 = vmatpush3.bf16.xpose.msk.msra.mxu0 %vm4650_vm1, %v4307_v37 }
  0x8b   : > { %4357 = vmatpush3.bf16.xpose.msk.msra.mxu1 %vm4650_vm1, %v4355_v38  ;;  %4312 = vmatprep.subr.msk.bf16.mxu0 %vm4650_vm1, %v4310_v40 }
  0x8c   : > { %4360 = vmatprep.subr.msk.bf16.mxu1 %vm4650_vm1, %v4358_v41 }
  0x92   : > { %4315 = vmatpush3.bf16.xpose.msk.msra.mxu0 %vm4650_vm1, %v4313_v50 }
  0x93   : > { %4363 = vmatpush3.bf16.xpose.msk.msra.mxu1 %vm4650_vm1, %v4361_v51  ;;  %4318 = vmatprep.subr.msk.bf16.mxu0 %vm4650_vm1, %v4316_v52  ;;  %v5104_v8 = vpop.permute.xlu1 %593 }
  0x94   : > { %4366 = vmatprep.subr.msk.bf16.mxu1 %vm4650_vm1, %v4364_v53 }
  0x97   : > { %v5110_v32 = vpop.permute.xlu1 %598 }
  0x9a   : > { %4321 = vmatpush3.bf16.xpose.msk.msra.mxu0 %vm4650_vm1, %v4319_v58  ;;  %v5133_v58 = vld [vmem:[%s5844_s3 + $0x8] sm:$0xff]  }
  0x9b   : > { %4369 = vmatpush3.bf16.xpose.msk.msra.mxu1 %vm4650_vm1, %v4367_v59  ;;  %v5144_v59 = vld [vmem:[%s5844_s3 + $0x10] sm:$0xff]  }
  0xa1   : > { %4131 = vmatmul.mubr.msk.f32.vlgmr.msra.gmra.mrb[8].mxu0 %vm601_vm0, %v4621_v1 }
  0xa2   : > { %4171 = vmatmul.mubr.msk.f32.vlgmr.msra.gmra.mrb[8].mxu1 %vm601_vm0, %v4621_v1  ;;  %4132 = vmatprep.mubr.msk.f32.mxu0 %vm601_vm0, %v4876_v23  ;;  %v5095_v1 = vpop.permute.xlu0 %583 }
  0xa3   : > { %4172 = vmatprep.mubr.msk.f32.mxu1 %vm601_vm0, %v4876_v23 }
  0xa5   : > { %4133 = vmatmul.mubr.msk.f32.gmra.mrb[10].mxu0 %vm601_vm0, %v4876_v23 }
  0xa6   : > { %4173 = vmatmul.mubr.msk.f32.gmra.mrb[10].mxu1 %vm601_vm0, %v4876_v23  ;;  %4134 = vmatprep.mubr.msk.f32.mxu0 %vm601_vm0, %v4891_v26  ;;  %v5098_v62 = vpop.permute.xlu0 %588 }
  0xa7   : > { %4174 = vmatprep.mubr.msk.f32.mxu1 %vm601_vm0, %v4891_v26 }
  0xa9   : > { %4135 = vmatmul.mubr.msk.f32.gmra.mrb[12].mxu0 %vm601_vm0, %v4891_v26 }
  0xaa   : > { %4175 = vmatmul.mubr.msk.f32.gmra.mrb[12].mxu1 %vm601_vm0, %v4891_v26  ;;  %4136 = vmatprep.mubr.msk.f32.mxu0 %vm601_vm0, %v4924_v39 }
  0xab   : > { %4176 = vmatprep.mubr.msk.f32.mxu1 %vm601_vm0, %v4924_v39 }
  0xad   : > { %4137 = vmatmul.mubr.msk.f32.gmra.mrb[14].mxu0 %vm601_vm0, %v4924_v39 }
  0xae   : > { %4177 = vmatmul.mubr.msk.f32.gmra.mrb[14].mxu1 %vm601_vm0, %v4924_v39  ;;  %1523 = vmatprep.mubr.bf16.mxu0 %v4495_v3 }
  0xaf   : > { %1596 = vmatprep.mubr.bf16.mxu1 %v4495_v3 }
 0x134   : > { %v1064_v7 = vpop.f32.mrb[0].mxu0 }
 0x135   : > { %v1153_v23 = vpop.f32.mrb[0].mxu1  ;;  %v1066_v26 = vpop.f32.mrb[1].mxu0  ;;  %v1065_v61 = vadd.f32 %v1064_v7, %v5095_v1  ;;  %v5155_v7 = vld [vmem:[%s5844_s3 + $0x18] sm:$0xff]  }
 0x136   : > { %v1155_v60 = vpop.f32.mrb[1].mxu1  ;;  %v1154_v63 = vadd.f32 %v1153_v23, %v5095_v1  ;;  %v1067_v0 = vadd.f32 %v1066_v26, %v5095_v1 }
 0x137   : > { %v1156_v39 = vadd.f32 %v1155_v60, %v5095_v1  ;;  %v1354_v12 = vmax.f32 %v1065_v61, 0.0 }
 0x138   : > { %v1070_v2 = vpop.f32.mrb[2].mxu0  ;;  %v1356_v15 = vmax.f32 %v1154_v63, 0.0  ;;  %v1355_v16 = vmax.f32 %v1067_v0, 0.0 }
 0x139   : > { %v1071_v4 = vadd.f32 %v1070_v2, %v5098_v62  ;;  %v1159_v5 = vpop.f32.mrb[2].mxu1  ;;  %v1072_v6 = vpop.f32.mrb[3].mxu0  ;;  %v1357_v20 = vmax.f32 %v1156_v39, 0.0 }
 0x13a   : > { %v1160_v9 = vadd.f32 %v1159_v5, %v5098_v62  ;;  %v1073_v10 = vadd.f32 %v1072_v6, %v5098_v62  ;;  %v1161_v11 = vpop.f32.mrb[3].mxu1 }
 0x13b   : > { %v1362_v13 = vmax.f32 %v1071_v4, 0.0  ;;  %v1162_v14 = vadd.f32 %v1161_v11, %v5098_v62 }
 0x13c   : > { %v1364_v17 = vmax.f32 %v1160_v9, 0.0  ;;  %v1363_v18 = vmax.f32 %v1073_v10, 0.0  ;;  %v1076_v19 = vpop.f32.mrb[4].mxu0 }
 0x13d   : > { %v1394_v21 = vpack.c.bf16 %v1362_v13, %v1354_v12  ;;  %v1365_v22 = vmax.f32 %v1162_v14, 0.0  ;;  %v1165_v24 = vpop.f32.mrb[4].mxu1  ;;  %v1078_v25 = vpop.f32.mrb[5].mxu0  ;;  %v1077_v31 = vadd.f32 %v1076_v19, %v5104_v8 }
 0x13e   : > { %v1396_v27 = vpack.c.bf16 %v1364_v17, %v1356_v15  ;;  %v1395_v28 = vpack.c.bf16 %v1363_v18, %v1355_v16  ;;  %v1167_v29 = vpop.f32.mrb[5].mxu1  ;;  %v1166_v33 = vadd.f32 %v1165_v24, %v5104_v8  ;;  %v1079_v34 = vadd.f32 %v1078_v25, %v5104_v8 }
 0x13f   : > { %v1397_v30 = vpack.c.bf16 %v1365_v22, %v1357_v20  ;;  %v1168_v36 = vadd.f32 %v1167_v29, %v5104_v8  ;;  %v1370_v44 = vmax.f32 %v1077_v31, 0.0 }
 0x140   : > { %v1082_v35 = vpop.f32.mrb[6].mxu0  ;;  %1491 = vmatprep.subr.bf16.mxu0 %v1395_v28  ;;  %v1372_v47 = vmax.f32 %v1166_v33, 0.0  ;;  %v1371_v48 = vmax.f32 %v1079_v34, 0.0 }
 0x141   : > { %v1083_v37 = vadd.f32 %v1082_v35, %v5110_v32  ;;  %v1171_v38 = vpop.f32.mrb[6].mxu1  ;;  %1564 = vmatprep.subr.bf16.mxu1 %v1397_v30  ;;  %v1084_v40 = vpop.f32.mrb[7].mxu0  ;;  %1492 = vmatpush1.bf16.msra.mxu0 %v1394_v21  ;;  %v1373_v51 = vmax.f32 %v1168_v36, 0.0 }
 0x142   : > { %v1172_v41 = vadd.f32 %v1171_v38, %v5110_v32  ;;  %v1085_v42 = vadd.f32 %v1084_v40, %v5110_v32  ;;  %v1173_v43 = vpop.f32.mrb[7].mxu1  ;;  %1565 = vmatpush1.bf16.msra.mxu1 %v1396_v27 }
 0x143   : > { %v1378_v45 = vmax.f32 %v1083_v37, 0.0  ;;  %v1174_v46 = vadd.f32 %v1173_v43, %v5110_v32 }
 0x144   : > { %v1380_v49 = vmax.f32 %v1172_v41, 0.0  ;;  %v1379_v50 = vmax.f32 %v1085_v42, 0.0 }
 0x145   : > { %v1402_v52 = vpack.c.bf16 %v1378_v45, %v1370_v44  ;;  %v1381_v53 = vmax.f32 %v1174_v46, 0.0 }
 0x146   : > { %v1404_v54 = vpack.c.bf16 %v1380_v49, %v1372_v47  ;;  %v1403_v55 = vpack.c.bf16 %v1379_v50, %v1371_v48 }
 0x147   : > { %v1405_v56 = vpack.c.bf16 %v1381_v53, %v1373_v51 }
 0x148   : > { %1493 = vmatprep.subr.bf16.mxu0 %v1403_v55  ;;  %v5205_v55 = vpop.permute.xlu1 %1425 }
 0x149   : > { %1566 = vmatprep.subr.bf16.mxu1 %v1405_v56  ;;  %1494 = vmatpush1.bf16.msra.mxu0 %v1402_v52 }
 0x14a   : > { %1567 = vmatpush1.bf16.msra.mxu1 %v1404_v54 }
 0x14c   : > { %3938 = vmatmul.mubr.msk.bf16.vlgmr.msra.gmra.mrb[16].mxu0 %vm1478_vm2, %v5122_v57 }
 0x14d   : > { %3942 = vmatmul.mubr.msk.bf16.vlgmr.msra.gmra.mrb[16].mxu1 %vm1478_vm2, %v5122_v57  ;;  %1533 = vmatprep.mubr.bf16.mxu0 %v4495_v3 }
 0x14e   : > { %1606 = vmatprep.mubr.bf16.mxu1 %v4495_v3 }
 0x154   : > { %3939 = vmatmul.mubr.msk.bf16.gmra.mrb[20].mxu0 %vm1478_vm2, %v5133_v58 }
 0x155   : > { %3943 = vmatmul.mubr.msk.bf16.gmra.mrb[20].mxu1 %vm1478_vm2, %v5133_v58  ;;  %1543 = vmatprep.mubr.bf16.mxu0 %v4495_v3 }
 0x156   : > { %1616 = vmatprep.mubr.bf16.mxu1 %v4495_v3 }
 0x15c   : > { %3940 = vmatmul.mubr.msk.bf16.gmra.mrb[24].mxu0 %vm1478_vm2, %v5144_v59 }
 0x15d   : > { %3944 = vmatmul.mubr.msk.bf16.gmra.mrb[24].mxu1 %vm1478_vm2, %v5144_v59  ;;  %1553 = vmatprep.mubr.bf16.mxu0 %v4495_v3 }
 0x15e   : > { %1626 = vmatprep.mubr.bf16.mxu1 %v4495_v3 }
 0x164   : > { %3941 = vmatmul.mubr.msk.bf16.gmra.mrb[28].mxu0 %vm1478_vm2, %v5155_v7 }
 0x165   : > { %3945 = vmatmul.mubr.msk.bf16.gmra.mrb[28].mxu1 %vm1478_vm2, %v5155_v7  ;;  %1669 = vmatprep.mubr.bf16.mxu0 %v4495_v3 }
 0x166   : > { %1742 = vmatprep.mubr.bf16.mxu1 %v4495_v3 }
 0x174   : > { %v1242_v23 = vpop.f32.mrb[8].mxu0 }
 0x175   : > { %v1331_v26 = vpop.f32.mrb[8].mxu1  ;;  %v1244_v60 = vpop.f32.mrb[9].mxu0  ;;  %v1243_v63 = vadd.f32 %v1242_v23, %v5095_v1 }
 0x176   : > { %v1333_v61 = vpop.f32.mrb[9].mxu1  ;;  %v1332_v0 = vadd.f32 %v1331_v26, %v5095_v1  ;;  %v1245_v2 = vadd.f32 %v1244_v60, %v5095_v1 }
 0x177   : > { %v1334_v4 = vadd.f32 %v1333_v61, %v5095_v1  ;;  %v1358_v13 = vmax.f32 %v1243_v63, 0.0 }
 0x178   : > { %v1248_v39 = vpop.f32.mrb[10].mxu0  ;;  %v1360_v16 = vmax.f32 %v1332_v0, 0.0  ;;  %v1359_v17 = vmax.f32 %v1245_v2, 0.0 }
 0x179   : > { %v1249_v5 = vadd.f32 %v1248_v39, %v5098_v62  ;;  %v1337_v6 = vpop.f32.mrb[10].mxu1  ;;  %v1250_v9 = vpop.f32.mrb[11].mxu0  ;;  %v1361_v21 = vmax.f32 %v1334_v4, 0.0 }
 0x17a   : > { %v1338_v10 = vadd.f32 %v1337_v6, %v5098_v62  ;;  %v1251_v11 = vadd.f32 %v1250_v9, %v5098_v62  ;;  %v1339_v12 = vpop.f32.mrb[11].mxu1 }
 0x17b   : > { %v1366_v14 = vmax.f32 %v1249_v5, 0.0  ;;  %v1340_v15 = vadd.f32 %v1339_v12, %v5098_v62 }
 0x17c   : > { %v1368_v18 = vmax.f32 %v1338_v10, 0.0  ;;  %v1367_v19 = vmax.f32 %v1251_v11, 0.0  ;;  %v1254_v20 = vpop.f32.mrb[12].mxu0 }
 0x17d   : > { %v1398_v1 = vpack.c.bf16 %v1366_v14, %v1358_v13  ;;  %v1369_v22 = vmax.f32 %v1340_v15, 0.0  ;;  %v1343_v24 = vpop.f32.mrb[12].mxu1  ;;  %v1256_v25 = vpop.f32.mrb[13].mxu0  ;;  %v1255_v31 = vadd.f32 %v1254_v20, %v5104_v8 }
 0x17e   : > { %v1400_v27 = vpack.c.bf16 %v1368_v18, %v1360_v16  ;;  %v1399_v28 = vpack.c.bf16 %v1367_v19, %v1359_v17  ;;  %v1345_v29 = vpop.f32.mrb[13].mxu1  ;;  %v1344_v33 = vadd.f32 %v1343_v24, %v5104_v8  ;;  %v1257_v62 = vadd.f32 %v1256_v25, %v5104_v8  ;;  %v5217_v19 = vpop.permute.xlu1 %1435 }
 0x17f   : > { %v1401_v30 = vpack.c.bf16 %v1369_v22, %v1361_v21  ;;  %v1346_v35 = vadd.f32 %v1345_v29, %v5104_v8  ;;  %v1374_v43 = vmax.f32 %v1255_v31, 0.0 }
 0x180   : > { %v1260_v34 = vpop.f32.mrb[14].mxu0  ;;  %1637 = vmatprep.subr.bf16.mxu0 %v1399_v28  ;;  %v1376_v46 = vmax.f32 %v1344_v33, 0.0  ;;  %v1375_v47 = vmax.f32 %v1257_v62, 0.0 }
 0x181   : > { %v1261_v36 = vadd.f32 %v1260_v34, %v5110_v32  ;;  %v1349_v37 = vpop.f32.mrb[14].mxu1  ;;  %1710 = vmatprep.subr.bf16.mxu1 %v1401_v30  ;;  %v1262_v38 = vpop.f32.mrb[15].mxu0  ;;  %1638 = vmatpush1.bf16.msra.mxu0 %v1398_v1  ;;  %v1377_v49 = vmax.f32 %v1346_v35, 0.0 }
 0x182   : > { %v1350_v40 = vadd.f32 %v1349_v37, %v5110_v32  ;;  %v1263_v41 = vadd.f32 %v1262_v38, %v5110_v32  ;;  %v1351_v42 = vpop.f32.mrb[15].mxu1  ;;  %1711 = vmatpush1.bf16.msra.mxu1 %v1400_v27 }
 0x183   : > { %v1382_v44 = vmax.f32 %v1261_v36, 0.0  ;;  %v1352_v45 = vadd.f32 %v1351_v42, %v5110_v32  ;;  %v5203_v32 = vpop.permute.xlu0 %1420 }
 0x184   : > { %v1384_v48 = vmax.f32 %v1350_v40, 0.0  ;;  %v1383_v8 = vmax.f32 %v1263_v41, 0.0 }
 0x185   : > { %v1406_v50 = vpack.c.bf16 %v1382_v44, %v1374_v43  ;;  %v1385_v51 = vmax.f32 %v1352_v45, 0.0 }
 0x186   : > { %v1408_v52 = vpack.c.bf16 %v1384_v48, %v1376_v46  ;;  %v1407_v53 = vpack.c.bf16 %v1383_v8, %v1375_v47 }
 0x187   : > { %v1409_v54 = vpack.c.bf16 %v1385_v51, %v1377_v49  ;;  %v5215_v15 = vpop.permute.xlu0 %1430 }
 0x188   : > { %1639 = vmatprep.subr.bf16.mxu0 %v1407_v53 }
 0x189   : > { %1712 = vmatprep.subr.bf16.mxu1 %v1409_v54  ;;  %1640 = vmatpush1.bf16.msra.mxu0 %v1406_v50  ;;  %v5229_v50 = vpop.permute.xlu1 %1445 }
 0x18a   : > { %1713 = vmatpush1.bf16.msra.mxu1 %v1408_v52 }
 0x18b   : > { %v5227_v47 = vpop.permute.xlu0 %1440 }
 0x18c   : > { %3946 = vmatmul.mubr.msk.bf16.vlgmr.msra.gmra.mrb[32].mxu0 %vm1478_vm2, %v5122_v57 }
 0x18d   : > { %3950 = vmatmul.mubr.msk.bf16.vlgmr.msra.gmra.mrb[32].mxu1 %vm1478_vm2, %v5122_v57  ;;  %1679 = vmatprep.mubr.bf16.mxu0 %v4495_v3 }
 0x18e   : > { %1752 = vmatprep.mubr.bf16.mxu1 %v4495_v3 }
 0x194   : > { %3947 = vmatmul.mubr.msk.bf16.gmra.mrb[36].mxu0 %vm1478_vm2, %v5133_v58 }
 0x195   : > { %3951 = vmatmul.mubr.msk.bf16.gmra.mrb[36].mxu1 %vm1478_vm2, %v5133_v58  ;;  %1689 = vmatprep.mubr.bf16.mxu0 %v4495_v3 }
 0x196   : > { %1762 = vmatprep.mubr.bf16.mxu1 %v4495_v3 }
 0x19c   : > { %3948 = vmatmul.mubr.msk.bf16.gmra.mrb[40].mxu0 %vm1478_vm2, %v5144_v59 }
 0x19d   : > { %3952 = vmatmul.mubr.msk.bf16.gmra.mrb[40].mxu1 %vm1478_vm2, %v5144_v59  ;;  %1699 = vmatprep.mubr.bf16.mxu0 %v4495_v3 }
 0x19e   : > { %1772 = vmatprep.mubr.bf16.mxu1 %v4495_v3 }
 0x1a4   : > { %3949 = vmatmul.mubr.msk.bf16.gmra.mrb[44].mxu0 %vm1478_vm2, %v5155_v7 }
 0x1a5   : > { %3953 = vmatmul.mubr.msk.bf16.gmra.mrb[44].mxu1 %vm1478_vm2, %v5155_v7  ;;  %2088 = vmatprep.mubr.bf16.mxu0 %v4495_v3 }
 0x1a6   : > { %2201 = vmatprep.mubr.bf16.mxu1 %v4495_v3 }
 0x21f   : > { %v1525_v56 = vpop.f32.mrb[16].mxu0 }
 0x220   : > { %v1526_v57 = vadd.f32 %v1525_v56, %v5203_v32  ;;  %v1598_v58 = vpop.f32.mrb[16].mxu1  ;;  %v1527_v59 = vpop.f32.mrb[17].mxu0 }
 0x221   : > { %v1599_v23 = vadd.f32 %v1598_v58, %v5203_v32  ;;  %v1528_v26 = vadd.f32 %v1527_v59, %v5203_v32  ;;  %v1600_v60 = vpop.f32.mrb[17].mxu1  ;;  %v1529_v61 = vpop.f32.mrb[18].mxu0 }
 0x222   : > { %v1601_v7 = vadd.f32 %v1600_v60, %v5203_v32  ;;  %v1530_v63 = vadd.f32 %v1529_v61, %v5205_v55  ;;  %v1602_v0 = vpop.f32.mrb[18].mxu1  ;;  %v1531_v2 = vpop.f32.mrb[19].mxu0  ;;  %v1783_v6 = vmax.f32 %v1526_v57, 0.0 }
 0x223   : > { %v1603_v39 = vadd.f32 %v1602_v0, %v5205_v55  ;;  %v1532_v4 = vadd.f32 %v1531_v2, %v5205_v55  ;;  %v1604_v5 = vpop.f32.mrb[19].mxu1  ;;  %v1785_v11 = vmax.f32 %v1599_v23, 0.0  ;;  %v1784_v12 = vmax.f32 %v1528_v26, 0.0 }
 0x224   : > { %v1791_v9 = vmax.f32 %v1530_v63, 0.0  ;;  %v1605_v10 = vadd.f32 %v1604_v5, %v5205_v55  ;;  %v1786_v16 = vmax.f32 %v1601_v7, 0.0 }
 0x225   : > { %v1793_v13 = vmax.f32 %v1603_v39, 0.0  ;;  %v1792_v14 = vmax.f32 %v1532_v4, 0.0 }
 0x226   : > { %v1863_v17 = vpack.c.bf16 %v1791_v9, %v1783_v6  ;;  %v1794_v18 = vmax.f32 %v1605_v10, 0.0 }
 0x227   : > { %v1865_v20 = vpack.c.bf16 %v1793_v13, %v1785_v11  ;;  %v1864_v21 = vpack.c.bf16 %v1792_v14, %v1784_v12  ;;  %v1535_v1 = vpop.f32.mrb[20].mxu0  ;;  %v5239_v14 = vpop.permute.xlu0 %1450 }
 0x228   : > { %v1866_v22 = vpack.c.bf16 %v1794_v18, %v1786_v16  ;;  %v1536_v24 = vadd.f32 %v1535_v1, %v5215_v15  ;;  %v1608_v25 = vpop.f32.mrb[20].mxu1  ;;  %v1537_v27 = vpop.f32.mrb[21].mxu0 }
 0x229   : > { %v1609_v28 = vadd.f32 %v1608_v25, %v5215_v15  ;;  %v1538_v29 = vadd.f32 %v1537_v27, %v5215_v15  ;;  %v1610_v30 = vpop.f32.mrb[21].mxu1  ;;  %v1539_v31 = vpop.f32.mrb[22].mxu0  ;;  %2056 = vmatprep.subr.bf16.mxu0 %v1864_v21 }
 0x22a   : > { %v1611_v33 = vadd.f32 %v1610_v30, %v5215_v15  ;;  %v1540_v62 = vadd.f32 %v1539_v31, %v5217_v19  ;;  %v1612_v34 = vpop.f32.mrb[22].mxu1  ;;  %2169 = vmatprep.subr.bf16.mxu1 %v1866_v22  ;;  %v1541_v35 = vpop.f32.mrb[23].mxu0  ;;  %2057 = vmatpush1.bf16.msra.mxu0 %v1863_v17  ;;  %v1799_v40 = vmax.f32 %v1536_v24, 0.0 }
 0x22b   : > { %v1613_v36 = vadd.f32 %v1612_v34, %v5217_v19  ;;  %v1542_v37 = vadd.f32 %v1541_v35, %v5217_v19  ;;  %v1614_v38 = vpop.f32.mrb[23].mxu1  ;;  %2170 = vmatpush1.bf16.msra.mxu1 %v1865_v20  ;;  %v1801_v43 = vmax.f32 %v1609_v28, 0.0  ;;  %v1800_v44 = vmax.f32 %v1538_v29, 0.0  ;;  %v5241_v20 = vpop.permute.xlu1 %1455 }
 0x22c   : > { %v1807_v41 = vmax.f32 %v1540_v62, 0.0  ;;  %v1615_v42 = vadd.f32 %v1614_v38, %v5217_v19  ;;  %v1802_v48 = vmax.f32 %v1611_v33, 0.0 }
 0x22d   : > { %v1809_v45 = vmax.f32 %v1613_v36, 0.0  ;;  %v1808_v46 = vmax.f32 %v1542_v37, 0.0 }
 0x22e   : > { %v1871_v8 = vpack.c.bf16 %v1807_v41, %v1799_v40  ;;  %v1810_v49 = vmax.f32 %v1615_v42, 0.0 }
 0x22f   : > { %v1873_v51 = vpack.c.bf16 %v1809_v45, %v1801_v43  ;;  %v1872_v52 = vpack.c.bf16 %v1808_v46, %v1800_v44  ;;  %v1545_v53 = vpop.f32.mrb[24].mxu0 }
 0x230   : > { %v1874_v54 = vpack.c.bf16 %v1810_v49, %v1802_v48  ;;  %v1546_v56 = vadd.f32 %v1545_v53, %v5227_v47  ;;  %v1618_v57 = vpop.f32.mrb[24].mxu1  ;;  %v1547_v58 = vpop.f32.mrb[25].mxu0 }
 0x231   : > { %v1619_v59 = vadd.f32 %v1618_v57, %v5227_v47  ;;  %v1548_v23 = vadd.f32 %v1547_v58, %v5227_v47  ;;  %v1620_v26 = vpop.f32.mrb[25].mxu1  ;;  %v1549_v60 = vpop.f32.mrb[26].mxu0  ;;  %2058 = vmatprep.subr.bf16.mxu0 %v1872_v52  ;;  %v5265_v57 = vld [vmem:[%s5846_s5 + $0x8] sm:$0xff]   ;;  %v5276_v58 = vld [vmem:[%s5846_s5 + $0x10] sm:$0xff]  }
 0x232   : > { %v1621_v61 = vadd.f32 %v1620_v26, %v5227_v47  ;;  %v1550_v7 = vadd.f32 %v1549_v60, %v5229_v50  ;;  %v1622_v63 = vpop.f32.mrb[26].mxu1  ;;  %2171 = vmatprep.subr.bf16.mxu1 %v1874_v54  ;;  %v1551_v0 = vpop.f32.mrb[27].mxu0  ;;  %2059 = vmatpush1.bf16.msra.mxu0 %v1871_v8  ;;  %v1815_v5 = vmax.f32 %v1546_v56, 0.0  ;;  %v5254_v56 = vld [vmem:[%s5846_s5] sm:$0xff]  }
 0x233   : > { %v1623_v2 = vadd.f32 %v1622_v63, %v5229_v50  ;;  %v1552_v39 = vadd.f32 %v1551_v0, %v5229_v50  ;;  %v1624_v4 = vpop.f32.mrb[27].mxu1  ;;  %2172 = vmatpush1.bf16.msra.mxu1 %v1873_v51  ;;  %v1817_v10 = vmax.f32 %v1619_v59, 0.0  ;;  %v1816_v11 = vmax.f32 %v1548_v23, 0.0  ;;  %v5287_v59 = vld [vmem:[%s5846_s5 + $0x18] sm:$0xff]  }
 0x234   : > { %v1823_v6 = vmax.f32 %v1550_v7, 0.0  ;;  %v1625_v9 = vadd.f32 %v1624_v4, %v5229_v50  ;;  %v1818_v16 = vmax.f32 %v1621_v61, 0.0 }
 0x235   : > { %v1825_v12 = vmax.f32 %v1623_v2, 0.0  ;;  %v1824_v13 = vmax.f32 %v1552_v39, 0.0  ;;  %v5301_v39 = vld [vmem:[%s5846_s5 + $0x20] sm:$0xff]  }
 0x236   : > { %v1879_v17 = vpack.c.bf16 %v1823_v6, %v1815_v5  ;;  %v1826_v18 = vmax.f32 %v1625_v9, 0.0 }
 0x237   : > { %v1881_v21 = vpack.c.bf16 %v1825_v12, %v1817_v10  ;;  %v1880_v1 = vpack.c.bf16 %v1824_v13, %v1816_v11  ;;  %v1555_v22 = vpop.f32.mrb[28].mxu0 }
 0x238   : > { %v1882_v24 = vpack.c.bf16 %v1826_v18, %v1818_v16  ;;  %v1556_v25 = vadd.f32 %v1555_v22, %v5239_v14  ;;  %v1628_v27 = vpop.f32.mrb[28].mxu1  ;;  %v1557_v28 = vpop.f32.mrb[29].mxu0 }
 0x239   : > { %v1629_v29 = vadd.f32 %v1628_v27, %v5239_v14  ;;  %v1558_v30 = vadd.f32 %v1557_v28, %v5239_v14  ;;  %v1630_v31 = vpop.f32.mrb[29].mxu1  ;;  %v1559_v33 = vpop.f32.mrb[30].mxu0  ;;  %2060 = vmatprep.subr.bf16.mxu0 %v1880_v1 }
 0x23a   : > { %v1631_v62 = vadd.f32 %v1630_v31, %v5239_v14  ;;  %v1560_v34 = vadd.f32 %v1559_v33, %v5241_v20  ;;  %v1632_v35 = vpop.f32.mrb[30].mxu1  ;;  %2173 = vmatprep.subr.bf16.mxu1 %v1882_v24  ;;  %v1561_v36 = vpop.f32.mrb[31].mxu0  ;;  %2061 = vmatpush1.bf16.msra.mxu0 %v1879_v17  ;;  %v1831_v41 = vmax.f32 %v1556_v25, 0.0 }
 0x23b   : > { %v1633_v37 = vadd.f32 %v1632_v35, %v5241_v20  ;;  %v1562_v38 = vadd.f32 %v1561_v36, %v5241_v20  ;;  %v1634_v40 = vpop.f32.mrb[31].mxu1  ;;  %2174 = vmatpush1.bf16.msra.mxu1 %v1881_v21  ;;  %v1833_v44 = vmax.f32 %v1629_v29, 0.0  ;;  %v1832_v45 = vmax.f32 %v1558_v30, 0.0 }
 0x23c   : > { %v1839_v42 = vmax.f32 %v1560_v34, 0.0  ;;  %v1635_v43 = vadd.f32 %v1634_v40, %v5241_v20  ;;  %v1834_v8 = vmax.f32 %v1631_v62, 0.0 }
 0x23d   : > { %v1841_v46 = vmax.f32 %v1633_v37, 0.0  ;;  %v1840_v48 = vmax.f32 %v1562_v38, 0.0  ;;  %v5320_v37 = vld [vmem:[%s5846_s5 + $0x28] sm:$0xff]  }
 0x23e   : > { %v1887_v49 = vpack.c.bf16 %v1839_v42, %v1831_v41  ;;  %v1842_v51 = vmax.f32 %v1635_v43, 0.0 }
 0x23f   : > { %v1889_v52 = vpack.c.bf16 %v1841_v46, %v1833_v44  ;;  %v1888_v53 = vpack.c.bf16 %v1840_v48, %v1832_v45 }
 0x240   : > { %v1890_v54 = vpack.c.bf16 %v1842_v51, %v1834_v8 }
 0x241   : > { %2062 = vmatprep.subr.bf16.mxu0 %v1888_v53 }
 0x242   : > { %2175 = vmatprep.subr.bf16.mxu1 %v1890_v54  ;;  %2063 = vmatpush1.bf16.msra.mxu0 %v1887_v49 }
 0x243   : > { %2176 = vmatpush1.bf16.msra.mxu1 %v1889_v52 }
 0x245   : > { %3962 = vmatmul.mubr.msk.bf16.vlgmr.msra.gmra.mrb[48].mxu0 %vm2031_vm3, %v5254_v56 }
 0x246   : > { %3970 = vmatmul.mubr.msk.bf16.vlgmr.msra.gmra.mrb[48].mxu1 %vm2031_vm3, %v5254_v56  ;;  %2098 = vmatprep.mubr.bf16.mxu0 %v4495_v3 }
 0x247   : > { %2211 = vmatprep.mubr.bf16.mxu1 %v4495_v3 }
 0x24d   : > { %3963 = vmatmul.mubr.msk.bf16.gmra.mrb[52].mxu0 %vm2031_vm3, %v5265_v57 }
 0x24e   : > { %3971 = vmatmul.mubr.msk.bf16.gmra.mrb[52].mxu1 %vm2031_vm3, %v5265_v57  ;;  %2108 = vmatprep.mubr.bf16.mxu0 %v4495_v3 }
 0x24f   : > { %2221 = vmatprep.mubr.bf16.mxu1 %v4495_v3 }
 0x255   : > { %3964 = vmatmul.mubr.msk.bf16.gmra.mrb[56].mxu0 %vm2031_vm3, %v5276_v58 }
 0x256   : > { %3972 = vmatmul.mubr.msk.bf16.gmra.mrb[56].mxu1 %vm2031_vm3, %v5276_v58  ;;  %2118 = vmatprep.mubr.bf16.mxu0 %v4495_v3 }
 0x257   : > { %2231 = vmatprep.mubr.bf16.mxu1 %v4495_v3 }
 0x25d   : > { %3965 = vmatmul.mubr.msk.bf16.gmra.mrb[60].mxu0 %vm2031_vm3, %v5287_v59 }
 0x25e   : > { %3973 = vmatmul.mubr.msk.bf16.gmra.mrb[60].mxu1 %vm2031_vm3, %v5287_v59  ;;  %2128 = vmatprep.mubr.bf16.mxu0 %v4495_v3 }
 0x25f   : > { %v1671_v23 = vpop.f32.mrb[32].mxu0  ;;  %2241 = vmatprep.mubr.bf16.mxu1 %v4495_v3 }
 0x260   : > { %v1672_v26 = vadd.f32 %v1671_v23, %v5203_v32  ;;  %v1744_v60 = vpop.f32.mrb[32].mxu1  ;;  %v1673_v61 = vpop.f32.mrb[33].mxu0 }
 0x261   : > { %v1745_v7 = vadd.f32 %v1744_v60, %v5203_v32  ;;  %v1674_v63 = vadd.f32 %v1673_v61, %v5203_v32  ;;  %v1746_v0 = vpop.f32.mrb[33].mxu1  ;;  %v1675_v2 = vpop.f32.mrb[34].mxu0 }
 0x262   : > { %v1747_v4 = vadd.f32 %v1746_v0, %v5203_v32  ;;  %v1676_v5 = vadd.f32 %v1675_v2, %v5205_v55  ;;  %v1748_v6 = vpop.f32.mrb[34].mxu1  ;;  %v1677_v9 = vpop.f32.mrb[35].mxu0  ;;  %v1787_v13 = vmax.f32 %v1672_v26, 0.0 }
 0x263   : > { %v1749_v10 = vadd.f32 %v1748_v6, %v5205_v55  ;;  %v1678_v11 = vadd.f32 %v1677_v9, %v5205_v55  ;;  %v1750_v12 = vpop.f32.mrb[35].mxu1  ;;  %v1789_v18 = vmax.f32 %v1745_v7, 0.0  ;;  %v1788_v21 = vmax.f32 %v1674_v63, 0.0  ;;  %v5339_v9 = vld [vmem:[%s5846_s5 + $0x30] sm:$0xff]  }
 0x264   : > { %v1795_v16 = vmax.f32 %v1676_v5, 0.0  ;;  %v1751_v17 = vadd.f32 %v1750_v12, %v5205_v55  ;;  %v1790_v32 = vmax.f32 %v1747_v4, 0.0 }
 0x265   : > { %v1797_v1 = vmax.f32 %v1749_v10, 0.0  ;;  %v1796_v22 = vmax.f32 %v1678_v11, 0.0  ;;  %3966 = vmatmul.mubr.msk.bf16.gmra.mrb[64].mxu0 %vm2031_vm3, %v5301_v39 }
 0x266   : > { %v1867_v24 = vpack.c.bf16 %v1795_v16, %v1787_v13  ;;  %v1798_v25 = vmax.f32 %v1751_v17, 0.0  ;;  %3974 = vmatmul.mubr.msk.bf16.gmra.mrb[64].mxu1 %vm2031_vm3, %v5301_v39  ;;  %2138 = vmatprep.mubr.bf16.mxu0 %v4495_v3 }
 0x267   : > { %v1869_v27 = vpack.c.bf16 %v1797_v1, %v1789_v18  ;;  %v1868_v28 = vpack.c.bf16 %v1796_v22, %v1788_v21  ;;  %v1681_v29 = vpop.f32.mrb[36].mxu0  ;;  %2251 = vmatprep.mubr.bf16.mxu1 %v4495_v3 }
 0x268   : > { %v1870_v55 = vpack.c.bf16 %v1798_v25, %v1790_v32  ;;  %v1682_v30 = vadd.f32 %v1681_v29, %v5215_v15  ;;  %v1754_v31 = vpop.f32.mrb[36].mxu1  ;;  %v1683_v33 = vpop.f32.mrb[37].mxu0 }
 0x269   : > { %v1755_v62 = vadd.f32 %v1754_v31, %v5215_v15  ;;  %v1684_v34 = vadd.f32 %v1683_v33, %v5215_v15  ;;  %v1756_v35 = vpop.f32.mrb[37].mxu1  ;;  %v1685_v36 = vpop.f32.mrb[38].mxu0  ;;  %2282 = vmatprep.subr.bf16.mxu0 %v1868_v28 }
 0x26a   : > { %v1757_v38 = vadd.f32 %v1756_v35, %v5215_v15  ;;  %v1686_v40 = vadd.f32 %v1685_v36, %v5217_v19  ;;  %v1758_v41 = vpop.f32.mrb[38].mxu1  ;;  %2395 = vmatprep.subr.bf16.mxu1 %v1870_v55  ;;  %v1687_v42 = vpop.f32.mrb[39].mxu0  ;;  %2283 = vmatpush1.bf16.msra.mxu0 %v1867_v24  ;;  %v1803_v46 = vmax.f32 %v1682_v30, 0.0 }
 0x26b   : > { %v1759_v43 = vadd.f32 %v1758_v41, %v5217_v19  ;;  %v1688_v44 = vadd.f32 %v1687_v42, %v5217_v19  ;;  %v1760_v45 = vpop.f32.mrb[39].mxu1  ;;  %2396 = vmatpush1.bf16.msra.mxu1 %v1869_v27  ;;  %v1805_v49 = vmax.f32 %v1755_v62, 0.0  ;;  %v1804_v51 = vmax.f32 %v1684_v34, 0.0  ;;  %v4424_v41 = vld [vmem:[%s5846_s5 + $0x38] sm:$0xff]  }
 0x26c   : > { %v1811_v48 = vmax.f32 %v1686_v40, 0.0  ;;  %v1761_v8 = vadd.f32 %v1760_v45, %v5217_v19  ;;  %v1806_v53 = vmax.f32 %v1757_v38, 0.0 }
 0x26d   : > { %v1813_v52 = vmax.f32 %v1759_v43, 0.0  ;;  %v1812_v15 = vmax.f32 %v1688_v44, 0.0  ;;  %3967 = vmatmul.mubr.msk.bf16.gmra.mrb[68].mxu0 %vm2031_vm3, %v5320_v37 }
 0x26e   : > { %v1875_v54 = vpack.c.bf16 %v1811_v48, %v1803_v46  ;;  %v1814_v23 = vmax.f32 %v1761_v8, 0.0  ;;  %3975 = vmatmul.mubr.msk.bf16.gmra.mrb[68].mxu1 %vm2031_vm3, %v5320_v37  ;;  %2148 = vmatprep.mubr.bf16.mxu0 %v4495_v3 }
 0x26f   : > { %v1877_v26 = vpack.c.bf16 %v1813_v52, %v1805_v49  ;;  %v1876_v60 = vpack.c.bf16 %v1812_v15, %v1804_v51  ;;  %v1691_v61 = vpop.f32.mrb[40].mxu0  ;;  %2261 = vmatprep.mubr.bf16.mxu1 %v4495_v3 }
 0x270   : > { %v1878_v19 = vpack.c.bf16 %v1814_v23, %v1806_v53  ;;  %v1692_v7 = vadd.f32 %v1691_v61, %v5227_v47  ;;  %v1764_v63 = vpop.f32.mrb[40].mxu1  ;;  %v1693_v0 = vpop.f32.mrb[41].mxu0 }
 0x271   : > { %v1765_v2 = vadd.f32 %v1764_v63, %v5227_v47  ;;  %v1694_v4 = vadd.f32 %v1693_v0, %v5227_v47  ;;  %v1766_v5 = vpop.f32.mrb[41].mxu1  ;;  %v1695_v6 = vpop.f32.mrb[42].mxu0  ;;  %2284 = vmatprep.subr.bf16.mxu0 %v1876_v60 }
 0x272   : > { %v1767_v10 = vadd.f32 %v1766_v5, %v5227_v47  ;;  %v1696_v11 = vadd.f32 %v1695_v6, %v5229_v50  ;;  %v1768_v12 = vpop.f32.mrb[42].mxu1  ;;  %2397 = vmatprep.subr.bf16.mxu1 %v1878_v19  ;;  %v1697_v13 = vpop.f32.mrb[43].mxu0  ;;  %2285 = vmatpush1.bf16.msra.mxu0 %v1875_v54  ;;  %v1819_v21 = vmax.f32 %v1692_v7, 0.0 }
 0x273   : > { %v1769_v16 = vadd.f32 %v1768_v12, %v5229_v50  ;;  %v1698_v17 = vadd.f32 %v1697_v13, %v5229_v50  ;;  %v1770_v18 = vpop.f32.mrb[43].mxu1  ;;  %2398 = vmatpush1.bf16.msra.mxu1 %v1877_v26  ;;  %v1821_v32 = vmax.f32 %v1765_v2, 0.0  ;;  %v1820_v24 = vmax.f32 %v1694_v4, 0.0 }
 0x274   : > { %v1827_v1 = vmax.f32 %v1696_v11, 0.0  ;;  %v1771_v22 = vadd.f32 %v1770_v18, %v5229_v50  ;;  %v1822_v27 = vmax.f32 %v1767_v10, 0.0 }
 0x275   : > { %v1829_v25 = vmax.f32 %v1769_v16, 0.0  ;;  %v1828_v47 = vmax.f32 %v1698_v17, 0.0  ;;  %3968 = vmatmul.mubr.msk.bf16.gmra.mrb[72].mxu0 %vm2031_vm3, %v5339_v9 }
 0x276   : > { %v1883_v28 = vpack.c.bf16 %v1827_v1, %v1819_v21  ;;  %v1830_v29 = vmax.f32 %v1771_v22, 0.0  ;;  %3976 = vmatmul.mubr.msk.bf16.gmra.mrb[72].mxu1 %vm2031_vm3, %v5339_v9  ;;  %2158 = vmatprep.mubr.bf16.mxu0 %v4495_v3 }
 0x277   : > { %v1885_v55 = vpack.c.bf16 %v1829_v25, %v1821_v32  ;;  %v1884_v30 = vpack.c.bf16 %v1828_v47, %v1820_v24  ;;  %v1701_v31 = vpop.f32.mrb[44].mxu0  ;;  %2271 = vmatprep.mubr.bf16.mxu1 %v4495_v3 }
 0x278   : > { %v1886_v50 = vpack.c.bf16 %v1830_v29, %v1822_v27  ;;  %v1702_v33 = vadd.f32 %v1701_v31, %v5239_v14  ;;  %v1774_v62 = vpop.f32.mrb[44].mxu1  ;;  %v1703_v34 = vpop.f32.mrb[45].mxu0 }
 0x279   : > { %v1775_v35 = vadd.f32 %v1774_v62, %v5239_v14  ;;  %v1704_v36 = vadd.f32 %v1703_v34, %v5239_v14  ;;  %v1776_v38 = vpop.f32.mrb[45].mxu1  ;;  %v1705_v40 = vpop.f32.mrb[46].mxu0  ;;  %2286 = vmatprep.subr.bf16.mxu0 %v1884_v30 }
 0x27a   : > { %v1777_v42 = vadd.f32 %v1776_v38, %v5239_v14  ;;  %v1706_v43 = vadd.f32 %v1705_v40, %v5241_v20  ;;  %v1778_v44 = vpop.f32.mrb[46].mxu1  ;;  %2399 = vmatprep.subr.bf16.mxu1 %v1886_v50  ;;  %v1707_v45 = vpop.f32.mrb[47].mxu0  ;;  %2287 = vmatpush1.bf16.msra.mxu0 %v1883_v28  ;;  %v1835_v49 = vmax.f32 %v1702_v33, 0.0 }
 0x27b   : > { %v1779_v46 = vadd.f32 %v1778_v44, %v5241_v20  ;;  %v1708_v48 = vadd.f32 %v1707_v45, %v5241_v20  ;;  %v1780_v8 = vpop.f32.mrb[47].mxu1  ;;  %2400 = vmatpush1.bf16.msra.mxu1 %v1885_v55  ;;  %v1837_v15 = vmax.f32 %v1775_v35, 0.0  ;;  %v1836_v53 = vmax.f32 %v1704_v36, 0.0 }
 0x27c   : > { %v1843_v51 = vmax.f32 %v1706_v43, 0.0  ;;  %v1781_v52 = vadd.f32 %v1780_v8, %v5241_v20  ;;  %v1838_v23 = vmax.f32 %v1777_v42, 0.0  ;;  %v5413_v20 = vpop.permute.xlu0 %1913 }
 0x27d   : > { %v1845_v54 = vmax.f32 %v1779_v46, 0.0  ;;  %v1844_v14 = vmax.f32 %v1708_v48, 0.0  ;;  %3969 = vmatmul.mubr.msk.bf16.gmra.mrb[76].mxu0 %vm2031_vm3, %v4424_v41 }
 0x27e   : > { %v1891_v26 = vpack.c.bf16 %v1843_v51, %v1835_v49  ;;  %v1846_v60 = vmax.f32 %v1781_v52, 0.0  ;;  %3977 = vmatmul.mubr.msk.bf16.gmra.mrb[76].mxu1 %vm2031_vm3, %v4424_v41  ;;  %2314 = vmatprep.mubr.bf16.mxu0 %v4495_v3 }
 0x27f   : > { %v1893_v61 = vpack.c.bf16 %v1845_v54, %v1837_v15  ;;  %v1892_v19 = vpack.c.bf16 %v1844_v14, %v1836_v53  ;;  %2427 = vmatprep.mubr.bf16.mxu1 %v4495_v3 }
 0x280   : > { %v1894_v7 = vpack.c.bf16 %v1846_v60, %v1838_v23  ;;  %v5425_v32 = vpop.permute.xlu0 %1923 }
 0x281   : > { %2288 = vmatprep.subr.bf16.mxu0 %v1892_v19 }
 0x282   : > { %2401 = vmatprep.subr.bf16.mxu1 %v1894_v7  ;;  %2289 = vmatpush1.bf16.msra.mxu0 %v1891_v26 }
 0x283   : > { %2402 = vmatpush1.bf16.msra.mxu1 %v1893_v61 }
 0x284   : > { %v5437_v53 = vpop.permute.xlu0 %1933 }
 0x285   : > { %3978 = vmatmul.mubr.msk.bf16.vlgmr.msra.gmra.mrb[80].mxu0 %vm2031_vm3, %v5254_v56 }
 0x286   : > { %3986 = vmatmul.mubr.msk.bf16.vlgmr.msra.gmra.mrb[80].mxu1 %vm2031_vm3, %v5254_v56  ;;  %2324 = vmatprep.mubr.bf16.mxu0 %v4495_v3  ;;  %v5415_v56 = vpop.permute.xlu1 %1918 }
 0x287   : > { %2437 = vmatprep.mubr.bf16.mxu1 %v4495_v3 }
 0x28a   : > { %v5427_v27 = vpop.permute.xlu1 %1928 }
 0x28d   : > { %3979 = vmatmul.mubr.msk.bf16.gmra.mrb[84].mxu0 %vm2031_vm3, %v5265_v57 }
 0x28e   : > { %3987 = vmatmul.mubr.msk.bf16.gmra.mrb[84].mxu1 %vm2031_vm3, %v5265_v57  ;;  %2334 = vmatprep.mubr.bf16.mxu0 %v4495_v3  ;;  %v5439_v26 = vpop.permute.xlu1 %1938 }
 0x28f   : > { %2447 = vmatprep.mubr.bf16.mxu1 %v4495_v3 }
 0x295   : > { %3980 = vmatmul.mubr.msk.bf16.gmra.mrb[88].mxu0 %vm2031_vm3, %v5276_v58 }
 0x296   : > { %3988 = vmatmul.mubr.msk.bf16.gmra.mrb[88].mxu1 %vm2031_vm3, %v5276_v58  ;;  %2344 = vmatprep.mubr.bf16.mxu0 %v4495_v3 }
 0x297   : > { %2457 = vmatprep.mubr.bf16.mxu1 %v4495_v3 }
 0x29d   : > { %3981 = vmatmul.mubr.msk.bf16.gmra.mrb[92].mxu0 %vm2031_vm3, %v5287_v59 }
 0x29e   : > { %3989 = vmatmul.mubr.msk.bf16.gmra.mrb[92].mxu1 %vm2031_vm3, %v5287_v59  ;;  %2354 = vmatprep.mubr.bf16.mxu0 %v4495_v3 }
 0x29f   : > { %2467 = vmatprep.mubr.bf16.mxu1 %v4495_v3 }
 0x2a5   : > { %3982 = vmatmul.mubr.msk.bf16.gmra.mrb[96].mxu0 %vm2031_vm3, %v5301_v39 }
 0x2a6   : > { %3990 = vmatmul.mubr.msk.bf16.gmra.mrb[96].mxu1 %vm2031_vm3, %v5301_v39  ;;  %2364 = vmatprep.mubr.bf16.mxu0 %v4495_v3 }
 0x2a7   : > { %2477 = vmatprep.mubr.bf16.mxu1 %v4495_v3 }
 0x2ad   : > { %3983 = vmatmul.mubr.msk.bf16.gmra.mrb[100].mxu0 %vm2031_vm3, %v5320_v37 }
 0x2ae   : > { %3991 = vmatmul.mubr.msk.bf16.gmra.mrb[100].mxu1 %vm2031_vm3, %v5320_v37  ;;  %2374 = vmatprep.mubr.bf16.mxu0 %v4495_v3 }
 0x2af   : > { %2487 = vmatprep.mubr.bf16.mxu1 %v4495_v3 }
 0x2b5   : > { %3984 = vmatmul.mubr.msk.bf16.gmra.mrb[104].mxu0 %vm2031_vm3, %v5339_v9 }
 0x2b6   : > { %3992 = vmatmul.mubr.msk.bf16.gmra.mrb[104].mxu1 %vm2031_vm3, %v5339_v9  ;;  %2384 = vmatprep.mubr.bf16.mxu0 %v4495_v3 }
 0x2b7   : > { %2497 = vmatprep.mubr.bf16.mxu1 %v4495_v3 }
 0x2bd   : > { %3985 = vmatmul.mubr.msk.bf16.gmra.mrb[108].mxu0 %vm2031_vm3, %v4424_v41 }
 0x2be   : > { %3993 = vmatmul.mubr.msk.bf16.gmra.mrb[108].mxu1 %vm2031_vm3, %v4424_v41  ;;  %2812 = vmatprep.mubr.bf16.mxu0 %v4495_v3 }
 0x2bf   : > { %2885 = vmatprep.mubr.bf16.mxu1 %v4495_v3 }
 0x318   : > { %v2090_v57 = vpop.f32.mrb[48].mxu0 }
 0x319   : > { %v2091_v58 = vadd.f32 %v2090_v57, %v5413_v20  ;;  %v2203_v59 = vpop.f32.mrb[48].mxu1  ;;  %v2092_v39 = vpop.f32.mrb[49].mxu0 }
 0x31a   : > { %v2204_v37 = vadd.f32 %v2203_v59, %v5413_v20  ;;  %v2093_v63 = vadd.f32 %v2092_v39, %v5413_v20  ;;  %v2205_v0 = vpop.f32.mrb[49].mxu1  ;;  %v2094_v2 = vpop.f32.mrb[50].mxu0 }
 0x31b   : > { %v2206_v4 = vadd.f32 %v2205_v0, %v5413_v20  ;;  %v2095_v5 = vadd.f32 %v2094_v2, %v5415_v56  ;;  %v2207_v6 = vpop.f32.mrb[50].mxu1  ;;  %v2096_v9 = vpop.f32.mrb[51].mxu0  ;;  %v2508_v13 = vmax.f32 %v2091_v58, 0.0 }
 0x31c   : > { %v2208_v10 = vadd.f32 %v2207_v6, %v5415_v56  ;;  %v2097_v11 = vadd.f32 %v2096_v9, %v5415_v56  ;;  %v2209_v12 = vpop.f32.mrb[51].mxu1  ;;  %v2510_v18 = vmax.f32 %v2204_v37, 0.0  ;;  %v2509_v21 = vmax.f32 %v2093_v63, 0.0 }
 0x31d   : > { %v2516_v16 = vmax.f32 %v2095_v5, 0.0  ;;  %v2210_v17 = vadd.f32 %v2209_v12, %v5415_v56  ;;  %v2511_v24 = vmax.f32 %v2206_v4, 0.0 }
 0x31e   : > { %v2518_v1 = vmax.f32 %v2208_v10, 0.0  ;;  %v2517_v22 = vmax.f32 %v2097_v11, 0.0 }
 0x31f   : > { %v2644_v25 = vpack.c.bf16 %v2516_v16, %v2508_v13  ;;  %v2519_v47 = vmax.f32 %v2210_v17, 0.0 }
 0x320   : > { %v2646_v28 = vpack.c.bf16 %v2518_v1, %v2510_v18  ;;  %v2645_v29 = vpack.c.bf16 %v2517_v22, %v2509_v21  ;;  %v2100_v55 = vpop.f32.mrb[52].mxu0  ;;  %v5449_v22 = vpop.permute.xlu0 %1943 }
 0x321   : > { %v2647_v30 = vpack.c.bf16 %v2519_v47, %v2511_v24  ;;  %v2101_v31 = vadd.f32 %v2100_v55, %v5425_v32  ;;  %v2213_v50 = vpop.f32.mrb[52].mxu1  ;;  %v2102_v33 = vpop.f32.mrb[53].mxu0 }
 0x322   : > { %v2214_v62 = vadd.f32 %v2213_v50, %v5425_v32  ;;  %v2103_v34 = vadd.f32 %v2102_v33, %v5425_v32  ;;  %v2215_v35 = vpop.f32.mrb[53].mxu1  ;;  %v2104_v36 = vpop.f32.mrb[54].mxu0  ;;  %2780 = vmatprep.subr.bf16.mxu0 %v2645_v29 }
 0x323   : > { %v2216_v38 = vadd.f32 %v2215_v35, %v5425_v32  ;;  %v2105_v40 = vadd.f32 %v2104_v36, %v5427_v27  ;;  %v2217_v41 = vpop.f32.mrb[54].mxu1  ;;  %2853 = vmatprep.subr.bf16.mxu1 %v2647_v30  ;;  %v2106_v42 = vpop.f32.mrb[55].mxu0  ;;  %2781 = vmatpush1.bf16.msra.mxu0 %v2644_v25  ;;  %v2524_v46 = vmax.f32 %v2101_v31, 0.0 }
 0x324   : > { %v2218_v43 = vadd.f32 %v2217_v41, %v5427_v27  ;;  %v2107_v44 = vadd.f32 %v2106_v42, %v5427_v27  ;;  %v2219_v45 = vpop.f32.mrb[55].mxu1  ;;  %2854 = vmatpush1.bf16.msra.mxu1 %v2646_v28  ;;  %v2526_v49 = vmax.f32 %v2214_v62, 0.0  ;;  %v2525_v51 = vmax.f32 %v2103_v34, 0.0  ;;  %v5451_v28 = vpop.permute.xlu1 %1948 }
 0x325   : > { %v2532_v48 = vmax.f32 %v2105_v40, 0.0  ;;  %v2220_v8 = vadd.f32 %v2219_v45, %v5427_v27  ;;  %v2527_v54 = vmax.f32 %v2216_v38, 0.0 }
 0x326   : > { %v2534_v52 = vmax.f32 %v2218_v43, 0.0  ;;  %v2533_v15 = vmax.f32 %v2107_v44, 0.0 }
 0x327   : > { %v2652_v14 = vpack.c.bf16 %v2532_v48, %v2524_v46  ;;  %v2535_v23 = vmax.f32 %v2220_v8, 0.0 }
 0x328   : > { %v2654_v60 = vpack.c.bf16 %v2534_v52, %v2526_v49  ;;  %v2653_v61 = vpack.c.bf16 %v2533_v15, %v2525_v51  ;;  %v2110_v19 = vpop.f32.mrb[56].mxu0 }
 0x329   : > { %v2655_v7 = vpack.c.bf16 %v2535_v23, %v2527_v54  ;;  %v2111_v57 = vadd.f32 %v2110_v19, %v5437_v53  ;;  %v2223_v58 = vpop.f32.mrb[56].mxu1  ;;  %v2112_v59 = vpop.f32.mrb[57].mxu0 }
 0x32a   : > { %v2224_v39 = vadd.f32 %v2223_v58, %v5437_v53  ;;  %v2113_v37 = vadd.f32 %v2112_v59, %v5437_v53  ;;  %v2225_v63 = vpop.f32.mrb[57].mxu1  ;;  %v2114_v0 = vpop.f32.mrb[58].mxu0  ;;  %2782 = vmatprep.subr.bf16.mxu0 %v2653_v61 }
 0x32b   : > { %v2226_v2 = vadd.f32 %v2225_v63, %v5437_v53  ;;  %v2115_v4 = vadd.f32 %v2114_v0, %v5439_v26  ;;  %v2227_v5 = vpop.f32.mrb[58].mxu1  ;;  %2855 = vmatprep.subr.bf16.mxu1 %v2655_v7  ;;  %v2116_v6 = vpop.f32.mrb[59].mxu0  ;;  %2783 = vmatpush1.bf16.msra.mxu0 %v2652_v14  ;;  %v2540_v12 = vmax.f32 %v2111_v57, 0.0 }
 0x32c   : > { %v2228_v9 = vadd.f32 %v2227_v5, %v5439_v26  ;;  %v2117_v10 = vadd.f32 %v2116_v6, %v5439_v26  ;;  %v2229_v11 = vpop.f32.mrb[59].mxu1  ;;  %2856 = vmatpush1.bf16.msra.mxu1 %v2654_v60  ;;  %v2542_v17 = vmax.f32 %v2224_v39, 0.0  ;;  %v2541_v18 = vmax.f32 %v2113_v37, 0.0  ;;  %v5461_v14 = vpop.permute.xlu0 %1953 }
 0x32d   : > { %v2548_v13 = vmax.f32 %v2115_v4, 0.0  ;;  %v2230_v16 = vadd.f32 %v2229_v11, %v5439_v26  ;;  %v2543_v24 = vmax.f32 %v2226_v2, 0.0  ;;  %v5463_v19 = vpop.permute.xlu1 %1958 }
 0x32e   : > { %v2550_v21 = vmax.f32 %v2228_v9, 0.0  ;;  %v2549_v1 = vmax.f32 %v2117_v10, 0.0 }
 0x32f   : > { %v2660_v25 = vpack.c.bf16 %v2548_v13, %v2540_v12  ;;  %v2551_v47 = vmax.f32 %v2230_v16, 0.0 }
 0x330   : > { %v2662_v29 = vpack.c.bf16 %v2550_v21, %v2542_v17  ;;  %v2661_v55 = vpack.c.bf16 %v2549_v1, %v2541_v18  ;;  %v2120_v30 = vpop.f32.mrb[60].mxu0 }
 0x331   : > { %v2663_v31 = vpack.c.bf16 %v2551_v47, %v2543_v24  ;;  %v2121_v50 = vadd.f32 %v2120_v30, %v5449_v22  ;;  %v2233_v33 = vpop.f32.mrb[60].mxu1  ;;  %v2122_v62 = vpop.f32.mrb[61].mxu0 }
 0x332   : > { %v2234_v34 = vadd.f32 %v2233_v33, %v5449_v22  ;;  %v2123_v35 = vadd.f32 %v2122_v62, %v5449_v22  ;;  %v2235_v36 = vpop.f32.mrb[61].mxu1  ;;  %v2124_v38 = vpop.f32.mrb[62].mxu0  ;;  %2784 = vmatprep.subr.bf16.mxu0 %v2661_v55 }
 0x333   : > { %v2236_v40 = vadd.f32 %v2235_v36, %v5449_v22  ;;  %v2125_v41 = vadd.f32 %v2124_v38, %v5451_v28  ;;  %v2237_v42 = vpop.f32.mrb[62].mxu1  ;;  %2857 = vmatprep.subr.bf16.mxu1 %v2663_v31  ;;  %v2126_v43 = vpop.f32.mrb[63].mxu0  ;;  %2785 = vmatpush1.bf16.msra.mxu0 %v2660_v25  ;;  %v2556_v48 = vmax.f32 %v2121_v50, 0.0 }
 0x334   : > { %v2238_v44 = vadd.f32 %v2237_v42, %v5451_v28  ;;  %v2127_v45 = vadd.f32 %v2126_v43, %v5451_v28  ;;  %v2239_v46 = vpop.f32.mrb[63].mxu1  ;;  %2858 = vmatpush1.bf16.msra.mxu1 %v2662_v29  ;;  %v2558_v51 = vmax.f32 %v2234_v34, 0.0  ;;  %v2557_v52 = vmax.f32 %v2123_v35, 0.0  ;;  %v5473_v29 = vpop.permute.xlu0 %1963 }
 0x335   : > { %v2564_v8 = vmax.f32 %v2125_v41, 0.0  ;;  %v2240_v49 = vadd.f32 %v2239_v46, %v5451_v28  ;;  %v2559_v23 = vmax.f32 %v2236_v40, 0.0  ;;  %v5475_v50 = vpop.permute.xlu1 %1968 }
 0x336   : > { %v2566_v15 = vmax.f32 %v2238_v44, 0.0  ;;  %v2565_v54 = vmax.f32 %v2127_v45, 0.0 }
 0x337   : > { %v2668_v60 = vpack.c.bf16 %v2564_v8, %v2556_v48  ;;  %v2567_v61 = vmax.f32 %v2240_v49, 0.0 }
 0x338   : > { %v2670_v7 = vpack.c.bf16 %v2566_v15, %v2558_v51  ;;  %v2669_v57 = vpack.c.bf16 %v2565_v54, %v2557_v52  ;;  %v2130_v58 = vpop.f32.mrb[64].mxu0 }
 0x339   : > { %v2671_v59 = vpack.c.bf16 %v2567_v61, %v2559_v23  ;;  %v2131_v39 = vadd.f32 %v2130_v58, %v5461_v14  ;;  %v2243_v37 = vpop.f32.mrb[64].mxu1  ;;  %v2132_v63 = vpop.f32.mrb[65].mxu0 }
 0x33a   : > { %v2244_v0 = vadd.f32 %v2243_v37, %v5461_v14  ;;  %v2133_v2 = vadd.f32 %v2132_v63, %v5461_v14  ;;  %v2245_v4 = vpop.f32.mrb[65].mxu1  ;;  %v2134_v5 = vpop.f32.mrb[66].mxu0  ;;  %2786 = vmatprep.subr.bf16.mxu0 %v2669_v57 }
 0x33b   : > { %v2246_v6 = vadd.f32 %v2245_v4, %v5461_v14  ;;  %v2135_v9 = vadd.f32 %v2134_v5, %v5463_v19  ;;  %v2247_v10 = vpop.f32.mrb[66].mxu1  ;;  %2859 = vmatprep.subr.bf16.mxu1 %v2671_v59  ;;  %v2136_v11 = vpop.f32.mrb[67].mxu0  ;;  %2787 = vmatpush1.bf16.msra.mxu0 %v2668_v60  ;;  %v2572_v17 = vmax.f32 %v2131_v39, 0.0 }
 0x33c   : > { %v2248_v12 = vadd.f32 %v2247_v10, %v5463_v19  ;;  %v2137_v13 = vadd.f32 %v2136_v11, %v5463_v19  ;;  %v2249_v16 = vpop.f32.mrb[67].mxu1  ;;  %2860 = vmatpush1.bf16.msra.mxu1 %v2670_v7  ;;  %v2574_v1 = vmax.f32 %v2244_v0, 0.0  ;;  %v2573_v24 = vmax.f32 %v2133_v2, 0.0  ;;  %v5485_v58 = vpop.permute.xlu0 %1973 }
 0x33d   : > { %v2580_v18 = vmax.f32 %v2135_v9, 0.0  ;;  %v2250_v21 = vadd.f32 %v2249_v16, %v5463_v19  ;;  %v2575_v55 = vmax.f32 %v2246_v6, 0.0  ;;  %v5487_v63 = vpop.permute.xlu1 %1978 }
 0x33e   : > { %v2582_v25 = vmax.f32 %v2248_v12, 0.0  ;;  %v2581_v47 = vmax.f32 %v2137_v13, 0.0 }
 0x33f   : > { %v2676_v30 = vpack.c.bf16 %v2580_v18, %v2572_v17  ;;  %v2583_v31 = vmax.f32 %v2250_v21, 0.0 }
 0x340   : > { %v2678_v33 = vpack.c.bf16 %v2582_v25, %v2574_v1  ;;  %v2677_v62 = vpack.c.bf16 %v2581_v47, %v2573_v24  ;;  %v2140_v34 = vpop.f32.mrb[68].mxu0 }
 0x341   : > { %v2679_v35 = vpack.c.bf16 %v2583_v31, %v2575_v55  ;;  %v2141_v36 = vadd.f32 %v2140_v34, %v5473_v29  ;;  %v2253_v38 = vpop.f32.mrb[68].mxu1  ;;  %v2142_v40 = vpop.f32.mrb[69].mxu0 }
 0x342   : > { %v2254_v41 = vadd.f32 %v2253_v38, %v5473_v29  ;;  %v2143_v42 = vadd.f32 %v2142_v40, %v5473_v29  ;;  %v2255_v43 = vpop.f32.mrb[69].mxu1  ;;  %v2144_v44 = vpop.f32.mrb[70].mxu0  ;;  %2788 = vmatprep.subr.bf16.mxu0 %v2677_v62 }
 0x343   : > { %v2256_v45 = vadd.f32 %v2255_v43, %v5473_v29  ;;  %v2145_v46 = vadd.f32 %v2144_v44, %v5475_v50  ;;  %v2257_v48 = vpop.f32.mrb[70].mxu1  ;;  %2861 = vmatprep.subr.bf16.mxu1 %v2679_v35  ;;  %v2146_v8 = vpop.f32.mrb[71].mxu0  ;;  %2789 = vmatpush1.bf16.msra.mxu0 %v2676_v30  ;;  %v2588_v15 = vmax.f32 %v2141_v36, 0.0 }
 0x344   : > { %v2258_v49 = vadd.f32 %v2257_v48, %v5475_v50  ;;  %v2147_v51 = vadd.f32 %v2146_v8, %v5475_v50  ;;  %v2259_v52 = vpop.f32.mrb[71].mxu1  ;;  %2862 = vmatpush1.bf16.msra.mxu1 %v2678_v33  ;;  %v2590_v60 = vmax.f32 %v2254_v41, 0.0  ;;  %v2589_v61 = vmax.f32 %v2143_v42, 0.0  ;;  %v5497_v36 = vpop.permute.xlu0 %1983 }
 0x345   : > { %v2596_v54 = vmax.f32 %v2145_v46, 0.0  ;;  %v2260_v23 = vadd.f32 %v2259_v52, %v5475_v50  ;;  %v2591_v59 = vmax.f32 %v2256_v45, 0.0  ;;  %v5499_v42 = vpop.permute.xlu1 %1988 }
 0x346   : > { %v2598_v7 = vmax.f32 %v2258_v49, 0.0  ;;  %v2597_v57 = vmax.f32 %v2147_v51, 0.0 }
 0x347   : > { %v2684_v39 = vpack.c.bf16 %v2596_v54, %v2588_v15  ;;  %v2599_v37 = vmax.f32 %v2260_v23, 0.0 }
 0x348   : > { %v2686_v0 = vpack.c.bf16 %v2598_v7, %v2590_v60  ;;  %v2685_v2 = vpack.c.bf16 %v2597_v57, %v2589_v61  ;;  %v2150_v4 = vpop.f32.mrb[72].mxu0 }
 0x349   : > { %v2687_v5 = vpack.c.bf16 %v2599_v37, %v2591_v59  ;;  %v2151_v6 = vadd.f32 %v2150_v4, %v5485_v58  ;;  %v2263_v9 = vpop.f32.mrb[72].mxu1  ;;  %v2152_v10 = vpop.f32.mrb[73].mxu0 }
 0x34a   : > { %v2264_v11 = vadd.f32 %v2263_v9, %v5485_v58  ;;  %v2153_v12 = vadd.f32 %v2152_v10, %v5485_v58  ;;  %v2265_v13 = vpop.f32.mrb[73].mxu1  ;;  %v2154_v16 = vpop.f32.mrb[74].mxu0  ;;  %2790 = vmatprep.subr.bf16.mxu0 %v2685_v2 }
 0x34b   : > { %v2266_v17 = vadd.f32 %v2265_v13, %v5485_v58  ;;  %v2155_v18 = vadd.f32 %v2154_v16, %v5487_v63  ;;  %v2267_v21 = vpop.f32.mrb[74].mxu1  ;;  %2863 = vmatprep.subr.bf16.mxu1 %v2687_v5  ;;  %v2156_v1 = vpop.f32.mrb[75].mxu0  ;;  %2791 = vmatpush1.bf16.msra.mxu0 %v2684_v39  ;;  %v2604_v55 = vmax.f32 %v2151_v6, 0.0 }
 0x34c   : > { %v2268_v24 = vadd.f32 %v2267_v21, %v5487_v63  ;;  %v2157_v25 = vadd.f32 %v2156_v1, %v5487_v63  ;;  %v2269_v47 = vpop.f32.mrb[75].mxu1  ;;  %2864 = vmatpush1.bf16.msra.mxu1 %v2686_v0  ;;  %v2606_v33 = vmax.f32 %v2264_v11, 0.0  ;;  %v2605_v62 = vmax.f32 %v2153_v12, 0.0 }
 0x34d   : > { %v2612_v30 = vmax.f32 %v2155_v18, 0.0  ;;  %v2270_v31 = vadd.f32 %v2269_v47, %v5487_v63  ;;  %v2607_v38 = vmax.f32 %v2266_v17, 0.0 }
 0x34e   : > { %v2614_v34 = vmax.f32 %v2268_v24, 0.0  ;;  %v2613_v35 = vmax.f32 %v2157_v25, 0.0 }
 0x34f   : > { %v2692_v40 = vpack.c.bf16 %v2612_v30, %v2604_v55  ;;  %v2615_v41 = vmax.f32 %v2270_v31, 0.0  ;;  %v5515_v31 = vld [vmem:[%s5848_s7] sm:$0xff]  }
 0x350   : > { %v2694_v43 = vpack.c.bf16 %v2614_v34, %v2606_v33  ;;  %v2693_v44 = vpack.c.bf16 %v2613_v35, %v2605_v62  ;;  %v2160_v45 = vpop.f32.mrb[76].mxu0 }
 0x351   : > { %v2695_v46 = vpack.c.bf16 %v2615_v41, %v2607_v38  ;;  %v2161_v48 = vadd.f32 %v2160_v45, %v5497_v36  ;;  %v2273_v8 = vpop.f32.mrb[76].mxu1  ;;  %v2162_v49 = vpop.f32.mrb[77].mxu0 }
 0x352   : > { %v2274_v51 = vadd.f32 %v2273_v8, %v5497_v36  ;;  %v2163_v52 = vadd.f32 %v2162_v49, %v5497_v36  ;;  %v2275_v15 = vpop.f32.mrb[77].mxu1  ;;  %v2164_v54 = vpop.f32.mrb[78].mxu0  ;;  %2792 = vmatprep.subr.bf16.mxu0 %v2693_v44 }
 0x353   : > { %v2276_v23 = vadd.f32 %v2275_v15, %v5497_v36  ;;  %v2165_v60 = vadd.f32 %v2164_v54, %v5499_v42  ;;  %v2277_v61 = vpop.f32.mrb[78].mxu1  ;;  %2865 = vmatprep.subr.bf16.mxu1 %v2695_v46  ;;  %v2166_v7 = vpop.f32.mrb[79].mxu0  ;;  %2793 = vmatpush1.bf16.msra.mxu0 %v2692_v40  ;;  %v2620_v37 = vmax.f32 %v2161_v48, 0.0 }
 0x354   : > { %v2278_v57 = vadd.f32 %v2277_v61, %v5499_v42  ;;  %v2167_v59 = vadd.f32 %v2166_v7, %v5499_v42  ;;  %v2279_v39 = vpop.f32.mrb[79].mxu1  ;;  %2866 = vmatpush1.bf16.msra.mxu1 %v2694_v43  ;;  %v2622_v4 = vmax.f32 %v2274_v51, 0.0  ;;  %v2621_v5 = vmax.f32 %v2163_v52, 0.0 }
 0x355   : > { %v2628_v0 = vmax.f32 %v2165_v60, 0.0  ;;  %v2280_v2 = vadd.f32 %v2279_v39, %v5499_v42  ;;  %v2623_v10 = vmax.f32 %v2276_v23, 0.0 }
 0x356   : > { %v2630_v6 = vmax.f32 %v2278_v57, 0.0  ;;  %v2629_v9 = vmax.f32 %v2167_v59, 0.0 }
 0x357   : > { %v2700_v11 = vpack.c.bf16 %v2628_v0, %v2620_v37  ;;  %v2631_v12 = vmax.f32 %v2280_v2, 0.0  ;;  %v5532_v0 = vld [vmem:[%s5848_s7 + $0x8] sm:$0xff]  }
 0x358   : > { %v2702_v13 = vpack.c.bf16 %v2630_v6, %v2622_v4  ;;  %v2701_v16 = vpack.c.bf16 %v2629_v9, %v2621_v5  ;;  %v2316_v17 = vpop.f32.mrb[80].mxu0 }
 0x359   : > { %v2703_v18 = vpack.c.bf16 %v2631_v12, %v2623_v10  ;;  %v2317_v21 = vadd.f32 %v2316_v17, %v5413_v20  ;;  %v2429_v1 = vpop.f32.mrb[80].mxu1  ;;  %v2318_v24 = vpop.f32.mrb[81].mxu0 }
 0x35a   : > { %v2430_v25 = vadd.f32 %v2429_v1, %v5413_v20  ;;  %v2319_v47 = vadd.f32 %v2318_v24, %v5413_v20  ;;  %v2431_v55 = vpop.f32.mrb[81].mxu1  ;;  %v2320_v30 = vpop.f32.mrb[82].mxu0  ;;  %2794 = vmatprep.subr.bf16.mxu0 %v2701_v16 }
 0x35b   : > { %v2432_v33 = vadd.f32 %v2431_v55, %v5413_v20  ;;  %v2321_v62 = vadd.f32 %v2320_v30, %v5415_v56  ;;  %v2433_v34 = vpop.f32.mrb[82].mxu1  ;;  %2867 = vmatprep.subr.bf16.mxu1 %v2703_v18  ;;  %v2322_v35 = vpop.f32.mrb[83].mxu0  ;;  %2795 = vmatpush1.bf16.msra.mxu0 %v2700_v11  ;;  %v2512_v43 = vmax.f32 %v2317_v21, 0.0 }
 0x35c   : > { %v2434_v38 = vadd.f32 %v2433_v34, %v5415_v56  ;;  %v2323_v40 = vadd.f32 %v2322_v35, %v5415_v56  ;;  %v2435_v41 = vpop.f32.mrb[83].mxu1  ;;  %2868 = vmatpush1.bf16.msra.mxu1 %v2702_v13  ;;  %v2514_v46 = vmax.f32 %v2430_v25, 0.0  ;;  %v2513_v48 = vmax.f32 %v2319_v47, 0.0 }
 0x35d   : > { %v2520_v44 = vmax.f32 %v2321_v62, 0.0  ;;  %v2436_v45 = vadd.f32 %v2435_v41, %v5415_v56  ;;  %v2515_v49 = vmax.f32 %v2432_v33, 0.0 }
 0x35e   : > { %v2522_v8 = vmax.f32 %v2434_v38, 0.0  ;;  %v2521_v20 = vmax.f32 %v2323_v40, 0.0  ;;  %2813 = vmatmul.mubr.bf16.vlgmr.msra.gmra.mrb[112].mxu0 %v5515_v31 }
 0x35f   : > { %v2648_v51 = vpack.c.bf16 %v2520_v44, %v2512_v43  ;;  %v2523_v52 = vmax.f32 %v2436_v45, 0.0  ;;  %2886 = vmatmul.mubr.bf16.vlgmr.msra.gmra.mrb[112].mxu1 %v5515_v31  ;;  %2822 = vmatprep.mubr.bf16.mxu0 %v4495_v3  ;;  %v5549_v43 = vld [vmem:[%s5848_s7 + $0x10] sm:$0xff]  }
 0x360   : > { %v2650_v15 = vpack.c.bf16 %v2522_v8, %v2514_v46  ;;  %v2649_v54 = vpack.c.bf16 %v2521_v20, %v2513_v48  ;;  %v2326_v23 = vpop.f32.mrb[84].mxu0  ;;  %2895 = vmatprep.mubr.bf16.mxu1 %v4495_v3 }
 0x361   : > { %v2651_v60 = vpack.c.bf16 %v2523_v52, %v2515_v49  ;;  %v2327_v56 = vadd.f32 %v2326_v23, %v5425_v32  ;;  %v2439_v61 = vpop.f32.mrb[84].mxu1  ;;  %v2328_v7 = vpop.f32.mrb[85].mxu0 }
 0x362   : > { %v2440_v57 = vadd.f32 %v2439_v61, %v5425_v32  ;;  %v2329_v59 = vadd.f32 %v2328_v7, %v5425_v32  ;;  %v2441_v39 = vpop.f32.mrb[85].mxu1  ;;  %v2330_v37 = vpop.f32.mrb[86].mxu0  ;;  %2926 = vmatprep.subr.bf16.mxu0 %v2649_v54 }
 0x363   : > { %v2442_v2 = vadd.f32 %v2441_v39, %v5425_v32  ;;  %v2331_v4 = vadd.f32 %v2330_v37, %v5427_v27  ;;  %v2443_v5 = vpop.f32.mrb[86].mxu1  ;;  %2999 = vmatprep.subr.bf16.mxu1 %v2651_v60  ;;  %v2332_v6 = vpop.f32.mrb[87].mxu0  ;;  %2927 = vmatpush1.bf16.msra.mxu0 %v2648_v51  ;;  %v2528_v12 = vmax.f32 %v2327_v56, 0.0 }
 0x364   : > { %v2444_v9 = vadd.f32 %v2443_v5, %v5427_v27  ;;  %v2333_v10 = vadd.f32 %v2332_v6, %v5427_v27  ;;  %v2445_v11 = vpop.f32.mrb[87].mxu1  ;;  %3000 = vmatpush1.bf16.msra.mxu1 %v2650_v15  ;;  %v2530_v17 = vmax.f32 %v2440_v57, 0.0  ;;  %v2529_v18 = vmax.f32 %v2329_v59, 0.0 }
 0x365   : > { %v2536_v13 = vmax.f32 %v2331_v4, 0.0  ;;  %v2446_v16 = vadd.f32 %v2445_v11, %v5427_v27  ;;  %v2531_v1 = vmax.f32 %v2442_v2, 0.0  ;;  %v5566_v11 = vld [vmem:[%s5848_s7 + $0x18] sm:$0xff]  }
 0x366   : > { %v2538_v21 = vmax.f32 %v2444_v9, 0.0  ;;  %v2537_v32 = vmax.f32 %v2333_v10, 0.0  ;;  %2823 = vmatmul.mubr.bf16.gmra.mrb[116].mxu0 %v5532_v0 }
 0x367   : > { %v2656_v24 = vpack.c.bf16 %v2536_v13, %v2528_v12  ;;  %v2539_v25 = vmax.f32 %v2446_v16, 0.0  ;;  %2896 = vmatmul.mubr.bf16.gmra.mrb[116].mxu1 %v5532_v0  ;;  %2832 = vmatprep.mubr.bf16.mxu0 %v4495_v3 }
 0x368   : > { %v2658_v47 = vpack.c.bf16 %v2538_v21, %v2530_v17  ;;  %v2657_v55 = vpack.c.bf16 %v2537_v32, %v2529_v18  ;;  %v2336_v30 = vpop.f32.mrb[88].mxu0  ;;  %2905 = vmatprep.mubr.bf16.mxu1 %v4495_v3 }
 0x369   : > { %v2659_v33 = vpack.c.bf16 %v2539_v25, %v2531_v1  ;;  %v2337_v27 = vadd.f32 %v2336_v30, %v5437_v53  ;;  %v2449_v62 = vpop.f32.mrb[88].mxu1  ;;  %v2338_v34 = vpop.f32.mrb[89].mxu0 }
 0x36a   : > { %v2450_v35 = vadd.f32 %v2449_v62, %v5437_v53  ;;  %v2339_v38 = vadd.f32 %v2338_v34, %v5437_v53  ;;  %v2451_v40 = vpop.f32.mrb[89].mxu1  ;;  %v2340_v41 = vpop.f32.mrb[90].mxu0  ;;  %2928 = vmatprep.subr.bf16.mxu0 %v2657_v55 }
 0x36b   : > { %v2452_v44 = vadd.f32 %v2451_v40, %v5437_v53  ;;  %v2341_v45 = vadd.f32 %v2340_v41, %v5439_v26  ;;  %v2453_v46 = vpop.f32.mrb[90].mxu1  ;;  %3001 = vmatprep.subr.bf16.mxu1 %v2659_v33  ;;  %v2342_v48 = vpop.f32.mrb[91].mxu0  ;;  %2929 = vmatpush1.bf16.msra.mxu0 %v2656_v24  ;;  %v2544_v51 = vmax.f32 %v2337_v27, 0.0 }
 0x36c   : > { %v2454_v8 = vadd.f32 %v2453_v46, %v5439_v26  ;;  %v2343_v20 = vadd.f32 %v2342_v48, %v5439_v26  ;;  %v2455_v49 = vpop.f32.mrb[91].mxu1  ;;  %3002 = vmatpush1.bf16.msra.mxu1 %v2658_v47  ;;  %v2546_v54 = vmax.f32 %v2450_v35, 0.0  ;;  %v2545_v23 = vmax.f32 %v2339_v38, 0.0 }
 0x36d   : > { %v2552_v52 = vmax.f32 %v2341_v45, 0.0  ;;  %v2456_v15 = vadd.f32 %v2455_v49, %v5439_v26  ;;  %v2547_v56 = vmax.f32 %v2452_v44, 0.0 }
 0x36e   : > { %v2554_v60 = vmax.f32 %v2454_v8, 0.0  ;;  %v2553_v53 = vmax.f32 %v2343_v20, 0.0  ;;  %2833 = vmatmul.mubr.bf16.gmra.mrb[120].mxu0 %v5549_v43 }
 0x36f   : > { %v2664_v61 = vpack.c.bf16 %v2552_v52, %v2544_v51  ;;  %v2555_v7 = vmax.f32 %v2456_v15, 0.0  ;;  %2906 = vmatmul.mubr.bf16.gmra.mrb[120].mxu1 %v5549_v43  ;;  %2842 = vmatprep.mubr.bf16.mxu0 %v4495_v3 }
 0x370   : > { %v2666_v57 = vpack.c.bf16 %v2554_v60, %v2546_v54  ;;  %v2665_v59 = vpack.c.bf16 %v2553_v53, %v2545_v23  ;;  %v2346_v39 = vpop.f32.mrb[92].mxu0  ;;  %2915 = vmatprep.mubr.bf16.mxu1 %v4495_v3 }
 0x371   : > { %v2667_v37 = vpack.c.bf16 %v2555_v7, %v2547_v56  ;;  %v2347_v26 = vadd.f32 %v2346_v39, %v5449_v22  ;;  %v2459_v2 = vpop.f32.mrb[92].mxu1  ;;  %v2348_v4 = vpop.f32.mrb[93].mxu0 }
 0x372   : > { %v2460_v5 = vadd.f32 %v2459_v2, %v5449_v22  ;;  %v2349_v6 = vadd.f32 %v2348_v4, %v5449_v22  ;;  %v2461_v9 = vpop.f32.mrb[93].mxu1  ;;  %v2350_v10 = vpop.f32.mrb[94].mxu0  ;;  %2930 = vmatprep.subr.bf16.mxu0 %v2665_v59 }
 0x373   : > { %v2462_v12 = vadd.f32 %v2461_v9, %v5449_v22  ;;  %v2351_v13 = vadd.f32 %v2350_v10, %v5451_v28  ;;  %v2463_v16 = vpop.f32.mrb[94].mxu1  ;;  %3003 = vmatprep.subr.bf16.mxu1 %v2667_v37  ;;  %v2352_v17 = vpop.f32.mrb[95].mxu0  ;;  %2931 = vmatpush1.bf16.msra.mxu0 %v2664_v61  ;;  %v2560_v1 = vmax.f32 %v2347_v26, 0.0 }
 0x374   : > { %v2464_v18 = vadd.f32 %v2463_v16, %v5451_v28  ;;  %v2353_v21 = vadd.f32 %v2352_v17, %v5451_v28  ;;  %v2465_v32 = vpop.f32.mrb[95].mxu1  ;;  %3004 = vmatpush1.bf16.msra.mxu1 %v2666_v57  ;;  %v2562_v47 = vmax.f32 %v2460_v5, 0.0  ;;  %v2561_v55 = vmax.f32 %v2349_v6, 0.0 }
 0x375   : > { %v2568_v24 = vmax.f32 %v2351_v13, 0.0  ;;  %v2466_v25 = vadd.f32 %v2465_v32, %v5451_v28  ;;  %v2563_v33 = vmax.f32 %v2462_v12, 0.0 }
 0x376   : > { %v2570_v30 = vmax.f32 %v2464_v18, 0.0  ;;  %v2569_v22 = vmax.f32 %v2353_v21, 0.0  ;;  %2843 = vmatmul.mubr.bf16.gmra.mrb[124].mxu0 %v5566_v11 }
 0x377   : > { %v2672_v27 = vpack.c.bf16 %v2568_v24, %v2560_v1  ;;  %v2571_v62 = vmax.f32 %v2466_v25, 0.0  ;;  %2916 = vmatmul.mubr.bf16.gmra.mrb[124].mxu1 %v5566_v11  ;;  %2958 = vmatprep.mubr.bf16.mxu0 %v4495_v3 }
 0x378   : > { %v2674_v34 = vpack.c.bf16 %v2570_v30, %v2562_v47  ;;  %v2673_v35 = vpack.c.bf16 %v2569_v22, %v2561_v55  ;;  %v2356_v38 = vpop.f32.mrb[96].mxu0  ;;  %3031 = vmatprep.mubr.bf16.mxu1 %v4495_v3 }
 0x379   : > { %v2675_v40 = vpack.c.bf16 %v2571_v62, %v2563_v33  ;;  %v2357_v28 = vadd.f32 %v2356_v38, %v5461_v14  ;;  %v2469_v41 = vpop.f32.mrb[96].mxu1  ;;  %v2358_v44 = vpop.f32.mrb[97].mxu0 }
 0x37a   : > { %v2470_v45 = vadd.f32 %v2469_v41, %v5461_v14  ;;  %v2359_v46 = vadd.f32 %v2358_v44, %v5461_v14  ;;  %v2471_v48 = vpop.f32.mrb[97].mxu1  ;;  %v2360_v8 = vpop.f32.mrb[98].mxu0  ;;  %2932 = vmatprep.subr.bf16.mxu0 %v2673_v35 }
 0x37b   : > { %v2472_v20 = vadd.f32 %v2471_v48, %v5461_v14  ;;  %v2361_v49 = vadd.f32 %v2360_v8, %v5463_v19  ;;  %v2473_v51 = vpop.f32.mrb[98].mxu1  ;;  %3005 = vmatprep.subr.bf16.mxu1 %v2675_v40  ;;  %v2362_v52 = vpop.f32.mrb[99].mxu0  ;;  %2933 = vmatpush1.bf16.msra.mxu0 %v2672_v27  ;;  %v2576_v60 = vmax.f32 %v2357_v28, 0.0 }
 0x37c   : > { %v2474_v15 = vadd.f32 %v2473_v51, %v5463_v19  ;;  %v2363_v54 = vadd.f32 %v2362_v52, %v5463_v19  ;;  %v2475_v23 = vpop.f32.mrb[99].mxu1  ;;  %3006 = vmatpush1.bf16.msra.mxu1 %v2674_v34  ;;  %v2578_v61 = vmax.f32 %v2470_v45, 0.0  ;;  %v2577_v7 = vmax.f32 %v2359_v46, 0.0 }
 0x37d   : > { %v2584_v53 = vmax.f32 %v2361_v49, 0.0  ;;  %v2476_v56 = vadd.f32 %v2475_v23, %v5463_v19  ;;  %v2579_v59 = vmax.f32 %v2472_v20, 0.0 }
 0x37e   : > { %v2586_v57 = vmax.f32 %v2474_v15, 0.0  ;;  %v2585_v14 = vmax.f32 %v2363_v54, 0.0 }
 0x37f   : > { %v2680_v39 = vpack.c.bf16 %v2584_v53, %v2576_v60  ;;  %v2587_v37 = vmax.f32 %v2476_v56, 0.0 }
 0x380   : > { %v2682_v26 = vpack.c.bf16 %v2586_v57, %v2578_v61  ;;  %v2681_v2 = vpack.c.bf16 %v2585_v14, %v2577_v7  ;;  %v2366_v4 = vpop.f32.mrb[100].mxu0 }
 0x381   : > { %v2683_v5 = vpack.c.bf16 %v2587_v37, %v2579_v59  ;;  %v2367_v6 = vadd.f32 %v2366_v4, %v5473_v29  ;;  %v2479_v9 = vpop.f32.mrb[100].mxu1  ;;  %v2368_v10 = vpop.f32.mrb[101].mxu0 }
 0x382   : > { %v2480_v12 = vadd.f32 %v2479_v9, %v5473_v29  ;;  %v2369_v13 = vadd.f32 %v2368_v10, %v5473_v29  ;;  %v2481_v19 = vpop.f32.mrb[101].mxu1  ;;  %v2370_v16 = vpop.f32.mrb[102].mxu0  ;;  %2934 = vmatprep.subr.bf16.mxu0 %v2681_v2 }
 0x383   : > { %v2482_v17 = vadd.f32 %v2481_v19, %v5473_v29  ;;  %v2371_v18 = vadd.f32 %v2370_v16, %v5475_v50  ;;  %v2483_v21 = vpop.f32.mrb[102].mxu1  ;;  %3007 = vmatprep.subr.bf16.mxu1 %v2683_v5  ;;  %v2372_v32 = vpop.f32.mrb[103].mxu0  ;;  %2935 = vmatpush1.bf16.msra.mxu0 %v2680_v39  ;;  %v2592_v47 = vmax.f32 %v2367_v6, 0.0 }
 0x384   : > { %v2484_v1 = vadd.f32 %v2483_v21, %v5475_v50  ;;  %v2373_v24 = vadd.f32 %v2372_v32, %v5475_v50  ;;  %v2485_v25 = vpop.f32.mrb[103].mxu1  ;;  %3008 = vmatpush1.bf16.msra.mxu1 %v2682_v26  ;;  %v2594_v22 = vmax.f32 %v2480_v12, 0.0  ;;  %v2593_v33 = vmax.f32 %v2369_v13, 0.0 }
 0x385   : > { %v2600_v55 = vmax.f32 %v2371_v18, 0.0  ;;  %v2486_v30 = vadd.f32 %v2485_v25, %v5475_v50  ;;  %v2595_v62 = vmax.f32 %v2482_v17, 0.0 }
 0x386   : > { %v2602_v27 = vmax.f32 %v2484_v1, 0.0  ;;  %v2601_v29 = vmax.f32 %v2373_v24, 0.0 }
 0x387   : > { %v2688_v34 = vpack.c.bf16 %v2600_v55, %v2592_v47  ;;  %v2603_v35 = vmax.f32 %v2486_v30, 0.0 }
 0x388   : > { %v2690_v38 = vpack.c.bf16 %v2602_v27, %v2594_v22  ;;  %v2689_v40 = vpack.c.bf16 %v2601_v29, %v2593_v33  ;;  %v2376_v28 = vpop.f32.mrb[104].mxu0 }
 0x389   : > { %v2691_v41 = vpack.c.bf16 %v2603_v35, %v2595_v62  ;;  %v2377_v44 = vadd.f32 %v2376_v28, %v5485_v58  ;;  %v2489_v45 = vpop.f32.mrb[104].mxu1  ;;  %v2378_v46 = vpop.f32.mrb[105].mxu0 }
 0x38a   : > { %v2490_v48 = vadd.f32 %v2489_v45, %v5485_v58  ;;  %v2379_v8 = vadd.f32 %v2378_v46, %v5485_v58  ;;  %v2491_v50 = vpop.f32.mrb[105].mxu1  ;;  %v2380_v20 = vpop.f32.mrb[106].mxu0  ;;  %2936 = vmatprep.subr.bf16.mxu0 %v2689_v40 }
 0x38b   : > { %v2492_v49 = vadd.f32 %v2491_v50, %v5485_v58  ;;  %v2381_v51 = vadd.f32 %v2380_v20, %v5487_v63  ;;  %v2493_v52 = vpop.f32.mrb[106].mxu1  ;;  %3009 = vmatprep.subr.bf16.mxu1 %v2691_v41  ;;  %v2382_v15 = vpop.f32.mrb[107].mxu0  ;;  %2937 = vmatpush1.bf16.msra.mxu0 %v2688_v34  ;;  %v2608_v53 = vmax.f32 %v2377_v44, 0.0 }
 0x38c   : > { %v2494_v54 = vadd.f32 %v2493_v52, %v5487_v63  ;;  %v2383_v23 = vadd.f32 %v2382_v15, %v5487_v63  ;;  %v2495_v60 = vpop.f32.mrb[107].mxu1  ;;  %3010 = vmatpush1.bf16.msra.mxu1 %v2690_v38  ;;  %v2610_v7 = vmax.f32 %v2490_v48, 0.0  ;;  %v2609_v57 = vmax.f32 %v2379_v8, 0.0 }
 0x38d   : > { %v2616_v56 = vmax.f32 %v2381_v51, 0.0  ;;  %v2496_v61 = vadd.f32 %v2495_v60, %v5487_v63  ;;  %v2611_v59 = vmax.f32 %v2492_v49, 0.0 }
 0x38e   : > { %v2618_v14 = vmax.f32 %v2494_v54, 0.0  ;;  %v2617_v58 = vmax.f32 %v2383_v23, 0.0 }
 0x38f   : > { %v2696_v39 = vpack.c.bf16 %v2616_v56, %v2608_v53  ;;  %v2619_v37 = vmax.f32 %v2496_v61, 0.0 }
 0x390   : > { %v2698_v26 = vpack.c.bf16 %v2618_v14, %v2610_v7  ;;  %v2697_v2 = vpack.c.bf16 %v2617_v58, %v2609_v57  ;;  %v2386_v4 = vpop.f32.mrb[108].mxu0 }
 0x391   : > { %v2699_v5 = vpack.c.bf16 %v2619_v37, %v2611_v59  ;;  %v2387_v6 = vadd.f32 %v2386_v4, %v5497_v36  ;;  %v2499_v9 = vpop.f32.mrb[108].mxu1  ;;  %v2388_v10 = vpop.f32.mrb[109].mxu0 }
 0x392   : > { %v2500_v12 = vadd.f32 %v2499_v9, %v5497_v36  ;;  %v2389_v13 = vadd.f32 %v2388_v10, %v5497_v36  ;;  %v2501_v63 = vpop.f32.mrb[109].mxu1  ;;  %v2390_v19 = vpop.f32.mrb[110].mxu0  ;;  %2938 = vmatprep.subr.bf16.mxu0 %v2697_v2 }
 0x393   : > { %v2502_v16 = vadd.f32 %v2501_v63, %v5497_v36  ;;  %v2391_v17 = vadd.f32 %v2390_v19, %v5499_v42  ;;  %v2503_v18 = vpop.f32.mrb[110].mxu1  ;;  %3011 = vmatprep.subr.bf16.mxu1 %v2699_v5  ;;  %v2392_v21 = vpop.f32.mrb[111].mxu0  ;;  %2939 = vmatpush1.bf16.msra.mxu0 %v2696_v39  ;;  %v2624_v25 = vmax.f32 %v2387_v6, 0.0 }
 0x394   : > { %v2504_v32 = vadd.f32 %v2503_v18, %v5499_v42  ;;  %v2393_v1 = vadd.f32 %v2392_v21, %v5499_v42  ;;  %v2505_v24 = vpop.f32.mrb[111].mxu1  ;;  %3012 = vmatpush1.bf16.msra.mxu1 %v2698_v26  ;;  %v2626_v30 = vmax.f32 %v2500_v12, 0.0  ;;  %v2625_v22 = vmax.f32 %v2389_v13, 0.0 }
 0x395   : > { %v2632_v47 = vmax.f32 %v2391_v17, 0.0  ;;  %v2506_v55 = vadd.f32 %v2505_v24, %v5499_v42  ;;  %v2627_v27 = vmax.f32 %v2502_v16, 0.0  ;;  %v5625_v42 = vpop.permute.xlu0 %2718 }
 0x396   : > { %v2634_v33 = vmax.f32 %v2504_v32, 0.0  ;;  %v2633_v36 = vmax.f32 %v2393_v1, 0.0 }
 0x397   : > { %v2704_v29 = vpack.c.bf16 %v2632_v47, %v2624_v25  ;;  %v2635_v62 = vmax.f32 %v2506_v55, 0.0 }
 0x398   : > { %v2706_v34 = vpack.c.bf16 %v2634_v33, %v2626_v30  ;;  %v2705_v35 = vpack.c.bf16 %v2633_v36, %v2625_v22 }
 0x399   : > { %v2707_v38 = vpack.c.bf16 %v2635_v62, %v2627_v27  ;;  %v5637_v61 = vpop.permute.xlu0 %2728 }
 0x39a   : > { %2940 = vmatprep.subr.bf16.mxu0 %v2705_v35 }
 0x39b   : > { %3013 = vmatprep.subr.bf16.mxu1 %v2707_v38  ;;  %2941 = vmatpush1.bf16.msra.mxu0 %v2704_v29 }
 0x39c   : > { %3014 = vmatpush1.bf16.msra.mxu1 %v2706_v34 }
 0x39d   : > { %v5649_v22 = vpop.permute.xlu0 %2738 }
 0x39e   : > { %2959 = vmatmul.mubr.bf16.vlgmr.msra.gmra.mrb[128].mxu0 %v5515_v31 }
 0x39f   : > { %3032 = vmatmul.mubr.bf16.vlgmr.msra.gmra.mrb[128].mxu1 %v5515_v31  ;;  %2968 = vmatprep.mubr.bf16.mxu0 %v4495_v3  ;;  %v5627_v31 = vpop.permute.xlu1 %2723 }
 0x3a0   : > { %3041 = vmatprep.mubr.bf16.mxu1 %v4495_v3 }
 0x3a3   : > { %v5639_v58 = vpop.permute.xlu1 %2733 }
 0x3a6   : > { %2969 = vmatmul.mubr.bf16.gmra.mrb[132].mxu0 %v5532_v0 }
 0x3a7   : > { %3042 = vmatmul.mubr.bf16.gmra.mrb[132].mxu1 %v5532_v0  ;;  %2978 = vmatprep.mubr.bf16.mxu0 %v4495_v3  ;;  %v5651_v29 = vpop.permute.xlu1 %2743 }
 0x3a8   : > { %3051 = vmatprep.mubr.bf16.mxu1 %v4495_v3 }
 0x3ae   : > { %2979 = vmatmul.mubr.bf16.gmra.mrb[136].mxu0 %v5549_v43 }
 0x3af   : > { %3052 = vmatmul.mubr.bf16.gmra.mrb[136].mxu1 %v5549_v43  ;;  %2988 = vmatprep.mubr.bf16.mxu0 %v4495_v3 }
 0x3b0   : > { %3061 = vmatprep.mubr.bf16.mxu1 %v4495_v3 }
 0x3b6   : > { %2989 = vmatmul.mubr.bf16.gmra.mrb[140].mxu0 %v5566_v11 }
 0x3b7   : > { %3062 = vmatmul.mubr.bf16.gmra.mrb[140].mxu1 %v5566_v11  ;;  %3244 = vmatprep.mubr.bf16.mxu0 %v4495_v3 }
 0x3b8   : > { %3297 = vmatprep.mubr.bf16.mxu1 %v4495_v3 }
 0x431   : > { %v2814_v0 = vpop.f32.mrb[112].mxu0 }
 0x432   : > { %v2815_v40 = vadd.f32 %v2814_v0, %v5625_v42  ;;  %v2887_v43 = vpop.f32.mrb[112].mxu1  ;;  %v2816_v28 = vpop.f32.mrb[113].mxu0 }
 0x433   : > { %v2888_v41 = vadd.f32 %v2887_v43, %v5625_v42  ;;  %v2817_v44 = vadd.f32 %v2816_v28, %v5625_v42  ;;  %v2889_v45 = vpop.f32.mrb[113].mxu1  ;;  %v2818_v46 = vpop.f32.mrb[114].mxu0 }
 0x434   : > { %v2890_v11 = vadd.f32 %v2889_v45, %v5625_v42  ;;  %v2819_v48 = vadd.f32 %v2818_v46, %v5627_v31  ;;  %v2891_v8 = vpop.f32.mrb[114].mxu1  ;;  %v2820_v50 = vpop.f32.mrb[115].mxu0  ;;  %v3072_v52 = vmax.f32 %v2815_v40, 0.0 }
 0x435   : > { %v2892_v20 = vadd.f32 %v2891_v8, %v5627_v31  ;;  %v2821_v49 = vadd.f32 %v2820_v50, %v5627_v31  ;;  %v2893_v51 = vpop.f32.mrb[115].mxu1  ;;  %v3074_v23 = vmax.f32 %v2888_v41, 0.0  ;;  %v3073_v60 = vmax.f32 %v2817_v44, 0.0 }
 0x436   : > { %v3080_v15 = vmax.f32 %v2819_v48, 0.0  ;;  %v2894_v54 = vadd.f32 %v2893_v51, %v5627_v31  ;;  %v3075_v7 = vmax.f32 %v2890_v11, 0.0 }
 0x437   : > { %v3082_v53 = vmax.f32 %v2892_v20, 0.0  ;;  %v3081_v56 = vmax.f32 %v2821_v49, 0.0 }
 0x438   : > { %v3140_v57 = vpack.c.bf16 %v3080_v15, %v3072_v52  ;;  %v3083_v14 = vmax.f32 %v2894_v54, 0.0 }
 0x439   : > { %v3142_v59 = vpack.c.bf16 %v3082_v53, %v3074_v23  ;;  %v3141_v39 = vpack.c.bf16 %v3081_v56, %v3073_v60  ;;  %v2824_v37 = vpop.f32.mrb[116].mxu0  ;;  %v5661_v56 = vpop.permute.xlu0 %2748 }
 0x43a   : > { %v3143_v26 = vpack.c.bf16 %v3083_v14, %v3075_v7  ;;  %v2825_v2 = vadd.f32 %v2824_v37, %v5637_v61  ;;  %v2897_v4 = vpop.f32.mrb[116].mxu1  ;;  %v2826_v5 = vpop.f32.mrb[117].mxu0 }
 0x43b   : > { %v2898_v6 = vadd.f32 %v2897_v4, %v5637_v61  ;;  %v2827_v9 = vadd.f32 %v2826_v5, %v5637_v61  ;;  %v2899_v10 = vpop.f32.mrb[117].mxu1  ;;  %v2828_v12 = vpop.f32.mrb[118].mxu0  ;;  %3212 = vmatprep.subr.bf16.mxu0 %v3141_v39 }
 0x43c   : > { %v2900_v13 = vadd.f32 %v2899_v10, %v5637_v61  ;;  %v2829_v63 = vadd.f32 %v2828_v12, %v5639_v58  ;;  %v2901_v19 = vpop.f32.mrb[118].mxu1  ;;  %3265 = vmatprep.subr.bf16.mxu1 %v3143_v26  ;;  %v2830_v16 = vpop.f32.mrb[119].mxu0  ;;  %3213 = vmatpush1.bf16.msra.mxu0 %v3140_v57  ;;  %v3088_v32 = vmax.f32 %v2825_v2, 0.0 }
 0x43d   : > { %v2902_v17 = vadd.f32 %v2901_v19, %v5639_v58  ;;  %v2831_v18 = vadd.f32 %v2830_v16, %v5639_v58  ;;  %v2903_v21 = vpop.f32.mrb[119].mxu1  ;;  %3266 = vmatpush1.bf16.msra.mxu1 %v3142_v59  ;;  %v3090_v25 = vmax.f32 %v2898_v6, 0.0  ;;  %v3089_v47 = vmax.f32 %v2827_v9, 0.0  ;;  %v5663_v59 = vpop.permute.xlu1 %2753 }
 0x43e   : > { %v3096_v1 = vmax.f32 %v2829_v63, 0.0  ;;  %v2904_v24 = vadd.f32 %v2903_v21, %v5639_v58  ;;  %v3091_v33 = vmax.f32 %v2900_v13, 0.0 }
 0x43f   : > { %v3098_v55 = vmax.f32 %v2902_v17, 0.0  ;;  %v3097_v30 = vmax.f32 %v2831_v18, 0.0 }
 0x440   : > { %v3148_v36 = vpack.c.bf16 %v3096_v1, %v3088_v32  ;;  %v3099_v27 = vmax.f32 %v2904_v24, 0.0 }
 0x441   : > { %v3150_v62 = vpack.c.bf16 %v3098_v55, %v3090_v25  ;;  %v3149_v34 = vpack.c.bf16 %v3097_v30, %v3089_v47  ;;  %v2834_v35 = vpop.f32.mrb[120].mxu0 }
 0x442   : > { %v3151_v38 = vpack.c.bf16 %v3099_v27, %v3091_v33  ;;  %v2835_v0 = vadd.f32 %v2834_v35, %v5649_v22  ;;  %v2907_v40 = vpop.f32.mrb[120].mxu1  ;;  %v2836_v43 = vpop.f32.mrb[121].mxu0 }
 0x443   : > { %v2908_v28 = vadd.f32 %v2907_v40, %v5649_v22  ;;  %v2837_v41 = vadd.f32 %v2836_v43, %v5649_v22  ;;  %v2909_v44 = vpop.f32.mrb[121].mxu1  ;;  %v2838_v45 = vpop.f32.mrb[122].mxu0  ;;  %3214 = vmatprep.subr.bf16.mxu0 %v3149_v34  ;;  %v5687_v40 = vld [vmem:[%s5850_s9 + $0x8] sm:$0xff]  }
 0x444   : > { %v2910_v46 = vadd.f32 %v2909_v44, %v5649_v22  ;;  %v2839_v11 = vadd.f32 %v2838_v45, %v5651_v29  ;;  %v2911_v48 = vpop.f32.mrb[122].mxu1  ;;  %3267 = vmatprep.subr.bf16.mxu1 %v3151_v38  ;;  %v2840_v8 = vpop.f32.mrb[123].mxu0  ;;  %3215 = vmatpush1.bf16.msra.mxu0 %v3148_v36  ;;  %v3104_v51 = vmax.f32 %v2835_v0, 0.0  ;;  %v5676_v0 = vld [vmem:[%s5850_s9] sm:$0xff]  }
 0x445   : > { %v2912_v50 = vadd.f32 %v2911_v48, %v5651_v29  ;;  %v2841_v20 = vadd.f32 %v2840_v8, %v5651_v29  ;;  %v2913_v49 = vpop.f32.mrb[123].mxu1  ;;  %3268 = vmatpush1.bf16.msra.mxu1 %v3150_v62  ;;  %v3106_v54 = vmax.f32 %v2908_v28, 0.0  ;;  %v3105_v23 = vmax.f32 %v2837_v41, 0.0 }
 0x446   : > { %v3112_v52 = vmax.f32 %v2839_v11, 0.0  ;;  %v2914_v15 = vadd.f32 %v2913_v49, %v5651_v29  ;;  %v3107_v7 = vmax.f32 %v2910_v46, 0.0 }
 0x447   : > { %v3114_v60 = vmax.f32 %v2912_v50, 0.0  ;;  %v3113_v53 = vmax.f32 %v2841_v20, 0.0 }
 0x448   : > { %v3156_v57 = vpack.c.bf16 %v3112_v52, %v3104_v51  ;;  %v3115_v14 = vmax.f32 %v2914_v15, 0.0 }
 0x449   : > { %v3158_v39 = vpack.c.bf16 %v3114_v60, %v3106_v54  ;;  %v3157_v37 = vpack.c.bf16 %v3113_v53, %v3105_v23  ;;  %v2844_v26 = vpop.f32.mrb[124].mxu0 }
 0x44a   : > { %v3159_v2 = vpack.c.bf16 %v3115_v14, %v3107_v7  ;;  %v2845_v4 = vadd.f32 %v2844_v26, %v5661_v56  ;;  %v2917_v5 = vpop.f32.mrb[124].mxu1  ;;  %v2846_v6 = vpop.f32.mrb[125].mxu0 }
 0x44b   : > { %v2918_v9 = vadd.f32 %v2917_v5, %v5661_v56  ;;  %v2847_v10 = vadd.f32 %v2846_v6, %v5661_v56  ;;  %v2919_v12 = vpop.f32.mrb[125].mxu1  ;;  %v2848_v13 = vpop.f32.mrb[126].mxu0  ;;  %3216 = vmatprep.subr.bf16.mxu0 %v3157_v37 }
 0x44c   : > { %v2920_v63 = vadd.f32 %v2919_v12, %v5661_v56  ;;  %v2849_v19 = vadd.f32 %v2848_v13, %v5663_v59  ;;  %v2921_v16 = vpop.f32.mrb[126].mxu1  ;;  %3269 = vmatprep.subr.bf16.mxu1 %v3159_v2  ;;  %v2850_v17 = vpop.f32.mrb[127].mxu0  ;;  %3217 = vmatpush1.bf16.msra.mxu0 %v3156_v57  ;;  %v3120_v1 = vmax.f32 %v2845_v4, 0.0 }
 0x44d   : > { %v2922_v18 = vadd.f32 %v2921_v16, %v5663_v59  ;;  %v2851_v21 = vadd.f32 %v2850_v17, %v5663_v59  ;;  %v2923_v32 = vpop.f32.mrb[127].mxu1  ;;  %3270 = vmatpush1.bf16.msra.mxu1 %v3158_v39  ;;  %v3122_v47 = vmax.f32 %v2918_v9, 0.0  ;;  %v3121_v55 = vmax.f32 %v2847_v10, 0.0 }
 0x44e   : > { %v3128_v24 = vmax.f32 %v2849_v19, 0.0  ;;  %v2924_v25 = vadd.f32 %v2923_v32, %v5663_v59  ;;  %v3123_v36 = vmax.f32 %v2920_v63, 0.0 }
 0x44f   : > { %v3130_v30 = vmax.f32 %v2922_v18, 0.0  ;;  %v3129_v33 = vmax.f32 %v2851_v21, 0.0 }
 0x450   : > { %v3164_v27 = vpack.c.bf16 %v3128_v24, %v3120_v1  ;;  %v3131_v62 = vmax.f32 %v2924_v25, 0.0 }
 0x451   : > { %v3166_v34 = vpack.c.bf16 %v3130_v30, %v3122_v47  ;;  %v3165_v35 = vpack.c.bf16 %v3129_v33, %v3121_v55 }
 0x452   : > { %v3167_v38 = vpack.c.bf16 %v3131_v62, %v3123_v36 }
 0x453   : > { %3218 = vmatprep.subr.bf16.mxu0 %v3165_v35 }
 0x454   : > { %3271 = vmatprep.subr.bf16.mxu1 %v3167_v38  ;;  %3219 = vmatpush1.bf16.msra.mxu0 %v3164_v27 }
 0x455   : > { %3272 = vmatpush1.bf16.msra.mxu1 %v3166_v34 }
 0x457   : > { %4000 = vmatmul.mubr.msk.bf16.vlgmr.msra.gmra.mrb[144].mxu0 %vm2031_vm3, %v5676_v0 }
 0x458   : > { %4002 = vmatmul.mubr.msk.bf16.vlgmr.msra.gmra.mrb[144].mxu1 %vm2031_vm3, %v5676_v0  ;;  %3254 = vmatprep.mubr.bf16.mxu0 %v4495_v3 }
 0x459   : > { %3307 = vmatprep.mubr.bf16.mxu1 %v4495_v3 }
 0x45f   : > { %4001 = vmatmul.mubr.msk.bf16.gmra.mrb[148].mxu0 %vm2031_vm3, %v5687_v40 }
 0x460   : > { %4003 = vmatmul.mubr.msk.bf16.gmra.mrb[148].mxu1 %vm2031_vm3, %v5687_v40  ;;  %3350 = vmatprep.mubr.bf16.mxu0 %v4495_v3 }
 0x461   : > { %3403 = vmatprep.mubr.bf16.mxu1 %v4495_v3 }
 0x471   : > { %v2960_v43 = vpop.f32.mrb[128].mxu0 }
 0x472   : > { %v2961_v28 = vadd.f32 %v2960_v43, %v5625_v42  ;;  %v3033_v41 = vpop.f32.mrb[128].mxu1  ;;  %v2962_v44 = vpop.f32.mrb[129].mxu0 }
 0x473   : > { %v3034_v45 = vadd.f32 %v3033_v41, %v5625_v42  ;;  %v2963_v46 = vadd.f32 %v2962_v44, %v5625_v42  ;;  %v3035_v11 = vpop.f32.mrb[129].mxu1  ;;  %v2964_v48 = vpop.f32.mrb[130].mxu0 }
 0x474   : > { %v3036_v8 = vadd.f32 %v3035_v11, %v5625_v42  ;;  %v2965_v50 = vadd.f32 %v2964_v48, %v5627_v31  ;;  %v3037_v20 = vpop.f32.mrb[130].mxu1  ;;  %v2966_v49 = vpop.f32.mrb[131].mxu0  ;;  %v3076_v54 = vmax.f32 %v2961_v28, 0.0 }
 0x475   : > { %v3038_v51 = vadd.f32 %v3037_v20, %v5627_v31  ;;  %v2967_v52 = vadd.f32 %v2966_v49, %v5627_v31  ;;  %v3039_v15 = vpop.f32.mrb[131].mxu1  ;;  %v3078_v53 = vmax.f32 %v3034_v45, 0.0  ;;  %v3077_v7 = vmax.f32 %v2963_v46, 0.0 }
 0x476   : > { %v3084_v23 = vmax.f32 %v2965_v50, 0.0  ;;  %v3040_v60 = vadd.f32 %v3039_v15, %v5627_v31  ;;  %v3079_v39 = vmax.f32 %v3036_v8, 0.0 }
 0x477   : > { %v3086_v57 = vmax.f32 %v3038_v51, 0.0  ;;  %v3085_v14 = vmax.f32 %v2967_v52, 0.0 }
 0x478   : > { %v3144_v37 = vpack.c.bf16 %v3084_v23, %v3076_v54  ;;  %v3087_v42 = vmax.f32 %v3040_v60, 0.0 }
 0x479   : > { %v3146_v26 = vpack.c.bf16 %v3086_v57, %v3078_v53  ;;  %v3145_v2 = vpack.c.bf16 %v3085_v14, %v3077_v7  ;;  %v2970_v4 = vpop.f32.mrb[132].mxu0 }
 0x47a   : > { %v3147_v5 = vpack.c.bf16 %v3087_v42, %v3079_v39  ;;  %v2971_v6 = vadd.f32 %v2970_v4, %v5637_v61  ;;  %v3043_v9 = vpop.f32.mrb[132].mxu1  ;;  %v2972_v10 = vpop.f32.mrb[133].mxu0 }
 0x47b   : > { %v3044_v12 = vadd.f32 %v3043_v9, %v5637_v61  ;;  %v2973_v13 = vadd.f32 %v2972_v10, %v5637_v61  ;;  %v3045_v31 = vpop.f32.mrb[133].mxu1  ;;  %v2974_v63 = vpop.f32.mrb[134].mxu0  ;;  %3318 = vmatprep.subr.bf16.mxu0 %v3145_v2 }
 0x47c   : > { %v3046_v19 = vadd.f32 %v3045_v31, %v5637_v61  ;;  %v2975_v16 = vadd.f32 %v2974_v63, %v5639_v58  ;;  %v3047_v17 = vpop.f32.mrb[134].mxu1  ;;  %3371 = vmatprep.subr.bf16.mxu1 %v3147_v5  ;;  %v2976_v18 = vpop.f32.mrb[135].mxu0  ;;  %3319 = vmatpush1.bf16.msra.mxu0 %v3144_v37  ;;  %v3092_v24 = vmax.f32 %v2971_v6, 0.0 }
 0x47d   : > { %v3048_v21 = vadd.f32 %v3047_v17, %v5639_v58  ;;  %v2977_v32 = vadd.f32 %v2976_v18, %v5639_v58  ;;  %v3049_v1 = vpop.f32.mrb[135].mxu1  ;;  %3372 = vmatpush1.bf16.msra.mxu1 %v3146_v26  ;;  %v3094_v55 = vmax.f32 %v3044_v12, 0.0  ;;  %v3093_v30 = vmax.f32 %v2973_v13, 0.0 }
 0x47e   : > { %v3100_v25 = vmax.f32 %v2975_v16, 0.0  ;;  %v3050_v47 = vadd.f32 %v3049_v1, %v5639_v58  ;;  %v3095_v36 = vmax.f32 %v3046_v19, 0.0 }
 0x47f   : > { %v3102_v33 = vmax.f32 %v3048_v21, 0.0  ;;  %v3101_v61 = vmax.f32 %v2977_v32, 0.0 }
 0x480   : > { %v3152_v27 = vpack.c.bf16 %v3100_v25, %v3092_v24  ;;  %v3103_v62 = vmax.f32 %v3050_v47, 0.0 }
 0x481   : > { %v3154_v34 = vpack.c.bf16 %v3102_v33, %v3094_v55  ;;  %v3153_v35 = vpack.c.bf16 %v3101_v61, %v3093_v30  ;;  %v2980_v38 = vpop.f32.mrb[136].mxu0 }
 0x482   : > { %v3155_v43 = vpack.c.bf16 %v3103_v62, %v3095_v36  ;;  %v2981_v28 = vadd.f32 %v2980_v38, %v5649_v22  ;;  %v3053_v41 = vpop.f32.mrb[136].mxu1  ;;  %v2982_v44 = vpop.f32.mrb[137].mxu0 }
 0x483   : > { %v3054_v45 = vadd.f32 %v3053_v41, %v5649_v22  ;;  %v2983_v46 = vadd.f32 %v2982_v44, %v5649_v22  ;;  %v3055_v58 = vpop.f32.mrb[137].mxu1  ;;  %v2984_v11 = vpop.f32.mrb[138].mxu0  ;;  %3320 = vmatprep.subr.bf16.mxu0 %v3153_v35 }
 0x484   : > { %v3056_v48 = vadd.f32 %v3055_v58, %v5649_v22  ;;  %v2985_v8 = vadd.f32 %v2984_v11, %v5651_v29  ;;  %v3057_v50 = vpop.f32.mrb[138].mxu1  ;;  %3373 = vmatprep.subr.bf16.mxu1 %v3155_v43  ;;  %v2986_v20 = vpop.f32.mrb[139].mxu0  ;;  %3321 = vmatpush1.bf16.msra.mxu0 %v3152_v27  ;;  %v3108_v15 = vmax.f32 %v2981_v28, 0.0 }
 0x485   : > { %v3058_v49 = vadd.f32 %v3057_v50, %v5651_v29  ;;  %v2987_v51 = vadd.f32 %v2986_v20, %v5651_v29  ;;  %v3059_v52 = vpop.f32.mrb[139].mxu1  ;;  %3374 = vmatpush1.bf16.msra.mxu1 %v3154_v34  ;;  %v3110_v60 = vmax.f32 %v3054_v45, 0.0  ;;  %v3109_v53 = vmax.f32 %v2983_v46, 0.0  ;;  %v5741_v62 = vpop.permute.xlu1 %3183 }
 0x486   : > { %v3116_v54 = vmax.f32 %v2985_v8, 0.0  ;;  %v3060_v23 = vadd.f32 %v3059_v52, %v5651_v29  ;;  %v3111_v57 = vmax.f32 %v3056_v48, 0.0 }
 0x487   : > { %v3118_v7 = vmax.f32 %v3058_v49, 0.0  ;;  %v3117_v22 = vmax.f32 %v2987_v51, 0.0 }
 0x488   : > { %v3160_v14 = vpack.c.bf16 %v3116_v54, %v3108_v15  ;;  %v3119_v39 = vmax.f32 %v3060_v23, 0.0 }
 0x489   : > { %v3162_v37 = vpack.c.bf16 %v3118_v7, %v3110_v60  ;;  %v3161_v42 = vpack.c.bf16 %v3117_v22, %v3109_v53  ;;  %v2990_v26 = vpop.f32.mrb[140].mxu0  ;;  %v5753_v22 = vpop.permute.xlu1 %3193 }
 0x48a   : > { %v3163_v2 = vpack.c.bf16 %v3119_v39, %v3111_v57  ;;  %v2991_v4 = vadd.f32 %v2990_v26, %v5661_v56  ;;  %v3063_v5 = vpop.f32.mrb[140].mxu1  ;;  %v2992_v6 = vpop.f32.mrb[141].mxu0 }
 0x48b   : > { %v3064_v9 = vadd.f32 %v3063_v5, %v5661_v56  ;;  %v2993_v10 = vadd.f32 %v2992_v6, %v5661_v56  ;;  %v3065_v29 = vpop.f32.mrb[141].mxu1  ;;  %v2994_v12 = vpop.f32.mrb[142].mxu0  ;;  %3322 = vmatprep.subr.bf16.mxu0 %v3161_v42 }
 0x48c   : > { %v3066_v13 = vadd.f32 %v3065_v29, %v5661_v56  ;;  %v2995_v31 = vadd.f32 %v2994_v12, %v5663_v59  ;;  %v3067_v63 = vpop.f32.mrb[142].mxu1  ;;  %3375 = vmatprep.subr.bf16.mxu1 %v3163_v2  ;;  %v2996_v19 = vpop.f32.mrb[143].mxu0  ;;  %3323 = vmatpush1.bf16.msra.mxu0 %v3160_v14  ;;  %v3124_v21 = vmax.f32 %v2991_v4, 0.0 }
 0x48d   : > { %v3068_v16 = vadd.f32 %v3067_v63, %v5663_v59  ;;  %v2997_v17 = vadd.f32 %v2996_v19, %v5663_v59  ;;  %v3069_v18 = vpop.f32.mrb[143].mxu1  ;;  %3376 = vmatpush1.bf16.msra.mxu1 %v3162_v37  ;;  %v3126_v24 = vmax.f32 %v3064_v9, 0.0  ;;  %v3125_v25 = vmax.f32 %v2993_v10, 0.0 }
 0x48e   : > { %v3132_v32 = vmax.f32 %v2995_v31, 0.0  ;;  %v3070_v1 = vadd.f32 %v3069_v18, %v5663_v59  ;;  %v3127_v55 = vmax.f32 %v3066_v13, 0.0  ;;  %v5739_v59 = vpop.permute.xlu0 %3178 }
 0x48f   : > { %v3134_v47 = vmax.f32 %v3068_v16, 0.0  ;;  %v3133_v56 = vmax.f32 %v2997_v17, 0.0 }
 0x490   : > { %v3168_v30 = vpack.c.bf16 %v3132_v32, %v3124_v21  ;;  %v3135_v33 = vmax.f32 %v3070_v1, 0.0 }
 0x491   : > { %v3170_v61 = vpack.c.bf16 %v3134_v47, %v3126_v24  ;;  %v3169_v36 = vpack.c.bf16 %v3133_v56, %v3125_v25 }
 0x492   : > { %v3171_v27 = vpack.c.bf16 %v3135_v33, %v3127_v55  ;;  %v5751_v23 = vpop.permute.xlu0 %3188 }
 0x493   : > { %3324 = vmatprep.subr.bf16.mxu0 %v3169_v36 }
 0x494   : > { %3377 = vmatprep.subr.bf16.mxu1 %v3171_v27  ;;  %3325 = vmatpush1.bf16.msra.mxu0 %v3168_v30 }
 0x495   : > { %3378 = vmatpush1.bf16.msra.mxu1 %v3170_v61  ;;  %v5766_v61 = vld [vmem:[%s5852_s11] sm:$0x1] }
 0x497   : > { %4004 = vmatmul.mubr.msk.bf16.vlgmr.msra.gmra.mrb[152].mxu0 %vm2031_vm3, %v5676_v0 }
 0x498   : > { %4006 = vmatmul.mubr.msk.bf16.vlgmr.msra.gmra.mrb[152].mxu1 %vm2031_vm3, %v5676_v0  ;;  %3360 = vmatprep.mubr.bf16.mxu0 %v4495_v3 }
 0x499   : > { %3413 = vmatprep.mubr.bf16.mxu1 %v4495_v3 }
 0x49f   : > { %4005 = vmatmul.mubr.msk.bf16.gmra.mrb[156].mxu0 %vm2031_vm3, %v5687_v40 }
 0x4a0   : > { %4007 = vmatmul.mubr.msk.bf16.gmra.mrb[156].mxu1 %vm2031_vm3, %v5687_v40  ;;  %3518 = vmatprep.mubr.bf16.mxu0 %v4495_v3 }
 0x4a1   : > { %3559 = vmatprep.mubr.bf16.mxu1 %v4495_v3 }
 0x52a   : > { %v3246_v34 = vpop.f32.mrb[144].mxu0 }
 0x52b   : > { %v3247_v0 = vadd.f32 %v3246_v34, %v5739_v59  ;;  %v3299_v35 = vpop.f32.mrb[144].mxu1  ;;  %v3248_v38 = vpop.f32.mrb[145].mxu0 }
 0x52c   : > { %v3300_v43 = vadd.f32 %v3299_v35, %v5739_v59  ;;  %v3249_v28 = vadd.f32 %v3248_v38, %v5739_v59  ;;  %v3301_v41 = vpop.f32.mrb[145].mxu1  ;;  %v3250_v44 = vpop.f32.mrb[146].mxu0 }
 0x52d   : > { %v3302_v40 = vadd.f32 %v3301_v41, %v5739_v59  ;;  %v3251_v45 = vadd.f32 %v3250_v44, %v5741_v62  ;;  %v3303_v46 = vpop.f32.mrb[146].mxu1  ;;  %v3252_v58 = vpop.f32.mrb[147].mxu0  ;;  %v3424_v50 = vmax.f32 %v3247_v0, 0.0 }
 0x52e   : > { %v3304_v11 = vadd.f32 %v3303_v46, %v5741_v62  ;;  %v3253_v48 = vadd.f32 %v3252_v58, %v5741_v62  ;;  %v3305_v8 = vpop.f32.mrb[147].mxu1  ;;  %v3426_v51 = vmax.f32 %v3300_v43, 0.0  ;;  %v3425_v52 = vmax.f32 %v3249_v28, 0.0 }
 0x52f   : > { %v3432_v20 = vmax.f32 %v3251_v45, 0.0  ;;  %v3306_v49 = vadd.f32 %v3305_v8, %v5741_v62  ;;  %v3427_v60 = vmax.f32 %v3302_v40, 0.0 }
 0x530   : > { %v3434_v15 = vmax.f32 %v3304_v11, 0.0  ;;  %v3433_v54 = vmax.f32 %v3253_v48, 0.0 }
 0x531   : > { %v3457_v53 = vpack.c.bf16 %v3432_v20, %v3424_v50  ;;  %v3435_v7 = vmax.f32 %v3306_v49, 0.0 }
 0x532   : > { %v3459_v57 = vpack.c.bf16 %v3434_v15, %v3426_v51  ;;  %v3458_v14 = vpack.c.bf16 %v3433_v54, %v3425_v52  ;;  %v3256_v39 = vpop.f32.mrb[148].mxu0 }
 0x533   : > { %v3460_v37 = vpack.c.bf16 %v3435_v7, %v3427_v60  ;;  %v3257_v42 = vadd.f32 %v3256_v39, %v5751_v23  ;;  %v3309_v26 = vpop.f32.mrb[148].mxu1  ;;  %v3258_v2 = vpop.f32.mrb[149].mxu0 }
 0x534   : > { %v3310_v4 = vadd.f32 %v3309_v26, %v5751_v23  ;;  %v3259_v5 = vadd.f32 %v3258_v2, %v5751_v23  ;;  %v3311_v6 = vpop.f32.mrb[149].mxu1  ;;  %v3260_v9 = vpop.f32.mrb[150].mxu0  ;;  %3486 = vmatprep.subr.bf16.mxu0 %v3458_v14 }
 0x535   : > { %v3312_v10 = vadd.f32 %v3311_v6, %v5751_v23  ;;  %v3261_v29 = vadd.f32 %v3260_v9, %v5753_v22  ;;  %v3313_v12 = vpop.f32.mrb[150].mxu1  ;;  %3527 = vmatprep.subr.bf16.mxu1 %v3460_v37  ;;  %v3262_v13 = vpop.f32.mrb[151].mxu0  ;;  %3487 = vmatpush1.bf16.msra.mxu0 %v3457_v53  ;;  %v3440_v16 = vmax.f32 %v3257_v42, 0.0 }
 0x536   : > { %v3314_v31 = vadd.f32 %v3313_v12, %v5753_v22  ;;  %v3263_v63 = vadd.f32 %v3262_v13, %v5753_v22  ;;  %v3315_v19 = vpop.f32.mrb[151].mxu1  ;;  %3528 = vmatpush1.bf16.msra.mxu1 %v3459_v57  ;;  %v3442_v21 = vmax.f32 %v3310_v4, 0.0  ;;  %v3441_v32 = vmax.f32 %v3259_v5, 0.0 }
 0x537   : > { %v3448_v17 = vmax.f32 %v3261_v29, 0.0  ;;  %v3316_v18 = vadd.f32 %v3315_v19, %v5753_v22  ;;  %v3443_v25 = vmax.f32 %v3312_v10, 0.0 }
 0x538   : > { %v3450_v1 = vmax.f32 %v3314_v31, 0.0  ;;  %v3449_v24 = vmax.f32 %v3263_v63, 0.0 }
 0x539   : > { %v3465_v47 = vpack.c.bf16 %v3448_v17, %v3440_v16  ;;  %v3451_v56 = vmax.f32 %v3316_v18, 0.0 }
 0x53a   : > { %v3467_v55 = vpack.c.bf16 %v3450_v1, %v3442_v21  ;;  %v3466_v30 = vpack.c.bf16 %v3449_v24, %v3441_v32 }
 0x53b   : > { %v3468_v33 = vpack.c.bf16 %v3451_v56, %v3443_v25 }
 0x53c   : > { %3488 = vmatprep.subr.bf16.mxu0 %v3466_v30  ;;  %v3477_v30 = vpop.permute.xlu0 %3476 }
 0x53d   : > { %3529 = vmatprep.subr.bf16.mxu1 %v3468_v33  ;;  %3489 = vmatpush1.bf16.msra.mxu0 %v3465_v47  ;;  %v4496_v47 = vmov 1966171168  }
 0x53e   : > { %3530 = vmatpush1.bf16.msra.mxu1 %v3467_v55  ;;  %v3663_v56 = vunpack.c.l.s4 %v4496_v47 }
 0x540   : > { %4008 = vmatmul.mubr.msk.bf16.vlgmr.msra.gmra.mrb[160].mxu0 %vm1478_vm2, %v5766_v61  ;;  %v3664_v33 = vunpack.c.0.s8 %v3663_v56 }
 0x541   : > { %4009 = vmatmul.mubr.msk.bf16.vlgmr.msra.gmra.mrb[160].mxu1 %vm1478_vm2, %v5766_v61  ;;  %3600 = vmatprep.mubr.bf16.mxu0 %v4495_v3 }
 0x542   : > { %3641 = vmatprep.mubr.bf16.mxu1 %v4495_v3 }
 0x56a   : > { %v3352_v36 = vpop.f32.mrb[152].mxu0 }
 0x56b   : > { %v3353_v27 = vadd.f32 %v3352_v36, %v5739_v59  ;;  %v3405_v34 = vpop.f32.mrb[152].mxu1  ;;  %v3354_v0 = vpop.f32.mrb[153].mxu0 }
 0x56c   : > { %v3406_v35 = vadd.f32 %v3405_v34, %v5739_v59  ;;  %v3355_v38 = vadd.f32 %v3354_v0, %v5739_v59  ;;  %v3407_v43 = vpop.f32.mrb[153].mxu1  ;;  %v3356_v28 = vpop.f32.mrb[154].mxu0 }
 0x56d   : > { %v3408_v41 = vadd.f32 %v3407_v43, %v5739_v59  ;;  %v3357_v44 = vadd.f32 %v3356_v28, %v5741_v62  ;;  %v3409_v40 = vpop.f32.mrb[154].mxu1  ;;  %v3358_v45 = vpop.f32.mrb[155].mxu0  ;;  %v3428_v11 = vmax.f32 %v3353_v27, 0.0 }
 0x56e   : > { %v3410_v46 = vadd.f32 %v3409_v40, %v5741_v62  ;;  %v3359_v3 = vadd.f32 %v3358_v45, %v5741_v62  ;;  %v3411_v58 = vpop.f32.mrb[155].mxu1  ;;  %v3430_v50 = vmax.f32 %v3406_v35, 0.0  ;;  %v3429_v20 = vmax.f32 %v3355_v38, 0.0 }
 0x56f   : > { %v3436_v48 = vmax.f32 %v3357_v44, 0.0  ;;  %v3412_v8 = vadd.f32 %v3411_v58, %v5741_v62  ;;  %v3431_v52 = vmax.f32 %v3408_v41, 0.0 }
 0x570   : > { %v3438_v49 = vmax.f32 %v3410_v46, 0.0  ;;  %v3437_v51 = vmax.f32 %v3359_v3, 0.0 }
 0x571   : > { %v3461_v15 = vpack.c.bf16 %v3436_v48, %v3428_v11  ;;  %v3439_v59 = vmax.f32 %v3412_v8, 0.0 }
 0x572   : > { %v3463_v54 = vpack.c.bf16 %v3438_v49, %v3430_v50  ;;  %v3462_v60 = vpack.c.bf16 %v3437_v51, %v3429_v20  ;;  %v3362_v53 = vpop.f32.mrb[156].mxu0 }
 0x573   : > { %v3464_v7 = vpack.c.bf16 %v3439_v59, %v3431_v52  ;;  %v3363_v57 = vadd.f32 %v3362_v53, %v5751_v23  ;;  %v3415_v14 = vpop.f32.mrb[156].mxu1  ;;  %v3364_v39 = vpop.f32.mrb[157].mxu0 }
 0x574   : > { %v3416_v37 = vadd.f32 %v3415_v14, %v5751_v23  ;;  %v3365_v42 = vadd.f32 %v3364_v39, %v5751_v23  ;;  %v3417_v62 = vpop.f32.mrb[157].mxu1  ;;  %v3366_v26 = vpop.f32.mrb[158].mxu0  ;;  %3568 = vmatprep.subr.bf16.mxu0 %v3462_v60 }
 0x575   : > { %v3418_v2 = vadd.f32 %v3417_v62, %v5751_v23  ;;  %v3367_v4 = vadd.f32 %v3366_v26, %v5753_v22  ;;  %v3419_v5 = vpop.f32.mrb[158].mxu1  ;;  %3609 = vmatprep.subr.bf16.mxu1 %v3464_v7  ;;  %v3368_v6 = vpop.f32.mrb[159].mxu0  ;;  %3569 = vmatpush1.bf16.msra.mxu0 %v3461_v15  ;;  %v3444_v12 = vmax.f32 %v3363_v57, 0.0 }
 0x576   : > { %v3420_v9 = vadd.f32 %v3419_v5, %v5753_v22  ;;  %v3369_v10 = vadd.f32 %v3368_v6, %v5753_v22  ;;  %v3421_v29 = vpop.f32.mrb[159].mxu1  ;;  %3610 = vmatpush1.bf16.msra.mxu1 %v3463_v54  ;;  %v3446_v63 = vmax.f32 %v3416_v37, 0.0  ;;  %v3445_v19 = vmax.f32 %v3365_v42, 0.0 }
 0x577   : > { %v3452_v13 = vmax.f32 %v3367_v4, 0.0  ;;  %v3422_v31 = vadd.f32 %v3421_v29, %v5753_v22  ;;  %v3447_v17 = vmax.f32 %v3418_v2, 0.0  ;;  %v3479_v22 = vlaneseq }
 0x578   : > { %v3454_v16 = vmax.f32 %v3420_v9, 0.0  ;;  %v3453_v23 = vmax.f32 %v3369_v10, 0.0 }
 0x579   : > { %v3469_v18 = vpack.c.bf16 %v3452_v13, %v3444_v12  ;;  %v3455_v21 = vmax.f32 %v3422_v31, 0.0  ;;  %v3480_v25 = vshrl.u32 %v3479_v22, 7 }
 0x57a   : > { %v3471_v32 = vpack.c.bf16 %v3454_v16, %v3446_v63  ;;  %v3470_v1 = vpack.c.bf16 %v3453_v23, %v3445_v19 }
 0x57b   : > { %v3472_v24 = vpack.c.bf16 %v3455_v21, %v3447_v17  ;;  %v3481_v55 = vsub.s32 0, %v3480_v25  ;;  %v3667_v38 = vsub.s32 %v3664_v33, %v3480_v25 }
 0x57c   : > { %3570 = vmatprep.subr.bf16.mxu0 %v3470_v1 }
 0x57d   : > { %3611 = vmatprep.subr.bf16.mxu1 %v3472_v24  ;;  %3571 = vmatpush1.bf16.msra.mxu0 %v3469_v18  ;;  %v3482_v36 = vrot.slane %v3477_v30, %v3481_v55 }
 0x57e   : > { %3612 = vmatpush1.bf16.msra.mxu1 %v3471_v32 }
 0x580   : > { %4010 = vmatmul.mubr.msk.bf16.vlgmr.msra.gmra.mrb[164].mxu0 %vm1478_vm2, %v5766_v61 }
 0x581   : > { %4011 = vmatmul.mubr.msk.bf16.vlgmr.msra.gmra.mrb[164].mxu1 %vm1478_vm2, %v5766_v61 }
 0x613   : > { %v3520_v27 = vpop.f32.mrb[160].mxu0 }
 0x614   : > { %v3521_v34 = vadd.f32 %v3520_v27, %v3482_v36  ;;  %v3561_v0 = vpop.f32.mrb[160].mxu1  ;;  %v3522_v35 = vpop.f32.mrb[161].mxu0 }
 0x615   : > { %v3562_v43 = vadd.f32 %v3561_v0, %v3482_v36  ;;  %v3523_v28 = vadd.f32 %v3522_v35, %v3482_v36  ;;  %v3563_v41 = vpop.f32.mrb[161].mxu1  ;;  %v3524_v44 = vpop.f32.mrb[162].mxu0 }
 0x616   : > { %v3564_v40 = vadd.f32 %v3563_v41, %v3482_v36  ;;  %v3565_v61 = vpop.f32.mrb[162].mxu1  ;;  %v3525_v45 = vpop.f32.mrb[163].mxu0 }
 0x617   : > { %v3658_v46 = vcombine.low %v3521_v34, %v3523_v28  ;;  %v3566_v3 = vpop.f32.mrb[163].mxu1 }
 0x618   : > { %v3659_v58 = vcombine.low %v3562_v43, %v3564_v40 }
 0x619   : > { %v3668_v11 = vrot.slane %v3658_v46, %v3667_v38 }
 0x61a   : > { %v3675_v48 = vrot.slane %v3659_v58, %v3667_v38 }
 0x61c   : > { %v3690_v8 = vcombine.low %v3668_v11, %v3675_v48 }
 0x61e   : > { %v3698_v26 = vrot.slane %v3690_v8, %v3667_v38 }
 0x653   : > { %v3602_v50 = vpop.f32.mrb[164].mxu0 }
 0x654   : > { %v3603_v20 = vadd.f32 %v3602_v50, %v3482_v36  ;;  %v3643_v49 = vpop.f32.mrb[164].mxu1  ;;  %v3604_v51 = vpop.f32.mrb[165].mxu0 }
 0x655   : > { %v3644_v52 = vadd.f32 %v3643_v49, %v3482_v36  ;;  %v3605_v15 = vadd.f32 %v3604_v51, %v3482_v36  ;;  %v3645_v59 = vpop.f32.mrb[165].mxu1  ;;  %v3606_v54 = vpop.f32.mrb[166].mxu0 }
 0x656   : > { %v3646_v60 = vadd.f32 %v3645_v59, %v3482_v36  ;;  %v3647_v53 = vpop.f32.mrb[166].mxu1  ;;  %v3607_v7 = vpop.f32.mrb[167].mxu0 }
 0x657   : > { %v3660_v57 = vcombine.low %v3603_v20, %v3605_v15  ;;  %v3648_v14 = vpop.f32.mrb[167].mxu1 }
 0x658   : > { %v3661_v39 = vcombine.low %v3644_v52, %v3646_v60 }
 0x659   : > { %v3682_v37 = vrot.slane %v3660_v57, %v3667_v38 }
 0x65a   : > { %v3689_v42 = vrot.slane %v3661_v39, %v3667_v38 }
 0x65c   : > { %v3691_v62 = vcombine.low %v3682_v37, %v3689_v42 }
 0x65e   : > { %v3705_v2 = vrot.slane %v3691_v62, %v3667_v38 }
 0x660   : > { %v3706_v4 = vcombine.low %v3698_v26, %v3705_v2 }
 0x662   : > { %3708 = vst [vmem:[%s436_s16] sm:$0xff] %v3706_v4 }
 0x663   : > { %4444 = shalt.err (!%p4441_p3)
}
 0x664   : > { %s4445_s21 = scalar_lea.hbm %s5799_s29, 128  ;;  %s4449_s22 = scalar_lea.hbm %s5854_s13, 256 }
 0x665   : > { %p4446_p4 = scmp.ne.s32.totalorder %s5799_s29, %s4445_s21  ;;  %p4450_p9 = scmp.lt.u32.totalorder %s5799_s29, %s5854_s13 }
 0x666   : > { %p4451_p10 = scmp.lt.u32.totalorder %s4449_s22, %s4445_s21  ;;  %p4453_p12 = scmp.lt.u32.totalorder %s4445_s21, %s5799_s29 }
 0x667   : > { %p4447_p7 = pnand %p4446_p4, %p4606_p5 }
 0x668   : > { %p4452_p11 = por %p4451_p10, %p4450_p9 }
 0x669   : > { %p4448_p8 = pneg %p4447_p7 }
 0x66a   : > { %p4454_p13 = por %p4453_p12, %p4452_p11 }
 0x66c   : > { %p4455_p0 = pnand %p4454_p13, %p4448_p8 }
 0x66e   : > { %4458 = shalt.err (!%p4455_p0)
}
 0x66f   : > { %4370 = dma.vmem_to_hbm [thread:$0]  (%p4606_p5), %s5801_s17, 128, %s5799_s29, %s3710_s24  }
 0x670 PF: > { %p4376_p1 = scmp.ge.s32.totalorder %s4493_s30, 2  ;;  %s3736_s25 = sand.u32 1, %s4481_s27  }
 0x671   : > { %s3737_s26 = scalar_lea.sflag [#allocation4], %s3736_s25 }
 0x672   : > { %p4373_p2 = pnand %p4376_p1, %p4610_p6 }
 0x674   : > { %4476 = dma.done.wait (!%p4373_p2), %s3737_s26, 128  }
 0x675   : > { %4478 = vsyncadd (!%p4373_p2), %s3737_s26, 4294967168  ;;  %s5862_s14 = sld [smem:[#allocation6_spill]]  ;;  %s5863_s29 = sld [smem:[#allocation7_spill]] }
 0x676   : > { %p25_p3 = scmp.ge.s32.totalorder %s4594_s15, 4   ;;  %s5864_s27 = smov %s4485_s28 }
 0x677   : > { %s5866_s30 = smov %s4594_s15 }
 0x678   :  { %27 = sbr.rel (!%p25_p3) target bundleno = 6 (0x6), region = 107 }
 0x67b   : > { %s5865_s28 = smov %s5862_s14 }
 0x67f   :  { %3742 = vsyncpa [#allocation4], 1 }
 0x680   :  { %3744 = vsyncpa [#allocation4 + $0x1], 1 }

</bundles_post_ra>
